<compile_context>
chip_gen: v6e
topology: v6e:2x2x1
jax: 0.10.0
libtpu: 0.0.40
codegen_flags: <defaults>
</compile_context>

<pallas_src>
import functools

import jax
import jax.numpy as jnp
from jax.experimental import pallas as pl
from jax.experimental.pallas import tpu as pltpu

LEAKY_SLOPE = 0.2          # nn.LeakyReLU(0.2) in the reference module
LANE = 128                 # lane-dense channel padding

# (kernel, stride, padding, activation) for conv_1 .. conv_5
CONV_CFG = (
    (4, 2, 1, "leaky"),
    (4, 2, 1, "leaky"),
    (3, 2, 1, "leaky"),
    (4, 2, 1, "leaky"),
    (2, 1, 0, "sigmoid"),
)


def _pad_to(n, m):
    return ((n + m - 1) // m) * m


# ----------------------------------------------------------------------------
# Pallas kernels (single grid step; every operand is one full VMEM block)
# ----------------------------------------------------------------------------
def _label_planes_kernel(emb_ref, w_ref, b_ref, o_ref):
    """tanh(emb @ W + b) with all five label linears fused along N."""
    y = jnp.dot(emb_ref[...], w_ref[...], preferred_element_type=jnp.float32)
    o_ref[...] = jnp.tanh(y + b_ref[...])


def _conv_stage_kernel(px_ref, plc_ref, wx_ref, wlc_ref, shift_ref, o_ref, *, act):
    """y = act(px @ Wx + plc @ Wlc) + shift.

    Wx / Wlc carry the folded eval-mode BatchNorm scale (scale > 0, so the
    fold commutes with LeakyReLU); shift is the BatchNorm shift (zeros for the
    final sigmoid stage).  Dropout is the identity at inference.
    """
    y = jnp.dot(px_ref[...], wx_ref[...], preferred_element_type=jnp.float32)
    y = y + jnp.dot(plc_ref[...], wlc_ref[...], preferred_element_type=jnp.float32)
    if act == "leaky":
        y = jnp.where(y >= 0.0, y, LEAKY_SLOPE * y)
    elif act == "sigmoid":
        y = jax.nn.sigmoid(y)
    else:
        raise ValueError(act)
    o_ref[...] = (y + shift_ref[...]).astype(o_ref.dtype)


def _single_block_call(kernel, out_shape, *inputs):
    """pallas_call with a single grid step; each 2-D operand is one full VMEM
    block (block == full array dims, so ragged M/K/N are legal unpadded)."""
    return pl.pallas_call(
        kernel,
        out_shape=out_shape,
        grid=(1,),
        in_specs=[pl.BlockSpec(a.shape, lambda i: (0, 0)) for a in inputs],
        out_specs=pl.BlockSpec(out_shape.shape, lambda i: (0, 0)),
        compiler_params=pltpu.CompilerParams(
            dimension_semantics=("parallel",)),   # disjoint output blocks
    )(*inputs)


# ----------------------------------------------------------------------------
# XLA glue: im2col patch extraction (static reshapes / strided slices only).
# TODO(synk): fusing the whole conv stack into a single VMEM-resident kernel
# needs in-kernel strided space-to-depth patch extraction, which has no clean
# Pallas/Mosaic equivalent today, so the patch extraction stays as XLA glue.
# ----------------------------------------------------------------------------
def im2col(x_nhwc, k, stride, pad):
    if pad:
        x_nhwc = jnp.pad(x_nhwc, ((0, 0), (pad, pad), (pad, pad), (0, 0)))
    B, H, W, C = x_nhwc.shape
    oh = (H - k) // stride + 1
    ow = (W - k) // stride + 1
    cols = []
    for i in range(k):
        for j in range(k):
            cols.append(x_nhwc[:, i:i + stride * oh:stride,
                               j:j + stride * ow:stride, :])
    patches = jnp.stack(cols, axis=-2)               # (B, oh, ow, k*k, C)
    return patches.reshape(B * oh * ow, k * k * C), oh, ow


# ----------------------------------------------------------------------------
# Parameter construction (deterministic, synthetic, PyTorch layout)
# ----------------------------------------------------------------------------
def make_params(key, input_channels=1, latent_dim=16, output_dim=32, embedding_dim=5):
    ks = jax.random.split(key, 12)
    s = 0.05
    p = {}
    p["emb"] = jax.random.normal(ks[0], (10, embedding_dim), jnp.float32) * s
    for n, (k, hw) in enumerate(zip(ks[1:6], [28 * 28, 14 * 14, 7 * 7, 4 * 4, 2 * 2]), 1):
        k1, k2 = jax.random.split(k)
        p[f"lin{n}_w"] = jax.random.normal(k1, (embedding_dim, hw), jnp.float32) * s
        p[f"lin{n}_b"] = jax.random.normal(k2, (hw,), jnp.float32) * s
    conv_defs = (
        (latent_dim,     input_channels,  4),
        (latent_dim * 2, latent_dim,      4),
        (latent_dim * 4, latent_dim * 2,  3),
        (latent_dim * 8, latent_dim * 4,  4),
        (output_dim,     latent_dim * 8,  2),
    )
    p["conv_defs"] = conv_defs
    for n, (k, (cout, cin_real, ksz)) in enumerate(zip(ks[6:11], conv_defs), 1):
        p[f"conv{n}_w"] = jax.random.normal(
            k, (cout, cin_real + 1, ksz, ksz), jnp.float32) * s   # +1: lc channel
    # BatchNorm2d (eval mode, PyTorch defaults): gamma=1, beta=0, mean=0, var=1
    for n, (cout, _, _) in enumerate(conv_defs[:4], 1):
        p[f"bn{n}_gamma"] = jnp.ones((cout,), jnp.float32)
        p[f"bn{n}_beta"] = jnp.zeros((cout,), jnp.float32)
        p[f"bn{n}_mean"] = jnp.zeros((cout,), jnp.float32)
        p[f"bn{n}_var"] = jnp.ones((cout,), jnp.float32)
    return p


def prepare_inference_params(p, eps=1e-5):
    """One-time prep: fuse the label linears, split off the lc channel, fold
    BatchNorm scale into the conv weights, and pad to lane-dense shapes."""
    prep = {"emb": p["emb"]}

    # fuse the five label linears along N and pad N to a multiple of 128
    w_cat = jnp.concatenate([p[f"lin{n}_w"] for n in range(1, 6)], axis=1)
    b_cat = jnp.concatenate([p[f"lin{n}_b"] for n in range(1, 6)], axis=0)
    n_tot = w_cat.shape[1]
    n_pad = _pad_to(n_tot, LANE)
    prep["lin_w"] = jnp.pad(w_cat, ((0, 0), (0, n_pad - n_tot)))
    prep["lin_b"] = jnp.pad(b_cat, (0, n_pad - n_tot)).reshape(1, n_pad)

    convs = []
    cin_carried = p["conv_defs"][0][1]           # real channels of the image
    for n, (cout, cin_real, ksz) in enumerate(p["conv_defs"], 1):
        w = p[f"conv{n}_w"]                      # (cout, cin_real + 1, k, k)
        if n <= 4:
            scale = p[f"bn{n}_gamma"] / jnp.sqrt(p[f"bn{n}_var"] + eps)   # > 0
            shift = p[f"bn{n}_beta"] - p[f"bn{n}_mean"] * scale
        else:                                    # conv_5 has no BatchNorm
            scale = jnp.ones((cout,), jnp.float32)
            shift = jnp.zeros((cout,), jnp.float32)
        w_x = w[:, :cin_real]                    # main activation channels
        w_lc = w[:, cin_real:]                   # label-conditioning channel
        # pad Cin to the (lane-dense) channel count actually carried between
        # stages; the padded activation channels are exactly zero.
        w_x = jnp.pad(w_x, ((0, 0), (0, cin_carried - cin_real), (0, 0), (0, 0)))
        wx = jnp.transpose(w_x, (2, 3, 1, 0)).reshape(ksz * ksz * cin_carried, cout)
        wlc = jnp.transpose(w_lc, (2, 3, 1, 0)).reshape(ksz * ksz, cout)
        wx = wx * scale[None, :]                 # fold BN scale (scale > 0)
        wlc = wlc * scale[None, :]
        cout_pad = _pad_to(cout, LANE)           # lane-dense output stores
        wx = jnp.pad(wx, ((0, 0), (0, cout_pad - cout)))
        wlc = jnp.pad(wlc, ((0, 0), (0, cout_pad - cout)))
        shift = jnp.pad(shift, (0, cout_pad - cout)).reshape(1, cout_pad)
        convs.append((wx, wlc, shift))
        cin_carried = cout_pad                   # next stage sees padded channels
    prep["convs"] = tuple(convs)
    return prep


# ----------------------------------------------------------------------------
# Forward pass
# ----------------------------------------------------------------------------
@functools.partial(jax.jit, static_argnames=("output_dim",))
def forward(prep, x_nchw, label, *, output_dim):
    B = x_nchw.shape[0]
    x = jnp.transpose(x_nchw, (0, 2, 3, 1))          # NCHW -> NHWC (C on lanes)

    # label conditioning: embedding gather (glue) + one fused tanh matmul
    emb = prep["emb"][label]                         # (B, E)
    lcat = _single_block_call(
        _label_planes_kernel,
        jax.ShapeDtypeStruct((B, prep["lin_w"].shape[1]), jnp.float32),
        emb, prep["lin_w"], prep["lin_b"])
    sizes = (28, 14, 7, 4, 2)
    lcs, off = [], 0
    for s in sizes:
        lcs.append(lcat[:, off:off + s * s].reshape(B, s, s, 1))
        off += s * s

    o = x
    for (k, stride, pad, act), lc, (wx, wlc, shift) in zip(CONV_CFG, lcs, prep["convs"]):
        px, oh, ow = im2col(o, k, stride, pad)       # (M, k*k*C)
        plc, _, _ = im2col(lc, k, stride, pad)       # (M, k*k)
        y = _single_block_call(
            functools.partial(_conv_stage_kernel, act=act),
            jax.ShapeDtypeStruct((px.shape[0], wx.shape[1]), jnp.float32),
            px, plc, wx, wlc, shift)
        o = y.reshape(B, oh, ow, wx.shape[1])

    # (B, 1, 1, 128) -> real output channels -> NCHW (B, output_dim, 1, 1)
    out = jnp.transpose(o[..., :output_dim], (0, 3, 1, 2))
    return out, label


if __name__ == "__main__":
    key = jax.random.PRNGKey(0)
    kp, kx, kl = jax.random.split(key, 3)

    # Small config consistent with the module (spatial size is fixed at 28 by
    # the hard-coded 28*28 linear layer): latent_dim=16, output_dim=32, E=5.
    params = make_params(kp, input_channels=1, latent_dim=16, output_dim=32,
                         embedding_dim=5)
    prep = prepare_inference_params(params)

    x = jax.random.normal(kx, (2, 1, 28, 28), jnp.float32)     # NCHW like PyTorch
    label = jax.random.randint(kl, (2,), 0, 10, jnp.int32)

    out, lbl = forward(prep, x, label, output_dim=32)
    out = jax.block_until_ready(out)
    assert out.shape == (2, 32, 1, 1), out.shape
    assert bool(jnp.all((out >= 0.0) & (out <= 1.0)))
    print("KERNEL_OK")
</pallas_src>

<mosaic_0001>
module attributes {stable_mosaic.version = 11 : i64} {
  func.func @_label_planes_kernel(%arg0: i32, %arg1: memref<2x5xf32, #tpu.memory_space<vmem>>, %arg2: memref<5x1152xf32, #tpu.memory_space<vmem>>, %arg3: memref<1x1152xf32, #tpu.memory_space<vmem>>, %arg4: memref<2x1152xf32, #tpu.memory_space<vmem>>) attributes {dimension_semantics = [#tpu.dimension_semantics<parallel>], iteration_bounds = array<i64: 1>, scalar_prefetch = 0 : i64, scratch_operands = 0 : i64, tpu.core_type = #tpu.core_type<tc>, window_params = [{pipeline_mode = #tpu.pipeline_mode<synchronous>, transform_indices = @transform_0, window_bounds = array<i64: 2, 5>}, {pipeline_mode = #tpu.pipeline_mode<synchronous>, transform_indices = @transform_1, window_bounds = array<i64: 5, 1152>}, {pipeline_mode = #tpu.pipeline_mode<synchronous>, transform_indices = @transform_2, window_bounds = array<i64: 1, 1152>}, {pipeline_mode = #tpu.pipeline_mode<synchronous>, transform_indices = @transform_3, window_bounds = array<i64: 2, 1152>}]} {
    %c0 = arith.constant 0 : index
    %c0_0 = arith.constant 0 : index
    %0 = vector.load %arg1[%c0, %c0_0] : memref<2x5xf32, #tpu.memory_space<vmem>>, vector<2x5xf32>
    %c0_1 = arith.constant 0 : index
    %c0_2 = arith.constant 0 : index
    %1 = vector.load %arg2[%c0_1, %c0_2] : memref<5x1152xf32, #tpu.memory_space<vmem>>, vector<5x1152xf32>
    %cst = arith.constant dense<0.000000e+00> : vector<2x1152xf32>
    %2 = tpu.matmul %0, %1, %cst {dimension_numbers = #tpu.dot_dimension_numbers<[1], [0], [0], [1], [0, 0, 1, 1], [], []>} : vector<2x5xf32>, vector<5x1152xf32>, vector<2x1152xf32> -> vector<2x1152xf32>
    %c0_3 = arith.constant 0 : index
    %c0_4 = arith.constant 0 : index
    %3 = vector.load %arg3[%c0_3, %c0_4] : memref<1x1152xf32, #tpu.memory_space<vmem>>, vector<1x1152xf32>
    %4 = vector.broadcast %3 : vector<1x1152xf32> to vector<2x1152xf32>
    %5 = arith.addf %2, %4 : vector<2x1152xf32>
    %6 = math.tanh %5 : vector<2x1152xf32>
    %c0_5 = arith.constant 0 : index
    %c0_6 = arith.constant 0 : index
    %7 = vector.load %arg4[%c0_5, %c0_6] : memref<2x1152xf32, #tpu.memory_space<vmem>>, vector<2x1152xf32>
    tpu.vector_store %arg4[%c0_5, %c0_6], %6 {strides = array<i32>} : memref<2x1152xf32, #tpu.memory_space<vmem>>, vector<2x1152xf32>,
    return
  }
  func.func @transform_0(%arg0: i32) -> (i32, i32) {
    %c0_i32 = arith.constant 0 : i32
    %c0_i32_0 = arith.constant 0 : i32
    %c0_i32_1 = arith.constant 0 : i32
    return %c0_i32, %c0_i32_0 : i32, i32
  }
  func.func @transform_1(%arg0: i32) -> (i32, i32) {
    %c0_i32 = arith.constant 0 : i32
    %c0_i32_0 = arith.constant 0 : i32
    %c0_i32_1 = arith.constant 0 : i32
    return %c0_i32, %c0_i32_0 : i32, i32
  }
  func.func @transform_2(%arg0: i32) -> (i32, i32) {
    %c0_i32 = arith.constant 0 : i32
    %c0_i32_0 = arith.constant 0 : i32
    %c0_i32_1 = arith.constant 0 : i32
    return %c0_i32, %c0_i32_0 : i32, i32
  }
  func.func @transform_3(%arg0: i32) -> (i32, i32) {
    %c0_i32 = arith.constant 0 : i32
    %c0_i32_0 = arith.constant 0 : i32
    %c0_i32_1 = arith.constant 0 : i32
    return %c0_i32, %c0_i32_0 : i32, i32
  }
}

module attributes {stable_mosaic.version = 11 : i64} {
  func.func @_conv_stage_kernel(%arg0: i32, %arg1: memref<392x16xf32, #tpu.memory_space<vmem>>, %arg2: memref<392x16xf32, #tpu.memory_space<vmem>>, %arg3: memref<16x128xf32, #tpu.memory_space<vmem>>, %arg4: memref<16x128xf32, #tpu.memory_space<vmem>>, %arg5: memref<1x128xf32, #tpu.memory_space<vmem>>, %arg6: memref<392x128xf32, #tpu.memory_space<vmem>>) attributes {dimension_semantics = [#tpu.dimension_semantics<parallel>], iteration_bounds = array<i64: 1>, scalar_prefetch = 0 : i64, scratch_operands = 0 : i64, tpu.core_type = #tpu.core_type<tc>, window_params = [{pipeline_mode = #tpu.pipeline_mode<synchronous>, transform_indices = @transform_0, window_bounds = array<i64: 392, 16>}, {pipeline_mode = #tpu.pipeline_mode<synchronous>, transform_indices = @transform_1, window_bounds = array<i64: 392, 16>}, {pipeline_mode = #tpu.pipeline_mode<synchronous>, transform_indices = @transform_2, window_bounds = array<i64: 16, 128>}, {pipeline_mode = #tpu.pipeline_mode<synchronous>, transform_indices = @transform_3, window_bounds = array<i64: 16, 128>}, {pipeline_mode = #tpu.pipeline_mode<synchronous>, transform_indices = @transform_4, window_bounds = array<i64: 1, 128>}, {pipeline_mode = #tpu.pipeline_mode<synchronous>, transform_indices = @transform_5, window_bounds = array<i64: 392, 128>}]} {
    %c0 = arith.constant 0 : index
    %c0_0 = arith.constant 0 : index
    %0 = vector.load %arg1[%c0, %c0_0] : memref<392x16xf32, #tpu.memory_space<vmem>>, vector<392x16xf32>
    %c0_1 = arith.constant 0 : index
    %c0_2 = arith.constant 0 : index
    %1 = vector.load %arg3[%c0_1, %c0_2] : memref<16x128xf32, #tpu.memory_space<vmem>>, vector<16x128xf32>
    %cst = arith.constant dense<0.000000e+00> : vector<392x128xf32>
    %2 = tpu.matmul %0, %1, %cst {dimension_numbers = #tpu.dot_dimension_numbers<[1], [0], [0], [1], [0, 0, 1, 1], [], []>} : vector<392x16xf32>, vector<16x128xf32>, vector<392x128xf32> -> vector<392x128xf32>
    %c0_3 = arith.constant 0 : index
    %c0_4 = arith.constant 0 : index
    %3 = vector.load %arg2[%c0_3, %c0_4] : memref<392x16xf32, #tpu.memory_space<vmem>>, vector<392x16xf32>
    %c0_5 = arith.constant 0 : index
    %c0_6 = arith.constant 0 : index
    %4 = vector.load %arg4[%c0_5, %c0_6] : memref<16x128xf32, #tpu.memory_space<vmem>>, vector<16x128xf32>
    %cst_7 = arith.constant dense<0.000000e+00> : vector<392x128xf32>
    %5 = tpu.matmul %3, %4, %cst_7 {dimension_numbers = #tpu.dot_dimension_numbers<[1], [0], [0], [1], [0, 0, 1, 1], [], []>} : vector<392x16xf32>, vector<16x128xf32>, vector<392x128xf32> -> vector<392x128xf32>
    %6 = arith.addf %2, %5 : vector<392x128xf32>
    %cst_8 = arith.constant 0.000000e+00 : f32
    %7 = vector.broadcast %cst_8 : f32 to vector<392x128xf32>
    %8 = arith.cmpf oge, %6, %7 : vector<392x128xf32>
    %cst_9 = arith.constant 2.000000e-01 : f32
    %9 = vector.broadcast %cst_9 : f32 to vector<392x128xf32>
    %10 = arith.mulf %9, %6 : vector<392x128xf32>
    %11 = arith.select %8, %6, %10 : vector<392x128xi1>, vector<392x128xf32>
    %c0_10 = arith.constant 0 : index
    %c0_11 = arith.constant 0 : index
    %12 = vector.load %arg5[%c0_10, %c0_11] : memref<1x128xf32, #tpu.memory_space<vmem>>, vector<1x128xf32>
    %13 = vector.broadcast %12 : vector<1x128xf32> to vector<392x128xf32>
    %14 = arith.addf %11, %13 : vector<392x128xf32>
    %c0_12 = arith.constant 0 : index
    %c0_13 = arith.constant 0 : index
    %15 = vector.load %arg6[%c0_12, %c0_13] : memref<392x128xf32, #tpu.memory_space<vmem>>, vector<392x128xf32>
    tpu.vector_store %arg6[%c0_12, %c0_13], %14 {strides = array<i32>} : memref<392x128xf32, #tpu.memory_space<vmem>>, vector<392x128xf32>,
    return
  }
  func.func @transform_0(%arg0: i32) -> (i32, i32) {
    %c0_i32 = arith.constant 0 : i32
    %c0_i32_0 = arith.constant 0 : i32
    %c0_i32_1 = arith.constant 0 : i32
    return %c0_i32, %c0_i32_0 : i32, i32
  }
  func.func @transform_1(%arg0: i32) -> (i32, i32) {
    %c0_i32 = arith.constant 0 : i32
    %c0_i32_0 = arith.constant 0 : i32
    %c0_i32_1 = arith.constant 0 : i32
    return %c0_i32, %c0_i32_0 : i32, i32
  }
  func.func @transform_2(%arg0: i32) -> (i32, i32) {
    %c0_i32 = arith.constant 0 : i32
    %c0_i32_0 = arith.constant 0 : i32
    %c0_i32_1 = arith.constant 0 : i32
    return %c0_i32, %c0_i32_0 : i32, i32
  }
  func.func @transform_3(%arg0: i32) -> (i32, i32) {
    %c0_i32 = arith.constant 0 : i32
    %c0_i32_0 = arith.constant 0 : i32
    %c0_i32_1 = arith.constant 0 : i32
    return %c0_i32, %c0_i32_0 : i32, i32
  }
  func.func @transform_4(%arg0: i32) -> (i32, i32) {
    %c0_i32 = arith.constant 0 : i32
    %c0_i32_0 = arith.constant 0 : i32
    %c0_i32_1 = arith.constant 0 : i32
    return %c0_i32, %c0_i32_0 : i32, i32
  }
  func.func @transform_5(%arg0: i32) -> (i32, i32) {
    %c0_i32 = arith.constant 0 : i32
    %c0_i32_0 = arith.constant 0 : i32
    %c0_i32_1 = arith.constant 0 : i32
    return %c0_i32, %c0_i32_0 : i32, i32
  }
}

module attributes {stable_mosaic.version = 11 : i64} {
  func.func @_conv_stage_kernel(%arg0: i32, %arg1: memref<98x2048xf32, #tpu.memory_space<vmem>>, %arg2: memref<98x16xf32, #tpu.memory_space<vmem>>, %arg3: memref<2048x128xf32, #tpu.memory_space<vmem>>, %arg4: memref<16x128xf32, #tpu.memory_space<vmem>>, %arg5: memref<1x128xf32, #tpu.memory_space<vmem>>, %arg6: memref<98x128xf32, #tpu.memory_space<vmem>>) attributes {dimension_semantics = [#tpu.dimension_semantics<parallel>], iteration_bounds = array<i64: 1>, scalar_prefetch = 0 : i64, scratch_operands = 0 : i64, tpu.core_type = #tpu.core_type<tc>, window_params = [{pipeline_mode = #tpu.pipeline_mode<synchronous>, transform_indices = @transform_0, window_bounds = array<i64: 98, 2048>}, {pipeline_mode = #tpu.pipeline_mode<synchronous>, transform_indices = @transform_1, window_bounds = array<i64: 98, 16>}, {pipeline_mode = #tpu.pipeline_mode<synchronous>, transform_indices = @transform_2, window_bounds = array<i64: 2048, 128>}, {pipeline_mode = #tpu.pipeline_mode<synchronous>, transform_indices = @transform_3, window_bounds = array<i64: 16, 128>}, {pipeline_mode = #tpu.pipeline_mode<synchronous>, transform_indices = @transform_4, window_bounds = array<i64: 1, 128>}, {pipeline_mode = #tpu.pipeline_mode<synchronous>, transform_indices = @transform_5, window_bounds = array<i64: 98, 128>}]} {
    %c0 = arith.constant 0 : index
    %c0_0 = arith.constant 0 : index
    %0 = vector.load %arg1[%c0, %c0_0] : memref<98x2048xf32, #tpu.memory_space<vmem>>, vector<98x2048xf32>
    %c0_1 = arith.constant 0 : index
    %c0_2 = arith.constant 0 : index
    %1 = vector.load %arg3[%c0_1, %c0_2] : memref<2048x128xf32, #tpu.memory_space<vmem>>, vector<2048x128xf32>
    %cst = arith.constant dense<0.000000e+00> : vector<98x128xf32>
    %2 = tpu.matmul %0, %1, %cst {dimension_numbers = #tpu.dot_dimension_numbers<[1], [0], [0], [1], [0, 0, 1, 1], [], []>} : vector<98x2048xf32>, vector<2048x128xf32>, vector<98x128xf32> -> vector<98x128xf32>
    %c0_3 = arith.constant 0 : index
    %c0_4 = arith.constant 0 : index
    %3 = vector.load %arg2[%c0_3, %c0_4] : memref<98x16xf32, #tpu.memory_space<vmem>>, vector<98x16xf32>
    %c0_5 = arith.constant 0 : index
    %c0_6 = arith.constant 0 : index
    %4 = vector.load %arg4[%c0_5, %c0_6] : memref<16x128xf32, #tpu.memory_space<vmem>>, vector<16x128xf32>
    %cst_7 = arith.constant dense<0.000000e+00> : vector<98x128xf32>
    %5 = tpu.matmul %3, %4, %cst_7 {dimension_numbers = #tpu.dot_dimension_numbers<[1], [0], [0], [1], [0, 0, 1, 1], [], []>} : vector<98x16xf32>, vector<16x128xf32>, vector<98x128xf32> -> vector<98x128xf32>
    %6 = arith.addf %2, %5 : vector<98x128xf32>
    %cst_8 = arith.constant 0.000000e+00 : f32
    %7 = vector.broadcast %cst_8 : f32 to vector<98x128xf32>
    %8 = arith.cmpf oge, %6, %7 : vector<98x128xf32>
    %cst_9 = arith.constant 2.000000e-01 : f32
    %9 = vector.broadcast %cst_9 : f32 to vector<98x128xf32>
    %10 = arith.mulf %9, %6 : vector<98x128xf32>
    %11 = arith.select %8, %6, %10 : vector<98x128xi1>, vector<98x128xf32>
    %c0_10 = arith.constant 0 : index
    %c0_11 = arith.constant 0 : index
    %12 = vector.load %arg5[%c0_10, %c0_11] : memref<1x128xf32, #tpu.memory_space<vmem>>, vector<1x128xf32>
    %13 = vector.broadcast %12 : vector<1x128xf32> to vector<98x128xf32>
    %14 = arith.addf %11, %13 : vector<98x128xf32>
    %c0_12 = arith.constant 0 : index
    %c0_13 = arith.constant 0 : index
    %15 = vector.load %arg6[%c0_12, %c0_13] : memref<98x128xf32, #tpu.memory_space<vmem>>, vector<98x128xf32>
    tpu.vector_store %arg6[%c0_12, %c0_13], %14 {strides = array<i32>} : memref<98x128xf32, #tpu.memory_space<vmem>>, vector<98x128xf32>,
    return
  }
  func.func @transform_0(%arg0: i32) -> (i32, i32) {
    %c0_i32 = arith.constant 0 : i32
    %c0_i32_0 = arith.constant 0 : i32
    %c0_i32_1 = arith.constant 0 : i32
    return %c0_i32, %c0_i32_0 : i32, i32
  }
  func.func @transform_1(%arg0: i32) -> (i32, i32) {
    %c0_i32 = arith.constant 0 : i32
    %c0_i32_0 = arith.constant 0 : i32
    %c0_i32_1 = arith.constant 0 : i32
    return %c0_i32, %c0_i32_0 : i32, i32
  }
  func.func @transform_2(%arg0: i32) -> (i32, i32) {
    %c0_i32 = arith.constant 0 : i32
    %c0_i32_0 = arith.constant 0 : i32
    %c0_i32_1 = arith.constant 0 : i32
    return %c0_i32, %c0_i32_0 : i32, i32
  }
  func.func @transform_3(%arg0: i32) -> (i32, i32) {
    %c0_i32 = arith.constant 0 : i32
    %c0_i32_0 = arith.constant 0 : i32
    %c0_i32_1 = arith.constant 0 : i32
    return %c0_i32, %c0_i32_0 : i32, i32
  }
  func.func @transform_4(%arg0: i32) -> (i32, i32) {
    %c0_i32 = arith.constant 0 : i32
    %c0_i32_0 = arith.constant 0 : i32
    %c0_i32_1 = arith.constant 0 : i32
    return %c0_i32, %c0_i32_0 : i32, i32
  }
  func.func @transform_5(%arg0: i32) -> (i32, i32) {
    %c0_i32 = arith.constant 0 : i32
    %c0_i32_0 = arith.constant 0 : i32
    %c0_i32_1 = arith.constant 0 : i32
    return %c0_i32, %c0_i32_0 : i32, i32
  }
}

module attributes {stable_mosaic.version = 11 : i64} {
  func.func @_conv_stage_kernel(%arg0: i32, %arg1: memref<32x1152xf32, #tpu.memory_space<vmem>>, %arg2: memref<32x9xf32, #tpu.memory_space<vmem>>, %arg3: memref<1152x128xf32, #tpu.memory_space<vmem>>, %arg4: memref<9x128xf32, #tpu.memory_space<vmem>>, %arg5: memref<1x128xf32, #tpu.memory_space<vmem>>, %arg6: memref<32x128xf32, #tpu.memory_space<vmem>>) attributes {dimension_semantics = [#tpu.dimension_semantics<parallel>], iteration_bounds = array<i64: 1>, scalar_prefetch = 0 : i64, scratch_operands = 0 : i64, tpu.core_type = #tpu.core_type<tc>, window_params = [{pipeline_mode = #tpu.pipeline_mode<synchronous>, transform_indices = @transform_0, window_bounds = array<i64: 32, 1152>}, {pipeline_mode = #tpu.pipeline_mode<synchronous>, transform_indices = @transform_1, window_bounds = array<i64: 32, 9>}, {pipeline_mode = #tpu.pipeline_mode<synchronous>, transform_indices = @transform_2, window_bounds = array<i64: 1152, 128>}, {pipeline_mode = #tpu.pipeline_mode<synchronous>, transform_indices = @transform_3, window_bounds = array<i64: 9, 128>}, {pipeline_mode = #tpu.pipeline_mode<synchronous>, transform_indices = @transform_4, window_bounds = array<i64: 1, 128>}, {pipeline_mode = #tpu.pipeline_mode<synchronous>, transform_indices = @transform_5, window_bounds = array<i64: 32, 128>}]} {
    %c0 = arith.constant 0 : index
    %c0_0 = arith.constant 0 : index
    %0 = vector.load %arg1[%c0, %c0_0] : memref<32x1152xf32, #tpu.memory_space<vmem>>, vector<32x1152xf32>
    %c0_1 = arith.constant 0 : index
    %c0_2 = arith.constant 0 : index
    %1 = vector.load %arg3[%c0_1, %c0_2] : memref<1152x128xf32, #tpu.memory_space<vmem>>, vector<1152x128xf32>
    %cst = arith.constant dense<0.000000e+00> : vector<32x128xf32>
    %2 = tpu.matmul %0, %1, %cst {dimension_numbers = #tpu.dot_dimension_numbers<[1], [0], [0], [1], [0, 0, 1, 1], [], []>} : vector<32x1152xf32>, vector<1152x128xf32>, vector<32x128xf32> -> vector<32x128xf32>
    %c0_3 = arith.constant 0 : index
    %c0_4 = arith.constant 0 : index
    %3 = vector.load %arg2[%c0_3, %c0_4] : memref<32x9xf32, #tpu.memory_space<vmem>>, vector<32x9xf32>
    %c0_5 = arith.constant 0 : index
    %c0_6 = arith.constant 0 : index
    %4 = vector.load %arg4[%c0_5, %c0_6] : memref<9x128xf32, #tpu.memory_space<vmem>>, vector<9x128xf32>
    %cst_7 = arith.constant dense<0.000000e+00> : vector<32x128xf32>
    %5 = tpu.matmul %3, %4, %cst_7 {dimension_numbers = #tpu.dot_dimension_numbers<[1], [0], [0], [1], [0, 0, 1, 1], [], []>} : vector<32x9xf32>, vector<9x128xf32>, vector<32x128xf32> -> vector<32x128xf32>
    %6 = arith.addf %2, %5 : vector<32x128xf32>
    %cst_8 = arith.constant 0.000000e+00 : f32
    %7 = vector.broadcast %cst_8 : f32 to vector<32x128xf32>
    %8 = arith.cmpf oge, %6, %7 : vector<32x128xf32>
    %cst_9 = arith.constant 2.000000e-01 : f32
    %9 = vector.broadcast %cst_9 : f32 to vector<32x128xf32>
    %10 = arith.mulf %9, %6 : vector<32x128xf32>
    %11 = arith.select %8, %6, %10 : vector<32x128xi1>, vector<32x128xf32>
    %c0_10 = arith.constant 0 : index
    %c0_11 = arith.constant 0 : index
    %12 = vector.load %arg5[%c0_10, %c0_11] : memref<1x128xf32, #tpu.memory_space<vmem>>, vector<1x128xf32>
    %13 = vector.broadcast %12 : vector<1x128xf32> to vector<32x128xf32>
    %14 = arith.addf %11, %13 : vector<32x128xf32>
    %c0_12 = arith.constant 0 : index
    %c0_13 = arith.constant 0 : index
    %15 = vector.load %arg6[%c0_12, %c0_13] : memref<32x128xf32, #tpu.memory_space<vmem>>, vector<32x128xf32>
    tpu.vector_store %arg6[%c0_12, %c0_13], %14 {strides = array<i32>} : memref<32x128xf32, #tpu.memory_space<vmem>>, vector<32x128xf32>,
    return
  }
  func.func @transform_0(%arg0: i32) -> (i32, i32) {
    %c0_i32 = arith.constant 0 : i32
    %c0_i32_0 = arith.constant 0 : i32
    %c0_i32_1 = arith.constant 0 : i32
    return %c0_i32, %c0_i32_0 : i32, i32
  }
  func.func @transform_1(%arg0: i32) -> (i32, i32) {
    %c0_i32 = arith.constant 0 : i32
    %c0_i32_0 = arith.constant 0 : i32
    %c0_i32_1 = arith.constant 0 : i32
    return %c0_i32, %c0_i32_0 : i32, i32
  }
  func.func @transform_2(%arg0: i32) -> (i32, i32) {
    %c0_i32 = arith.constant 0 : i32
    %c0_i32_0 = arith.constant 0 : i32
    %c0_i32_1 = arith.constant 0 : i32
    return %c0_i32, %c0_i32_0 : i32, i32
  }
  func.func @transform_3(%arg0: i32) -> (i32, i32) {
    %c0_i32 = arith.constant 0 : i32
    %c0_i32_0 = arith.constant 0 : i32
    %c0_i32_1 = arith.constant 0 : i32
    return %c0_i32, %c0_i32_0 : i32, i32
  }
  func.func @transform_4(%arg0: i32) -> (i32, i32) {
    %c0_i32 = arith.constant 0 : i32
    %c0_i32_0 = arith.constant 0 : i32
    %c0_i32_1 = arith.constant 0 : i32
    return %c0_i32, %c0_i32_0 : i32, i32
  }
  func.func @transform_5(%arg0: i32) -> (i32, i32) {
    %c0_i32 = arith.constant 0 : i32
    %c0_i32_0 = arith.constant 0 : i32
    %c0_i32_1 = arith.constant 0 : i32
    return %c0_i32, %c0_i32_0 : i32, i32
  }
}

module attributes {stable_mosaic.version = 11 : i64} {
  func.func @_conv_stage_kernel(%arg0: i32, %arg1: memref<2x512xf32, #tpu.memory_space<vmem>>, %arg2: memref<2x4xf32, #tpu.memory_space<vmem>>, %arg3: memref<512x128xf32, #tpu.memory_space<vmem>>, %arg4: memref<4x128xf32, #tpu.memory_space<vmem>>, %arg5: memref<1x128xf32, #tpu.memory_space<vmem>>, %arg6: memref<2x128xf32, #tpu.memory_space<vmem>>) attributes {dimension_semantics = [#tpu.dimension_semantics<parallel>], iteration_bounds = array<i64: 1>, scalar_prefetch = 0 : i64, scratch_operands = 0 : i64, tpu.core_type = #tpu.core_type<tc>, window_params = [{pipeline_mode = #tpu.pipeline_mode<synchronous>, transform_indices = @transform_0, window_bounds = array<i64: 2, 512>}, {pipeline_mode = #tpu.pipeline_mode<synchronous>, transform_indices = @transform_1, window_bounds = array<i64: 2, 4>}, {pipeline_mode = #tpu.pipeline_mode<synchronous>, transform_indices = @transform_2, window_bounds = array<i64: 512, 128>}, {pipeline_mode = #tpu.pipeline_mode<synchronous>, transform_indices = @transform_3, window_bounds = array<i64: 4, 128>}, {pipeline_mode = #tpu.pipeline_mode<synchronous>, transform_indices = @transform_4, window_bounds = array<i64: 1, 128>}, {pipeline_mode = #tpu.pipeline_mode<synchronous>, transform_indices = @transform_5, window_bounds = array<i64: 2, 128>}]} {
    %c0 = arith.constant 0 : index
    %c0_0 = arith.constant 0 : index
    %0 = vector.load %arg1[%c0, %c0_0] : memref<2x512xf32, #tpu.memory_space<vmem>>, vector<2x512xf32>
    %c0_1 = arith.constant 0 : index
    %c0_2 = arith.constant 0 : index
    %1 = vector.load %arg3[%c0_1, %c0_2] : memref<512x128xf32, #tpu.memory_space<vmem>>, vector<512x128xf32>
    %cst = arith.constant dense<0.000000e+00> : vector<2x128xf32>
    %2 = tpu.matmul %0, %1, %cst {dimension_numbers = #tpu.dot_dimension_numbers<[1], [0], [0], [1], [0, 0, 1, 1], [], []>} : vector<2x512xf32>, vector<512x128xf32>, vector<2x128xf32> -> vector<2x128xf32>
    %c0_3 = arith.constant 0 : index
    %c0_4 = arith.constant 0 : index
    %3 = vector.load %arg2[%c0_3, %c0_4] : memref<2x4xf32, #tpu.memory_space<vmem>>, vector<2x4xf32>
    %c0_5 = arith.constant 0 : index
    %c0_6 = arith.constant 0 : index
    %4 = vector.load %arg4[%c0_5, %c0_6] : memref<4x128xf32, #tpu.memory_space<vmem>>, vector<4x128xf32>
    %cst_7 = arith.constant dense<0.000000e+00> : vector<2x128xf32>
    %5 = tpu.matmul %3, %4, %cst_7 {dimension_numbers = #tpu.dot_dimension_numbers<[1], [0], [0], [1], [0, 0, 1, 1], [], []>} : vector<2x4xf32>, vector<4x128xf32>, vector<2x128xf32> -> vector<2x128xf32>
    %6 = arith.addf %2, %5 : vector<2x128xf32>
    %7 = arith.negf %6 : vector<2x128xf32>
    %8 = math.exp %7 : vector<2x128xf32>
    %cst_8 = arith.constant 1.000000e+00 : f32
    %9 = vector.broadcast %cst_8 : f32 to vector<2x128xf32>
    %10 = arith.addf %9, %8 : vector<2x128xf32>
    %11 = arith.divf %9, %10 : vector<2x128xf32>
    %c0_9 = arith.constant 0 : index
    %c0_10 = arith.constant 0 : index
    %12 = vector.load %arg5[%c0_9, %c0_10] : memref<1x128xf32, #tpu.memory_space<vmem>>, vector<1x128xf32>
    %13 = vector.broadcast %12 : vector<1x128xf32> to vector<2x128xf32>
    %14 = arith.addf %11, %13 : vector<2x128xf32>
    %c0_11 = arith.constant 0 : index
    %c0_12 = arith.constant 0 : index
    %15 = vector.load %arg6[%c0_11, %c0_12] : memref<2x128xf32, #tpu.memory_space<vmem>>, vector<2x128xf32>
    tpu.vector_store %arg6[%c0_11, %c0_12], %14 {strides = array<i32>} : memref<2x128xf32, #tpu.memory_space<vmem>>, vector<2x128xf32>,
    return
  }
  func.func @transform_0(%arg0: i32) -> (i32, i32) {
    %c0_i32 = arith.constant 0 : i32
    %c0_i32_0 = arith.constant 0 : i32
    %c0_i32_1 = arith.constant 0 : i32
    return %c0_i32, %c0_i32_0 : i32, i32
  }
  func.func @transform_1(%arg0: i32) -> (i32, i32) {
    %c0_i32 = arith.constant 0 : i32
    %c0_i32_0 = arith.constant 0 : i32
    %c0_i32_1 = arith.constant 0 : i32
    return %c0_i32, %c0_i32_0 : i32, i32
  }
  func.func @transform_2(%arg0: i32) -> (i32, i32) {
    %c0_i32 = arith.constant 0 : i32
    %c0_i32_0 = arith.constant 0 : i32
    %c0_i32_1 = arith.constant 0 : i32
    return %c0_i32, %c0_i32_0 : i32, i32
  }
  func.func @transform_3(%arg0: i32) -> (i32, i32) {
    %c0_i32 = arith.constant 0 : i32
    %c0_i32_0 = arith.constant 0 : i32
    %c0_i32_1 = arith.constant 0 : i32
    return %c0_i32, %c0_i32_0 : i32, i32
  }
  func.func @transform_4(%arg0: i32) -> (i32, i32) {
    %c0_i32 = arith.constant 0 : i32
    %c0_i32_0 = arith.constant 0 : i32
    %c0_i32_1 = arith.constant 0 : i32
    return %c0_i32, %c0_i32_0 : i32, i32
  }
  func.func @transform_5(%arg0: i32) -> (i32, i32) {
    %c0_i32 = arith.constant 0 : i32
    %c0_i32_0 = arith.constant 0 : i32
    %c0_i32_1 = arith.constant 0 : i32
    return %c0_i32, %c0_i32_0 : i32, i32
  }
}

module attributes {stable_mosaic.version = 11 : i64} {
  func.func @_conv_stage_kernel(%arg0: i32, %arg1: memref<8x2048xf32, #tpu.memory_space<vmem>>, %arg2: memref<8x16xf32, #tpu.memory_space<vmem>>, %arg3: memref<2048x128xf32, #tpu.memory_space<vmem>>, %arg4: memref<16x128xf32, #tpu.memory_space<vmem>>, %arg5: memref<1x128xf32, #tpu.memory_space<vmem>>, %arg6: memref<8x128xf32, #tpu.memory_space<vmem>>) attributes {dimension_semantics = [#tpu.dimension_semantics<parallel>], iteration_bounds = array<i64: 1>, scalar_prefetch = 0 : i64, scratch_operands = 0 : i64, tpu.core_type = #tpu.core_type<tc>, window_params = [{pipeline_mode = #tpu.pipeline_mode<synchronous>, transform_indices = @transform_0, window_bounds = array<i64: 8, 2048>}, {pipeline_mode = #tpu.pipeline_mode<synchronous>, transform_indices = @transform_1, window_bounds = array<i64: 8, 16>}, {pipeline_mode = #tpu.pipeline_mode<synchronous>, transform_indices = @transform_2, window_bounds = array<i64: 2048, 128>}, {pipeline_mode = #tpu.pipeline_mode<synchronous>, transform_indices = @transform_3, window_bounds = array<i64: 16, 128>}, {pipeline_mode = #tpu.pipeline_mode<synchronous>, transform_indices = @transform_4, window_bounds = array<i64: 1, 128>}, {pipeline_mode = #tpu.pipeline_mode<synchronous>, transform_indices = @transform_5, window_bounds = array<i64: 8, 128>}]} {
    %c0 = arith.constant 0 : index
    %c0_0 = arith.constant 0 : index
    %0 = vector.load %arg1[%c0, %c0_0] : memref<8x2048xf32, #tpu.memory_space<vmem>>, vector<8x2048xf32>
    %c0_1 = arith.constant 0 : index
    %c0_2 = arith.constant 0 : index
    %1 = vector.load %arg3[%c0_1, %c0_2] : memref<2048x128xf32, #tpu.memory_space<vmem>>, vector<2048x128xf32>
    %cst = arith.constant dense<0.000000e+00> : vector<8x128xf32>
    %2 = tpu.matmul %0, %1, %cst {dimension_numbers = #tpu.dot_dimension_numbers<[1], [0], [0], [1], [0, 0, 1, 1], [], []>} : vector<8x2048xf32>, vector<2048x128xf32>, vector<8x128xf32> -> vector<8x128xf32>
    %c0_3 = arith.constant 0 : index
    %c0_4 = arith.constant 0 : index
    %3 = vector.load %arg2[%c0_3, %c0_4] : memref<8x16xf32, #tpu.memory_space<vmem>>, vector<8x16xf32>
    %c0_5 = arith.constant 0 : index
    %c0_6 = arith.constant 0 : index
    %4 = vector.load %arg4[%c0_5, %c0_6] : memref<16x128xf32, #tpu.memory_space<vmem>>, vector<16x128xf32>
    %cst_7 = arith.constant dense<0.000000e+00> : vector<8x128xf32>
    %5 = tpu.matmul %3, %4, %cst_7 {dimension_numbers = #tpu.dot_dimension_numbers<[1], [0], [0], [1], [0, 0, 1, 1], [], []>} : vector<8x16xf32>, vector<16x128xf32>, vector<8x128xf32> -> vector<8x128xf32>
    %6 = arith.addf %2, %5 : vector<8x128xf32>
    %cst_8 = arith.constant 0.000000e+00 : f32
    %7 = vector.broadcast %cst_8 : f32 to vector<8x128xf32>
    %8 = arith.cmpf oge, %6, %7 : vector<8x128xf32>
    %cst_9 = arith.constant 2.000000e-01 : f32
    %9 = vector.broadcast %cst_9 : f32 to vector<8x128xf32>
    %10 = arith.mulf %9, %6 : vector<8x128xf32>
    %11 = arith.select %8, %6, %10 : vector<8x128xi1>, vector<8x128xf32>
    %c0_10 = arith.constant 0 : index
    %c0_11 = arith.constant 0 : index
    %12 = vector.load %arg5[%c0_10, %c0_11] : memref<1x128xf32, #tpu.memory_space<vmem>>, vector<1x128xf32>
    %13 = vector.broadcast %12 : vector<1x128xf32> to vector<8x128xf32>
    %14 = arith.addf %11, %13 : vector<8x128xf32>
    %c0_12 = arith.constant 0 : index
    %c0_13 = arith.constant 0 : index
    %15 = vector.load %arg6[%c0_12, %c0_13] : memref<8x128xf32, #tpu.memory_space<vmem>>, vector<8x128xf32>
    tpu.vector_store %arg6[%c0_12, %c0_13], %14 {strides = array<i32>} : memref<8x128xf32, #tpu.memory_space<vmem>>, vector<8x128xf32>,
    return
  }
  func.func @transform_0(%arg0: i32) -> (i32, i32) {
    %c0_i32 = arith.constant 0 : i32
    %c0_i32_0 = arith.constant 0 : i32
    %c0_i32_1 = arith.constant 0 : i32
    return %c0_i32, %c0_i32_0 : i32, i32
  }
  func.func @transform_1(%arg0: i32) -> (i32, i32) {
    %c0_i32 = arith.constant 0 : i32
    %c0_i32_0 = arith.constant 0 : i32
    %c0_i32_1 = arith.constant 0 : i32
    return %c0_i32, %c0_i32_0 : i32, i32
  }
  func.func @transform_2(%arg0: i32) -> (i32, i32) {
    %c0_i32 = arith.constant 0 : i32
    %c0_i32_0 = arith.constant 0 : i32
    %c0_i32_1 = arith.constant 0 : i32
    return %c0_i32, %c0_i32_0 : i32, i32
  }
  func.func @transform_3(%arg0: i32) -> (i32, i32) {
    %c0_i32 = arith.constant 0 : i32
    %c0_i32_0 = arith.constant 0 : i32
    %c0_i32_1 = arith.constant 0 : i32
    return %c0_i32, %c0_i32_0 : i32, i32
  }
  func.func @transform_4(%arg0: i32) -> (i32, i32) {
    %c0_i32 = arith.constant 0 : i32
    %c0_i32_0 = arith.constant 0 : i32
    %c0_i32_1 = arith.constant 0 : i32
    return %c0_i32, %c0_i32_0 : i32, i32
  }
  func.func @transform_5(%arg0: i32) -> (i32, i32) {
    %c0_i32 = arith.constant 0 : i32
    %c0_i32_0 = arith.constant 0 : i32
    %c0_i32_1 = arith.constant 0 : i32
    return %c0_i32, %c0_i32_0 : i32, i32
  }
}

</mosaic_0001>

<bundles_post_ra>
// kernel: forward.6
= control target key start
LH: loop header
LB: loop body
LE: loop exit
PB: predicated region body
PF: predicated region fallthrough
CT: control target
= control target key end

     0   :  { %vm77_vm0 = vcmask 1044480   ;;  %vm73_vm1 = vcmask 39936   ;;  %v572_v3 = vmov 0.0   ;;  %vm573_vm2 = vmmov 0   ;;  %s654_s1 = inlined_call_operand.vmem [shape: f32[5,1152], index: 1, kind: input, shape index: {}]   ;;  %s655_s0 = inlined_call_operand.vmem [shape: f32[2,5], index: 0, kind: input, shape index: {}]   ;;  %s656_s2 = inlined_call_operand.vmem [shape: f32[1,1152], index: 2, kind: input, shape index: {}]   ;;  %s657_s3 = inlined_call_operand.vmem [shape: f32[2,1152], index: 3, kind: output, shape index: {}]  }
   0x1   :  { %v16_v0 = vld [vmem:[%s654_s1 + $0x8] sm:$0x1f]  ;;  %v18_v1 = vld [vmem:[%s654_s1 + $0x18] sm:$0x1f]  ;;  %v15_v2 = vld [vmem:[%s654_s1] sm:$0x1f]  ;;  %169 = vmatprep.mubr.f32.mxu0 %v572_v3  ;;  %240 = vmatprep.mubr.f32.mxu1 %v572_v3  ;;  %v28_v11 = vlaneseq }
   0x2   :  { %529 = vmatprep.subr.msk.mxu0 %vm77_vm0, %v16_v0  ;;  %532 = vmatprep.subr.msk.mxu1 %vm77_vm0, %v18_v1  ;;  %v17_v4 = vld [vmem:[%s654_s1 + $0x10] sm:$0x1f]  ;;  %v14_v5 = vld [vmem:[%s655_s0] sm:$0x3]  ;;  %v20_v6 = vld [vmem:[%s654_s1 + $0x28] sm:$0x1f] }
   0x3   :  { %530 = vmatpush1.msk.msra.mxu0 %vm77_vm0, %v15_v2  ;;  %533 = vmatpush1.msk.msra.mxu1 %vm77_vm0, %v17_v4  ;;  %v22_v7 = vld [vmem:[%s654_s1 + $0x38] sm:$0x1f]  ;;  %v19_v8 = vld [vmem:[%s654_s1 + $0x20] sm:$0x1f]  ;;  %v21_v9 = vld [vmem:[%s654_s1 + $0x30] sm:$0x1f] }
   0x4   :  { %531 = vmatmul.mubr.msk.f32.vlgmr.msra.gmra.mxu0 %vm73_vm1, %v14_v5  ;;  %534 = vmatmul.mubr.msk.f32.vlgmr.msra.gmra.mxu1 %vm73_vm1, %v14_v5  ;;  %v23_v10 = vld [vmem:[%s654_s1 + $0x40] sm:$0x1f]  ;;  %v29_v12 = vshrl.u32 %v28_v11, 7  ;;  %v528_v44 = vld [vmem:[%s656_s2 + $0x8] ss:$0 sm:$0xff] }
   0x5   :  { %535 = vmatprep.subr.msk.mxu0 %vm77_vm0, %v20_v6  ;;  %538 = vmatprep.subr.msk.mxu1 %vm77_vm0, %v22_v7  ;;  %v24_v15 = vld [vmem:[%s656_s2] sm:$0xff]  ;;  %v574_v48 = vmov 1983009808  }
   0x6   :  { %536 = vmatpush1.msk.msra.mxu0 %vm77_vm0, %v19_v8  ;;  %539 = vmatpush1.msk.msra.mxu1 %vm77_vm0, %v21_v9  ;;  %v30_v13 = vsub.s32 0, %v29_v12  ;;  %v38_v14 = vsub.s32 2, %v29_v12  ;;  %v34_v16 = vsub.s32 1, %v29_v12  ;;  %v42_v17 = vsub.s32 3, %v29_v12 }
   0x7   :  { %311 = vmatprep.mubr.f32.mxu0 %v572_v3  ;;  %382 = vmatprep.mubr.f32.mxu1 %v572_v3  ;;  %v46_v20 = vsub.s32 4, %v29_v12  ;;  %v54_v21 = vsub.s32 6, %v29_v12  ;;  %v50_v22 = vsub.s32 5, %v29_v12  ;;  %v58_v25 = vsub.s32 7, %v29_v12 }
   0x8   :  { %537 = vmatmul.mubr.msk.f32.vlgmr.msra.gmra.mxu0 %vm73_vm1, %v14_v5  ;;  %540 = vmatmul.mubr.msk.f32.vlgmr.msra.gmra.mxu1 %vm73_vm1, %v14_v5  ;;  %v31_v18 = vrot.slane %v24_v15, %v30_v13  ;;  %v39_v19 = vrot.slane %v24_v15, %v38_v14  ;;  %v35_v23 = vrot.slane %v24_v15, %v34_v16  ;;  %v480_v49 = vunpack.c.l.s4 %v574_v48 }
   0x9   :  { %546 = vmatprep.subr.mxu0 %v572_v3  ;;  %548 = vmatprep.mubr.msk.f32.mxu0 %vm573_vm2, %v572_v3  ;;  %v43_v24 = vrot.slane %v24_v15, %v42_v17  ;;  %v47_v30 = vrot.slane %v24_v15, %v46_v20  ;;  %v55_v31 = vrot.slane %v24_v15, %v54_v21 }
   0xa   :  { %547 = vmatpush3.msk.msra.mxu0 %vm77_vm0, %v23_v10  ;;  %v51_v34 = vrot.slane %v24_v15, %v50_v22  ;;  %v59_v37 = vrot.slane %v24_v15, %v58_v25  ;;  %v481_v52 = vunpack.c.0.s8 %v480_v49 }
   0xc   :  { %549 = vmatmul.mubr.msk.f32.vlgmr.msra.gmra.mxu0 %vm73_vm1, %v14_v5  ;;  %v484_v55 = vsub.s32 %v481_v52, %v29_v12 }
  0xc4   :  { %v171_v26 = vpop.f32.mrf.mxu0  ;;  %v242_v27 = vpop.f32.mrf.mxu1 }
  0xc5   :  { %v172_v28 = vadd.f32 %v171_v26, %v31_v18  ;;  %v243_v29 = vadd.f32 %v242_v27, %v39_v19 }
  0xc6   :  { %v173_v32 = vpop.f32.mrf.mxu0  ;;  %v244_v33 = vpop.f32.mrf.mxu1 }
  0xc7   :  { %554 = vtanh.f32 %v172_v28  ;;  %v174_v35 = vadd.f32 %v173_v32, %v35_v23  ;;  %v245_v36 = vadd.f32 %v244_v33, %v43_v24 }
  0xc8   :  { %556 = vtanh.f32 %v243_v29  ;;  %v313_v38 = vpop.f32.mrf.mxu0  ;;  %v384_v39 = vpop.f32.mrf.mxu1 }
  0xc9   :  { %558 = vtanh.f32 %v174_v35  ;;  %v314_v40 = vadd.f32 %v313_v38, %v47_v30  ;;  %v385_v41 = vadd.f32 %v384_v39, %v55_v31 }
  0xca   :  { %560 = vtanh.f32 %v245_v36  ;;  %v315_v42 = vpop.f32.mrf.mxu0  ;;  %v386_v43 = vpop.f32.mrf.mxu1 }
  0xcb   :  { %562 = vtanh.f32 %v314_v40  ;;  %v316_v45 = vadd.f32 %v315_v42, %v51_v34  ;;  %v387_v46 = vadd.f32 %v386_v43, %v59_v37 }
  0xcc   :  { %564 = vtanh.f32 %v385_v41  ;;  %v455_v47 = vpop.f32.mrf.mxu0 }
  0xcd   :  { %566 = vtanh.f32 %v316_v45  ;;  %v456_v50 = vadd.f32 %v528_v44, %v455_v47 }
  0xce   :  { %568 = vtanh.f32 %v387_v46  ;;  %v550_v51 = vpop.f32.mrf.mxu0 }
  0xcf   :  { %570 = vtanh.f32 %v456_v50 }
  0xd4   :  { %v555_v53 = vpop.eup %554 }
  0xd5   :  { %v557_v54 = vpop.eup %556 }
  0xd6   :  { %v559_v56 = vpop.eup %558 }
  0xd7   :  { %v561_v57 = vpop.eup %560  ;;  %v477_v58 = vcombine.low %v555_v53, %v559_v56 }
  0xd8   :  { %v563_v59 = vpop.eup %562  ;;  %v478_v60 = vcombine.low %v557_v54, %v561_v57 }
  0xd9   :  { %v565_v61 = vpop.eup %564  ;;  %v485_v62 = vrot.slane %v477_v58, %v484_v55 }
  0xda   :  { %v567_v63 = vpop.eup %566  ;;  %v492_v0 = vrot.slane %v478_v60, %v484_v55 }
  0xdb   :  { %v569_v1 = vpop.eup %568  ;;  %v494_v2 = vcombine.low %v563_v59, %v567_v63 }
  0xdc   :  { %v571_v3 = vpop.eup %570  ;;  %v493_v4 = vcombine.low %v485_v62, %v492_v0  ;;  %v495_v5 = vcombine.low %v565_v61, %v569_v1 }
  0xdd   :  { %v502_v6 = vrot.slane %v494_v2, %v484_v55  ;;  %543 = vst.sshfl [vmem:[%s657_s3 + $0x10] sm:$0x3 pattern:$0x76325410] %v571_v3 }
  0xde   :  { %v509_v7 = vrot.slane %v495_v5, %v484_v55  ;;  %521 = vst [vmem:[%s657_s3] sm:$0xff] %v493_v4 }
  0xe0   :  { %v510_v8 = vcombine.low %v502_v6, %v509_v7 }
  0xe2   :  { %522 = vst [vmem:[%s657_s3 + $0x8] sm:$0xff] %v510_v8 }

// kernel: forward.7
= control target key start
LH: loop header
LB: loop body
LE: loop exit
PB: predicated region body
PF: predicated region fallthrough
CT: control target
= control target key end

     0   :  { %v1798_v0 = vmov 0.0   ;;  %vm122_vm0 = vcmask 130048   ;;  %vm1799_vm1 = vmmov 0   ;;  %s2635_s3 = inlined_call_operand.vmem [shape: f32[16,128], index: 3, kind: input, shape index: {}]   ;;  %s2636_s2 = inlined_call_operand.vmem [shape: f32[16,128], index: 2, kind: input, shape index: {}]   ;;  %s2637_s1 = inlined_call_operand.vmem [shape: f32[392,16], index: 1, kind: input, shape index: {}]   ;;  %s2638_s0 = inlined_call_operand.vmem [shape: f32[392,16], index: 0, kind: input, shape index: {}]   ;;  %s2639_s4 = inlined_call_operand.vmem [shape: f32[1,128], index: 4, kind: input, shape index: {}]   ;;  %s2640_s5 = inlined_call_operand.vmem [shape: f32[392,128], index: 5, kind: output, shape index: {}]  }
   0x1   :  { %1494 = vmatprep.subr.mxu0 %v1798_v0  ;;  %1645 = vmatprep.subr.mxu1 %v1798_v0  ;;  %v121_v1 = vld [vmem:[%s2635_s3 + $0x8] sm:$0xff]  ;;  %v120_v3 = vld [vmem:[%s2635_s3] sm:$0xff]  ;;  %v73_v9 = vld [vmem:[%s2637_s1 + $0x10] sm:$0xff] }
   0x2   :  { %v70_v2 = vld [vmem:[%s2636_s2 + $0x8] sm:$0xff]  ;;  %1495 = vmatpush3.msra.mxu0 %v121_v1  ;;  %v69_v4 = vld [vmem:[%s2636_s2] sm:$0xff]  ;;  %1498 = vmatprep.mubr.msk.f32.mxu0 %vm1799_vm1, %v1798_v0  ;;  %v22_v10 = vld [vmem:[%s2638_s0 + $0x10] sm:$0xff] }
   0x3   :  { %1646 = vmatpush3.msra.mxu1 %v70_v2  ;;  %1496 = vmatprep.subr.mxu0 %v1798_v0  ;;  %v71_v5 = vld [vmem:[%s2637_s1] sm:$0xff]  ;;  %v72_v7 = vld [vmem:[%s2637_s1 + $0x8] sm:$0xff]  ;;  %v74_v11 = vld [vmem:[%s2637_s1 + $0x18] sm:$0xff] }
   0x4   :  { %1647 = vmatprep.subr.mxu1 %v1798_v0  ;;  %v20_v6 = vld [vmem:[%s2638_s0] sm:$0xff]  ;;  %1497 = vmatpush3.msra.mxu0 %v120_v3  ;;  %v21_v8 = vld [vmem:[%s2638_s0 + $0x8] sm:$0xff]  ;;  %v23_v12 = vld [vmem:[%s2638_s0 + $0x18] sm:$0xff] }
   0x5   :  { %1648 = vmatpush3.msra.mxu1 %v69_v4  ;;  %1649 = vmatprep.mubr.msk.f32.mxu1 %vm1799_vm1, %v1798_v0  ;;  %v75_v13 = vld [vmem:[%s2637_s1 + $0x20] sm:$0xff]  ;;  %v76_v15 = vld [vmem:[%s2637_s1 + $0x28] sm:$0xff]  ;;  %v77_v17 = vld [vmem:[%s2637_s1 + $0x30] sm:$0xff] }
   0x6   :  { %1499 = vmatmul.mubr.msk.f32.vlgmr.msra.gmra.mxu0 %vm122_vm0, %v71_v5  ;;  %1650 = vmatmul.mubr.msk.f32.vlgmr.msra.gmra.mxu1 %vm122_vm0, %v20_v6  ;;  %v24_v14 = vld [vmem:[%s2638_s0 + $0x20] sm:$0xff]  ;;  %v25_v16 = vld [vmem:[%s2638_s0 + $0x28] sm:$0xff]  ;;  %v26_v18 = vld [vmem:[%s2638_s0 + $0x30] sm:$0xff] }
   0x7   :  { %1501 = vmatprep.mubr.msk.f32.mxu0 %vm1799_vm1, %v1798_v0  ;;  %1652 = vmatprep.mubr.msk.f32.mxu1 %vm1799_vm1, %v1798_v0  ;;  %v78_v19 = vld [vmem:[%s2637_s1 + $0x38] sm:$0xff]  ;;  %v79_v21 = vld [vmem:[%s2637_s1 + $0x40] sm:$0xff]  ;;  %v80_v23 = vld [vmem:[%s2637_s1 + $0x48] sm:$0xff] }
   0x8   :  { %v27_v20 = vld [vmem:[%s2638_s0 + $0x38] sm:$0xff]  ;;  %v28_v22 = vld [vmem:[%s2638_s0 + $0x40] sm:$0xff]  ;;  %v29_v24 = vld [vmem:[%s2638_s0 + $0x48] sm:$0xff] }
   0x9   :  { %v81_v25 = vld [vmem:[%s2637_s1 + $0x50] sm:$0xff]  ;;  %v82_v27 = vld [vmem:[%s2637_s1 + $0x58] sm:$0xff]  ;;  %v83_v29 = vld [vmem:[%s2637_s1 + $0x60] sm:$0xff] }
   0xa   :  { %1502 = vmatmul.mubr.msk.f32.gmra.mxu0 %vm122_vm0, %v72_v7  ;;  %1653 = vmatmul.mubr.msk.f32.gmra.mxu1 %vm122_vm0, %v21_v8  ;;  %v30_v26 = vld [vmem:[%s2638_s0 + $0x50] sm:$0xff]  ;;  %v31_v28 = vld [vmem:[%s2638_s0 + $0x58] sm:$0xff]  ;;  %v32_v30 = vld [vmem:[%s2638_s0 + $0x60] sm:$0xff] }
   0xb   :  { %1504 = vmatprep.mubr.msk.f32.mxu0 %vm1799_vm1, %v1798_v0  ;;  %1655 = vmatprep.mubr.msk.f32.mxu1 %vm1799_vm1, %v1798_v0  ;;  %v84_v31 = vld [vmem:[%s2637_s1 + $0x68] sm:$0xff]  ;;  %v85_v33 = vld [vmem:[%s2637_s1 + $0x70] sm:$0xff]  ;;  %v86_v35 = vld [vmem:[%s2637_s1 + $0x78] sm:$0xff] }
   0xc   :  { %v33_v32 = vld [vmem:[%s2638_s0 + $0x68] sm:$0xff]  ;;  %v34_v34 = vld [vmem:[%s2638_s0 + $0x70] sm:$0xff]  ;;  %v35_v36 = vld [vmem:[%s2638_s0 + $0x78] sm:$0xff] }
   0xd   :  { %v87_v37 = vld [vmem:[%s2637_s1 + $0x80] sm:$0xff]  ;;  %v88_v39 = vld [vmem:[%s2637_s1 + $0x88] sm:$0xff]  ;;  %v89_v41 = vld [vmem:[%s2637_s1 + $0x90] sm:$0xff] }
   0xe   :  { %1505 = vmatmul.mubr.msk.f32.gmra.mxu0 %vm122_vm0, %v73_v9  ;;  %1656 = vmatmul.mubr.msk.f32.gmra.mxu1 %vm122_vm0, %v22_v10  ;;  %v36_v38 = vld [vmem:[%s2638_s0 + $0x80] sm:$0xff]  ;;  %v37_v40 = vld [vmem:[%s2638_s0 + $0x88] sm:$0xff]  ;;  %v38_v42 = vld [vmem:[%s2638_s0 + $0x90] sm:$0xff] }
   0xf   :  { %1507 = vmatprep.mubr.msk.f32.mxu0 %vm1799_vm1, %v1798_v0  ;;  %1658 = vmatprep.mubr.msk.f32.mxu1 %vm1799_vm1, %v1798_v0  ;;  %v90_v43 = vld [vmem:[%s2637_s1 + $0x98] sm:$0xff]  ;;  %v91_v45 = vld [vmem:[%s2637_s1 + $0xa0] sm:$0xff]  ;;  %v92_v47 = vld [vmem:[%s2637_s1 + $0xa8] sm:$0xff] }
  0x10   :  { %v39_v44 = vld [vmem:[%s2638_s0 + $0x98] sm:$0xff]  ;;  %v40_v46 = vld [vmem:[%s2638_s0 + $0xa0] sm:$0xff]  ;;  %v41_v48 = vld [vmem:[%s2638_s0 + $0xa8] sm:$0xff] }
  0x11   :  { %v93_v49 = vld [vmem:[%s2637_s1 + $0xb0] sm:$0xff]  ;;  %v94_v51 = vld [vmem:[%s2637_s1 + $0xb8] sm:$0xff]  ;;  %v95_v53 = vld [vmem:[%s2637_s1 + $0xc0] sm:$0xff] }
  0x12   :  { %1508 = vmatmul.mubr.msk.f32.gmra.mxu0 %vm122_vm0, %v74_v11  ;;  %1659 = vmatmul.mubr.msk.f32.gmra.mxu1 %vm122_vm0, %v23_v12  ;;  %v42_v50 = vld [vmem:[%s2638_s0 + $0xb0] sm:$0xff]  ;;  %v43_v52 = vld [vmem:[%s2638_s0 + $0xb8] sm:$0xff]  ;;  %v44_v54 = vld [vmem:[%s2638_s0 + $0xc0] sm:$0xff] }
  0x13   :  { %1510 = vmatprep.mubr.msk.f32.mxu0 %vm1799_vm1, %v1798_v0  ;;  %1661 = vmatprep.mubr.msk.f32.mxu1 %vm1799_vm1, %v1798_v0  ;;  %v96_v55 = vld [vmem:[%s2637_s1 + $0xc8] sm:$0xff]  ;;  %v97_v57 = vld [vmem:[%s2637_s1 + $0xd0] sm:$0xff]  ;;  %v98_v59 = vld [vmem:[%s2637_s1 + $0xd8] sm:$0xff] }
  0x14   :  { %v45_v56 = vld [vmem:[%s2638_s0 + $0xc8] sm:$0xff]  ;;  %v46_v58 = vld [vmem:[%s2638_s0 + $0xd0] sm:$0xff]  ;;  %v47_v60 = vld [vmem:[%s2638_s0 + $0xd8] sm:$0xff] }
  0x15   :  { %v99_v61 = vld [vmem:[%s2637_s1 + $0xe0] sm:$0xff]  ;;  %v100_v63 = vld [vmem:[%s2637_s1 + $0xe8] sm:$0xff]  ;;  %v101_v2 = vld [vmem:[%s2637_s1 + $0xf0] sm:$0xff] }
  0x16   :  { %1511 = vmatmul.mubr.msk.f32.gmra.mxu0 %vm122_vm0, %v75_v13  ;;  %1662 = vmatmul.mubr.msk.f32.gmra.mxu1 %vm122_vm0, %v24_v14  ;;  %v48_v62 = vld [vmem:[%s2638_s0 + $0xe0] sm:$0xff]  ;;  %v49_v1 = vld [vmem:[%s2638_s0 + $0xe8] sm:$0xff]  ;;  %v50_v3 = vld [vmem:[%s2638_s0 + $0xf0] sm:$0xff] }
  0x17   :  { %1513 = vmatprep.mubr.msk.f32.mxu0 %vm1799_vm1, %v1798_v0  ;;  %1664 = vmatprep.mubr.msk.f32.mxu1 %vm1799_vm1, %v1798_v0  ;;  %v102_v4 = vld [vmem:[%s2637_s1 + $0xf8] sm:$0xff]  ;;  %v103_v6 = vld [vmem:[%s2637_s1 + $0x100] sm:$0xff]  ;;  %v104_v8 = vld [vmem:[%s2637_s1 + $0x108] sm:$0xff] }
  0x18   :  { %v51_v5 = vld [vmem:[%s2638_s0 + $0xf8] sm:$0xff]  ;;  %v52_v7 = vld [vmem:[%s2638_s0 + $0x100] sm:$0xff]  ;;  %v53_v9 = vld [vmem:[%s2638_s0 + $0x108] sm:$0xff] }
  0x19   :  { %v105_v10 = vld [vmem:[%s2637_s1 + $0x110] sm:$0xff]  ;;  %v106_v12 = vld [vmem:[%s2637_s1 + $0x118] sm:$0xff]  ;;  %v107_v14 = vld [vmem:[%s2637_s1 + $0x120] sm:$0xff] }
  0x1a   :  { %1514 = vmatmul.mubr.msk.f32.gmra.mxu0 %vm122_vm0, %v76_v15  ;;  %1665 = vmatmul.mubr.msk.f32.gmra.mxu1 %vm122_vm0, %v25_v16  ;;  %v54_v11 = vld [vmem:[%s2638_s0 + $0x110] sm:$0xff]  ;;  %v55_v13 = vld [vmem:[%s2638_s0 + $0x118] sm:$0xff]  ;;  %v56_v15 = vld [vmem:[%s2638_s0 + $0x120] sm:$0xff] }
  0x1b   :  { %1516 = vmatprep.mubr.msk.f32.mxu0 %vm1799_vm1, %v1798_v0  ;;  %1667 = vmatprep.mubr.msk.f32.mxu1 %vm1799_vm1, %v1798_v0  ;;  %v108_v16 = vld [vmem:[%s2637_s1 + $0x128] sm:$0xff] }
  0x1e   :  { %1517 = vmatmul.mubr.msk.f32.gmra.mxu0 %vm122_vm0, %v77_v17  ;;  %1668 = vmatmul.mubr.msk.f32.gmra.mxu1 %vm122_vm0, %v26_v18  ;;  %v57_v17 = vld [vmem:[%s2638_s0 + $0x128] sm:$0xff]  ;;  %v109_v18 = vld [vmem:[%s2637_s1 + $0x130] sm:$0xff] }
  0x1f   :  { %1519 = vmatprep.mubr.msk.f32.mxu0 %vm1799_vm1, %v1798_v0  ;;  %1670 = vmatprep.mubr.msk.f32.mxu1 %vm1799_vm1, %v1798_v0 }
  0x22   :  { %1520 = vmatmul.mubr.msk.f32.gmra.mxu0 %vm122_vm0, %v78_v19  ;;  %1671 = vmatmul.mubr.msk.f32.gmra.mxu1 %vm122_vm0, %v27_v20  ;;  %v58_v19 = vld [vmem:[%s2638_s0 + $0x130] sm:$0xff]  ;;  %v110_v20 = vld [vmem:[%s2637_s1 + $0x138] sm:$0xff] }
  0x23   :  { %1522 = vmatprep.mubr.msk.f32.mxu0 %vm1799_vm1, %v1798_v0  ;;  %1673 = vmatprep.mubr.msk.f32.mxu1 %vm1799_vm1, %v1798_v0 }
  0x26   :  { %1523 = vmatmul.mubr.msk.f32.gmra.mxu0 %vm122_vm0, %v79_v21  ;;  %1674 = vmatmul.mubr.msk.f32.gmra.mxu1 %vm122_vm0, %v28_v22  ;;  %v59_v21 = vld [vmem:[%s2638_s0 + $0x138] sm:$0xff]  ;;  %v111_v22 = vld [vmem:[%s2637_s1 + $0x140] sm:$0xff] }
  0x27   :  { %1525 = vmatprep.mubr.msk.f32.mxu0 %vm1799_vm1, %v1798_v0  ;;  %1676 = vmatprep.mubr.msk.f32.mxu1 %vm1799_vm1, %v1798_v0 }
  0x2a   :  { %1526 = vmatmul.mubr.msk.f32.gmra.mxu0 %vm122_vm0, %v80_v23  ;;  %1677 = vmatmul.mubr.msk.f32.gmra.mxu1 %vm122_vm0, %v29_v24  ;;  %v60_v23 = vld [vmem:[%s2638_s0 + $0x140] sm:$0xff]  ;;  %v112_v24 = vld [vmem:[%s2637_s1 + $0x148] sm:$0xff] }
  0x2b   :  { %1528 = vmatprep.mubr.msk.f32.mxu0 %vm1799_vm1, %v1798_v0  ;;  %1679 = vmatprep.mubr.msk.f32.mxu1 %vm1799_vm1, %v1798_v0 }
  0x2e   :  { %1529 = vmatmul.mubr.msk.f32.gmra.mxu0 %vm122_vm0, %v81_v25  ;;  %1680 = vmatmul.mubr.msk.f32.gmra.mxu1 %vm122_vm0, %v30_v26  ;;  %v61_v25 = vld [vmem:[%s2638_s0 + $0x148] sm:$0xff]  ;;  %v113_v26 = vld [vmem:[%s2637_s1 + $0x150] sm:$0xff] }
  0x2f   :  { %1531 = vmatprep.mubr.msk.f32.mxu0 %vm1799_vm1, %v1798_v0  ;;  %1682 = vmatprep.mubr.msk.f32.mxu1 %vm1799_vm1, %v1798_v0 }
  0x32   :  { %1532 = vmatmul.mubr.msk.f32.gmra.mxu0 %vm122_vm0, %v82_v27  ;;  %1683 = vmatmul.mubr.msk.f32.gmra.mxu1 %vm122_vm0, %v31_v28  ;;  %v62_v27 = vld [vmem:[%s2638_s0 + $0x150] sm:$0xff]  ;;  %v114_v28 = vld [vmem:[%s2637_s1 + $0x158] sm:$0xff] }
  0x33   :  { %1534 = vmatprep.mubr.msk.f32.mxu0 %vm1799_vm1, %v1798_v0  ;;  %1685 = vmatprep.mubr.msk.f32.mxu1 %vm1799_vm1, %v1798_v0 }
  0x36   :  { %1535 = vmatmul.mubr.msk.f32.gmra.mxu0 %vm122_vm0, %v83_v29  ;;  %1686 = vmatmul.mubr.msk.f32.gmra.mxu1 %vm122_vm0, %v32_v30  ;;  %v63_v29 = vld [vmem:[%s2638_s0 + $0x158] sm:$0xff]  ;;  %v115_v30 = vld [vmem:[%s2637_s1 + $0x160] sm:$0xff] }
  0x37   :  { %1537 = vmatprep.mubr.msk.f32.mxu0 %vm1799_vm1, %v1798_v0  ;;  %1688 = vmatprep.mubr.msk.f32.mxu1 %vm1799_vm1, %v1798_v0 }
  0x3a   :  { %1538 = vmatmul.mubr.msk.f32.gmra.mxu0 %vm122_vm0, %v84_v31  ;;  %1689 = vmatmul.mubr.msk.f32.gmra.mxu1 %vm122_vm0, %v33_v32  ;;  %v64_v31 = vld [vmem:[%s2638_s0 + $0x160] sm:$0xff]  ;;  %v116_v32 = vld [vmem:[%s2637_s1 + $0x168] sm:$0xff] }
  0x3b   :  { %1540 = vmatprep.mubr.msk.f32.mxu0 %vm1799_vm1, %v1798_v0  ;;  %1691 = vmatprep.mubr.msk.f32.mxu1 %vm1799_vm1, %v1798_v0 }
  0x3e   :  { %1541 = vmatmul.mubr.msk.f32.gmra.mxu0 %vm122_vm0, %v85_v33  ;;  %1692 = vmatmul.mubr.msk.f32.gmra.mxu1 %vm122_vm0, %v34_v34  ;;  %v65_v33 = vld [vmem:[%s2638_s0 + $0x168] sm:$0xff]  ;;  %v117_v34 = vld [vmem:[%s2637_s1 + $0x170] sm:$0xff] }
  0x3f   :  { %1543 = vmatprep.mubr.msk.f32.mxu0 %vm1799_vm1, %v1798_v0  ;;  %1694 = vmatprep.mubr.msk.f32.mxu1 %vm1799_vm1, %v1798_v0 }
  0x42   :  { %1544 = vmatmul.mubr.msk.f32.gmra.mxu0 %vm122_vm0, %v86_v35  ;;  %1695 = vmatmul.mubr.msk.f32.gmra.mxu1 %vm122_vm0, %v35_v36  ;;  %v66_v35 = vld [vmem:[%s2638_s0 + $0x170] sm:$0xff]  ;;  %v118_v36 = vld [vmem:[%s2637_s1 + $0x178] sm:$0xff] }
  0x43   :  { %1546 = vmatprep.mubr.msk.f32.mxu0 %vm1799_vm1, %v1798_v0  ;;  %1697 = vmatprep.mubr.msk.f32.mxu1 %vm1799_vm1, %v1798_v0 }
  0x46   :  { %1547 = vmatmul.mubr.msk.f32.gmra.mxu0 %vm122_vm0, %v87_v37  ;;  %1698 = vmatmul.mubr.msk.f32.gmra.mxu1 %vm122_vm0, %v36_v38  ;;  %v67_v37 = vld [vmem:[%s2638_s0 + $0x178] sm:$0xff]  ;;  %v119_v38 = vld [vmem:[%s2637_s1 + $0x180] sm:$0xff] }
  0x47   :  { %1549 = vmatprep.mubr.msk.f32.mxu0 %vm1799_vm1, %v1798_v0  ;;  %1700 = vmatprep.mubr.msk.f32.mxu1 %vm1799_vm1, %v1798_v0 }
  0x4a   :  { %1550 = vmatmul.mubr.msk.f32.gmra.mxu0 %vm122_vm0, %v88_v39  ;;  %1701 = vmatmul.mubr.msk.f32.gmra.mxu1 %vm122_vm0, %v37_v40  ;;  %v68_v39 = vld [vmem:[%s2638_s0 + $0x180] sm:$0xff] }
  0x4b   :  { %1552 = vmatprep.mubr.msk.f32.mxu0 %vm1799_vm1, %v1798_v0  ;;  %1703 = vmatprep.mubr.msk.f32.mxu1 %vm1799_vm1, %v1798_v0 }
  0x4e   :  { %1553 = vmatmul.mubr.msk.f32.gmra.mxu0 %vm122_vm0, %v89_v41  ;;  %1704 = vmatmul.mubr.msk.f32.gmra.mxu1 %vm122_vm0, %v38_v42 }
  0x4f   :  { %1555 = vmatprep.mubr.msk.f32.mxu0 %vm1799_vm1, %v1798_v0  ;;  %1706 = vmatprep.mubr.msk.f32.mxu1 %vm1799_vm1, %v1798_v0 }
  0x52   :  { %1556 = vmatmul.mubr.msk.f32.gmra.mxu0 %vm122_vm0, %v90_v43  ;;  %1707 = vmatmul.mubr.msk.f32.gmra.mxu1 %vm122_vm0, %v39_v44 }
  0x53   :  { %1558 = vmatprep.mubr.msk.f32.mxu0 %vm1799_vm1, %v1798_v0  ;;  %1709 = vmatprep.mubr.msk.f32.mxu1 %vm1799_vm1, %v1798_v0 }
  0x56   :  { %1559 = vmatmul.mubr.msk.f32.gmra.mxu0 %vm122_vm0, %v91_v45  ;;  %1710 = vmatmul.mubr.msk.f32.gmra.mxu1 %vm122_vm0, %v40_v46 }
  0x57   :  { %1561 = vmatprep.mubr.msk.f32.mxu0 %vm1799_vm1, %v1798_v0  ;;  %1712 = vmatprep.mubr.msk.f32.mxu1 %vm1799_vm1, %v1798_v0 }
  0x5a   :  { %1562 = vmatmul.mubr.msk.f32.gmra.mxu0 %vm122_vm0, %v92_v47  ;;  %1713 = vmatmul.mubr.msk.f32.gmra.mxu1 %vm122_vm0, %v41_v48 }
  0x5b   :  { %1564 = vmatprep.mubr.msk.f32.mxu0 %vm1799_vm1, %v1798_v0  ;;  %1715 = vmatprep.mubr.msk.f32.mxu1 %vm1799_vm1, %v1798_v0 }
  0x5e   :  { %1565 = vmatmul.mubr.msk.f32.gmra.mxu0 %vm122_vm0, %v93_v49  ;;  %1716 = vmatmul.mubr.msk.f32.gmra.mxu1 %vm122_vm0, %v42_v50 }
  0x5f   :  { %1567 = vmatprep.mubr.msk.f32.mxu0 %vm1799_vm1, %v1798_v0  ;;  %1718 = vmatprep.mubr.msk.f32.mxu1 %vm1799_vm1, %v1798_v0 }
  0x62   :  { %1568 = vmatmul.mubr.msk.f32.gmra.mxu0 %vm122_vm0, %v94_v51  ;;  %1719 = vmatmul.mubr.msk.f32.gmra.mxu1 %vm122_vm0, %v43_v52 }
  0x63   :  { %1570 = vmatprep.mubr.msk.f32.mxu0 %vm1799_vm1, %v1798_v0  ;;  %1721 = vmatprep.mubr.msk.f32.mxu1 %vm1799_vm1, %v1798_v0 }
  0x66   :  { %1571 = vmatmul.mubr.msk.f32.gmra.mxu0 %vm122_vm0, %v95_v53  ;;  %1722 = vmatmul.mubr.msk.f32.gmra.mxu1 %vm122_vm0, %v44_v54 }
  0x67   :  { %1573 = vmatprep.mubr.msk.f32.mxu0 %vm1799_vm1, %v1798_v0  ;;  %1724 = vmatprep.mubr.msk.f32.mxu1 %vm1799_vm1, %v1798_v0 }
  0x6a   :  { %1574 = vmatmul.mubr.msk.f32.gmra.mxu0 %vm122_vm0, %v96_v55  ;;  %1725 = vmatmul.mubr.msk.f32.gmra.mxu1 %vm122_vm0, %v45_v56 }
  0x6b   :  { %1576 = vmatprep.mubr.msk.f32.mxu0 %vm1799_vm1, %v1798_v0  ;;  %1727 = vmatprep.mubr.msk.f32.mxu1 %vm1799_vm1, %v1798_v0 }
  0x6e   :  { %1577 = vmatmul.mubr.msk.f32.gmra.mxu0 %vm122_vm0, %v97_v57  ;;  %1728 = vmatmul.mubr.msk.f32.gmra.mxu1 %vm122_vm0, %v46_v58 }
  0x6f   :  { %1579 = vmatprep.mubr.msk.f32.mxu0 %vm1799_vm1, %v1798_v0  ;;  %1730 = vmatprep.mubr.msk.f32.mxu1 %vm1799_vm1, %v1798_v0 }
  0x72   :  { %1580 = vmatmul.mubr.msk.f32.gmra.mxu0 %vm122_vm0, %v98_v59  ;;  %1731 = vmatmul.mubr.msk.f32.gmra.mxu1 %vm122_vm0, %v47_v60 }
  0x73   :  { %1582 = vmatprep.mubr.msk.f32.mxu0 %vm1799_vm1, %v1798_v0  ;;  %1733 = vmatprep.mubr.msk.f32.mxu1 %vm1799_vm1, %v1798_v0 }
  0x76   :  { %1583 = vmatmul.mubr.msk.f32.gmra.mxu0 %vm122_vm0, %v99_v61  ;;  %1734 = vmatmul.mubr.msk.f32.gmra.mxu1 %vm122_vm0, %v48_v62 }
  0x77   :  { %1585 = vmatprep.mubr.msk.f32.mxu0 %vm1799_vm1, %v1798_v0  ;;  %1736 = vmatprep.mubr.msk.f32.mxu1 %vm1799_vm1, %v1798_v0 }
  0x7a   :  { %1586 = vmatmul.mubr.msk.f32.gmra.mxu0 %vm122_vm0, %v100_v63  ;;  %1737 = vmatmul.mubr.msk.f32.gmra.mxu1 %vm122_vm0, %v49_v1 }
  0x7b   :  { %1588 = vmatprep.mubr.msk.f32.mxu0 %vm1799_vm1, %v1798_v0  ;;  %1739 = vmatprep.mubr.msk.f32.mxu1 %vm1799_vm1, %v1798_v0 }
  0x7e   :  { %1589 = vmatmul.mubr.msk.f32.gmra.mxu0 %vm122_vm0, %v101_v2  ;;  %1740 = vmatmul.mubr.msk.f32.gmra.mxu1 %vm122_vm0, %v50_v3 }
  0x7f   :  { %1591 = vmatprep.mubr.msk.f32.mxu0 %vm1799_vm1, %v1798_v0  ;;  %1742 = vmatprep.mubr.msk.f32.mxu1 %vm1799_vm1, %v1798_v0 }
  0x82   :  { %1592 = vmatmul.mubr.msk.f32.gmra.mxu0 %vm122_vm0, %v102_v4  ;;  %1743 = vmatmul.mubr.msk.f32.gmra.mxu1 %vm122_vm0, %v51_v5 }
  0x83   :  { %1594 = vmatprep.mubr.msk.f32.mxu0 %vm1799_vm1, %v1798_v0  ;;  %1745 = vmatprep.mubr.msk.f32.mxu1 %vm1799_vm1, %v1798_v0 }
  0x86   :  { %1595 = vmatmul.mubr.msk.f32.gmra.mxu0 %vm122_vm0, %v103_v6  ;;  %1746 = vmatmul.mubr.msk.f32.gmra.mxu1 %vm122_vm0, %v52_v7 }
  0x87   :  { %1597 = vmatprep.mubr.msk.f32.mxu0 %vm1799_vm1, %v1798_v0  ;;  %1748 = vmatprep.mubr.msk.f32.mxu1 %vm1799_vm1, %v1798_v0 }
  0x8a   :  { %1598 = vmatmul.mubr.msk.f32.gmra.mxu0 %vm122_vm0, %v104_v8  ;;  %1749 = vmatmul.mubr.msk.f32.gmra.mxu1 %vm122_vm0, %v53_v9 }
  0x8b   :  { %1600 = vmatprep.mubr.msk.f32.mxu0 %vm1799_vm1, %v1798_v0  ;;  %1751 = vmatprep.mubr.msk.f32.mxu1 %vm1799_vm1, %v1798_v0 }
  0x8e   :  { %1601 = vmatmul.mubr.msk.f32.gmra.mxu0 %vm122_vm0, %v105_v10  ;;  %1752 = vmatmul.mubr.msk.f32.gmra.mxu1 %vm122_vm0, %v54_v11 }
  0x8f   :  { %1603 = vmatprep.mubr.msk.f32.mxu0 %vm1799_vm1, %v1798_v0  ;;  %1754 = vmatprep.mubr.msk.f32.mxu1 %vm1799_vm1, %v1798_v0 }
  0x92   :  { %1604 = vmatmul.mubr.msk.f32.gmra.mxu0 %vm122_vm0, %v106_v12  ;;  %1755 = vmatmul.mubr.msk.f32.gmra.mxu1 %vm122_vm0, %v55_v13 }
  0x93   :  { %1606 = vmatprep.mubr.msk.f32.mxu0 %vm1799_vm1, %v1798_v0  ;;  %1757 = vmatprep.mubr.msk.f32.mxu1 %vm1799_vm1, %v1798_v0 }
  0x96   :  { %1607 = vmatmul.mubr.msk.f32.gmra.mxu0 %vm122_vm0, %v107_v14  ;;  %1758 = vmatmul.mubr.msk.f32.gmra.mxu1 %vm122_vm0, %v56_v15 }
  0x97   :  { %1609 = vmatprep.mubr.msk.f32.mxu0 %vm1799_vm1, %v1798_v0  ;;  %1760 = vmatprep.mubr.msk.f32.mxu1 %vm1799_vm1, %v1798_v0 }
  0x9a   :  { %1610 = vmatmul.mubr.msk.f32.gmra.mxu0 %vm122_vm0, %v108_v16  ;;  %1761 = vmatmul.mubr.msk.f32.gmra.mxu1 %vm122_vm0, %v57_v17 }
  0x9b   :  { %1612 = vmatprep.mubr.msk.f32.mxu0 %vm1799_vm1, %v1798_v0  ;;  %1763 = vmatprep.mubr.msk.f32.mxu1 %vm1799_vm1, %v1798_v0 }
  0x9e   :  { %1613 = vmatmul.mubr.msk.f32.gmra.mxu0 %vm122_vm0, %v109_v18  ;;  %1764 = vmatmul.mubr.msk.f32.gmra.mxu1 %vm122_vm0, %v58_v19 }
  0x9f   :  { %1615 = vmatprep.mubr.msk.f32.mxu0 %vm1799_vm1, %v1798_v0  ;;  %1766 = vmatprep.mubr.msk.f32.mxu1 %vm1799_vm1, %v1798_v0 }
  0xa2   :  { %1616 = vmatmul.mubr.msk.f32.gmra.mxu0 %vm122_vm0, %v110_v20  ;;  %1767 = vmatmul.mubr.msk.f32.gmra.mxu1 %vm122_vm0, %v59_v21 }
  0xa3   :  { %1618 = vmatprep.mubr.msk.f32.mxu0 %vm1799_vm1, %v1798_v0  ;;  %1769 = vmatprep.mubr.msk.f32.mxu1 %vm1799_vm1, %v1798_v0 }
  0xa6   :  { %1619 = vmatmul.mubr.msk.f32.gmra.mxu0 %vm122_vm0, %v111_v22  ;;  %1770 = vmatmul.mubr.msk.f32.gmra.mxu1 %vm122_vm0, %v60_v23 }
  0xa7   :  { %1621 = vmatprep.mubr.msk.f32.mxu0 %vm1799_vm1, %v1798_v0  ;;  %1772 = vmatprep.mubr.msk.f32.mxu1 %vm1799_vm1, %v1798_v0 }
  0xaa   :  { %1622 = vmatmul.mubr.msk.f32.gmra.mxu0 %vm122_vm0, %v112_v24  ;;  %1773 = vmatmul.mubr.msk.f32.gmra.mxu1 %vm122_vm0, %v61_v25 }
  0xab   :  { %1624 = vmatprep.mubr.msk.f32.mxu0 %vm1799_vm1, %v1798_v0  ;;  %1775 = vmatprep.mubr.msk.f32.mxu1 %vm1799_vm1, %v1798_v0 }
  0xae   :  { %1625 = vmatmul.mubr.msk.f32.gmra.mxu0 %vm122_vm0, %v113_v26  ;;  %1776 = vmatmul.mubr.msk.f32.gmra.mxu1 %vm122_vm0, %v62_v27 }
  0xaf   :  { %1627 = vmatprep.mubr.msk.f32.mxu0 %vm1799_vm1, %v1798_v0  ;;  %1778 = vmatprep.mubr.msk.f32.mxu1 %vm1799_vm1, %v1798_v0 }
  0xb2   :  { %1628 = vmatmul.mubr.msk.f32.gmra.mxu0 %vm122_vm0, %v114_v28  ;;  %1779 = vmatmul.mubr.msk.f32.gmra.mxu1 %vm122_vm0, %v63_v29 }
  0xb3   :  { %1630 = vmatprep.mubr.msk.f32.mxu0 %vm1799_vm1, %v1798_v0  ;;  %1781 = vmatprep.mubr.msk.f32.mxu1 %vm1799_vm1, %v1798_v0 }
  0xb6   :  { %1631 = vmatmul.mubr.msk.f32.gmra.mxu0 %vm122_vm0, %v115_v30  ;;  %1782 = vmatmul.mubr.msk.f32.gmra.mxu1 %vm122_vm0, %v64_v31 }
  0xb7   :  { %1633 = vmatprep.mubr.msk.f32.mxu0 %vm1799_vm1, %v1798_v0  ;;  %1784 = vmatprep.mubr.msk.f32.mxu1 %vm1799_vm1, %v1798_v0 }
  0xba   :  { %1634 = vmatmul.mubr.msk.f32.gmra.mxu0 %vm122_vm0, %v116_v32  ;;  %1785 = vmatmul.mubr.msk.f32.gmra.mxu1 %vm122_vm0, %v65_v33 }
  0xbb   :  { %1636 = vmatprep.mubr.msk.f32.mxu0 %vm1799_vm1, %v1798_v0  ;;  %1787 = vmatprep.mubr.msk.f32.mxu1 %vm1799_vm1, %v1798_v0 }
  0xbe   :  { %1637 = vmatmul.mubr.msk.f32.gmra.mxu0 %vm122_vm0, %v117_v34  ;;  %1788 = vmatmul.mubr.msk.f32.gmra.mxu1 %vm122_vm0, %v66_v35 }
  0xbf   :  { %1639 = vmatprep.mubr.msk.f32.mxu0 %vm1799_vm1, %v1798_v0  ;;  %1790 = vmatprep.mubr.msk.f32.mxu1 %vm1799_vm1, %v1798_v0 }
  0xc2   :  { %1640 = vmatmul.mubr.msk.f32.gmra.mxu0 %vm122_vm0, %v118_v36  ;;  %1791 = vmatmul.mubr.msk.f32.gmra.mxu1 %vm122_vm0, %v67_v37 }
  0xc3   :  { %1642 = vmatprep.mubr.msk.f32.mxu0 %vm1799_vm1, %v1798_v0  ;;  %1793 = vmatprep.mubr.msk.f32.mxu1 %vm1799_vm1, %v1798_v0  ;;  %v2437_v0 = vld [vmem:[%s2639_s4] ss:$0 sm:$0xff] }
  0xc6   :  { %v336_v40 = vpop.f32.mrf.mxu0  ;;  %1643 = vmatmul.mubr.msk.f32.gmra.mxu0 %vm122_vm0, %v119_v38  ;;  %v793_v41 = vpop.f32.mrf.mxu1  ;;  %1794 = vmatmul.mubr.msk.f32.gmra.mxu1 %vm122_vm0, %v68_v39 }
  0xc7   :  { %v794_v42 = vadd.f32 %v793_v41, %v336_v40 }
  0xc8   :  { %v1500_v43 = vpop.f32.mrf.mxu0  ;;  %v1651_v44 = vpop.f32.mrf.mxu1 }
  0xc9   :  { %vm1037_vm2 = vcmp.ge.f32.partialorder %v794_v42, 0.0  ;;  %v1086_v45 = vmul.f32 0.2, %v794_v42 }
  0xca   :  { %v341_v46 = vpop.f32.mrf.mxu0  ;;  %v798_v47 = vpop.f32.mrf.mxu1 }
  0xcb   :  { %v1135_v48 = vsel %vm1037_vm2, %v794_v42, %v1086_v45  ;;  %v799_v49 = vadd.f32 %v798_v47, %v341_v46 }
  0xcc   :  { %v1191_v50 = vadd.f32 %v2437_v0, %v1135_v48  ;;  %v1503_v51 = vpop.f32.mrf.mxu0  ;;  %v1654_v52 = vpop.f32.mrf.mxu1 }
  0xcd   :  { %vm1038_vm3 = vcmp.ge.f32.partialorder %v799_v49, 0.0  ;;  %v1087_v53 = vmul.f32 0.2, %v799_v49 }
  0xce   :  { %1240 = vst [vmem:[%s2640_s5] sm:$0xff] %v1191_v50  ;;  %v346_v54 = vpop.f32.mrf.mxu0  ;;  %v803_v55 = vpop.f32.mrf.mxu1 }
  0xcf   :  { %v1136_v56 = vsel %vm1038_vm3, %v799_v49, %v1087_v53  ;;  %v804_v57 = vadd.f32 %v803_v55, %v346_v54 }
  0xd0   :  { %v1192_v58 = vadd.f32 %v2437_v0, %v1136_v56  ;;  %v1506_v59 = vpop.f32.mrf.mxu0  ;;  %v1657_v60 = vpop.f32.mrf.mxu1 }
  0xd1   :  { %vm1039_vm4 = vcmp.ge.f32.partialorder %v804_v57, 0.0  ;;  %v1088_v61 = vmul.f32 0.2, %v804_v57 }
  0xd2   :  { %1241 = vst [vmem:[%s2640_s5 + $0x8] sm:$0xff] %v1192_v58  ;;  %v351_v62 = vpop.f32.mrf.mxu0  ;;  %v808_v63 = vpop.f32.mrf.mxu1 }
  0xd3   :  { %v1137_v1 = vsel %vm1039_vm4, %v804_v57, %v1088_v61  ;;  %v809_v2 = vadd.f32 %v808_v63, %v351_v62 }
  0xd4   :  { %v1193_v3 = vadd.f32 %v2437_v0, %v1137_v1  ;;  %v1509_v4 = vpop.f32.mrf.mxu0  ;;  %v1660_v5 = vpop.f32.mrf.mxu1 }
  0xd5   :  { %vm1040_vm5 = vcmp.ge.f32.partialorder %v809_v2, 0.0  ;;  %v1089_v6 = vmul.f32 0.2, %v809_v2 }
  0xd6   :  { %1242 = vst [vmem:[%s2640_s5 + $0x10] sm:$0xff] %v1193_v3  ;;  %v356_v7 = vpop.f32.mrf.mxu0  ;;  %v813_v8 = vpop.f32.mrf.mxu1 }
  0xd7   :  { %v1138_v9 = vsel %vm1040_vm5, %v809_v2, %v1089_v6  ;;  %v814_v10 = vadd.f32 %v813_v8, %v356_v7 }
  0xd8   :  { %v1194_v11 = vadd.f32 %v2437_v0, %v1138_v9  ;;  %v1512_v12 = vpop.f32.mrf.mxu0  ;;  %v1663_v13 = vpop.f32.mrf.mxu1 }
  0xd9   :  { %vm1041_vm6 = vcmp.ge.f32.partialorder %v814_v10, 0.0  ;;  %v1090_v14 = vmul.f32 0.2, %v814_v10 }
  0xda   :  { %1243 = vst [vmem:[%s2640_s5 + $0x18] sm:$0xff] %v1194_v11  ;;  %v361_v15 = vpop.f32.mrf.mxu0  ;;  %v818_v16 = vpop.f32.mrf.mxu1 }
  0xdb   :  { %v1139_v17 = vsel %vm1041_vm6, %v814_v10, %v1090_v14  ;;  %v819_v18 = vadd.f32 %v818_v16, %v361_v15 }
  0xdc   :  { %v1195_v19 = vadd.f32 %v2437_v0, %v1139_v17  ;;  %v1515_v20 = vpop.f32.mrf.mxu0  ;;  %v1666_v21 = vpop.f32.mrf.mxu1 }
  0xdd   :  { %vm1042_vm7 = vcmp.ge.f32.partialorder %v819_v18, 0.0  ;;  %v1091_v22 = vmul.f32 0.2, %v819_v18 }
  0xde   :  { %1244 = vst [vmem:[%s2640_s5 + $0x20] sm:$0xff] %v1195_v19  ;;  %v366_v23 = vpop.f32.mrf.mxu0  ;;  %v823_v24 = vpop.f32.mrf.mxu1 }
  0xdf   :  { %v1140_v25 = vsel %vm1042_vm7, %v819_v18, %v1091_v22  ;;  %v824_v26 = vadd.f32 %v823_v24, %v366_v23 }
  0xe0   :  { %v1196_v27 = vadd.f32 %v2437_v0, %v1140_v25  ;;  %v1518_v28 = vpop.f32.mrf.mxu0  ;;  %v1669_v29 = vpop.f32.mrf.mxu1 }
  0xe1   :  { %vm1043_vm8 = vcmp.ge.f32.partialorder %v824_v26, 0.0  ;;  %v1092_v30 = vmul.f32 0.2, %v824_v26 }
  0xe2   :  { %1245 = vst [vmem:[%s2640_s5 + $0x28] sm:$0xff] %v1196_v27  ;;  %v371_v31 = vpop.f32.mrf.mxu0  ;;  %v828_v32 = vpop.f32.mrf.mxu1 }
  0xe3   :  { %v1141_v33 = vsel %vm1043_vm8, %v824_v26, %v1092_v30  ;;  %v829_v34 = vadd.f32 %v828_v32, %v371_v31 }
  0xe4   :  { %v1197_v35 = vadd.f32 %v2437_v0, %v1141_v33  ;;  %v1521_v36 = vpop.f32.mrf.mxu0  ;;  %v1672_v37 = vpop.f32.mrf.mxu1 }
  0xe5   :  { %vm1044_vm9 = vcmp.ge.f32.partialorder %v829_v34, 0.0  ;;  %v1093_v38 = vmul.f32 0.2, %v829_v34 }
  0xe6   :  { %1246 = vst [vmem:[%s2640_s5 + $0x30] sm:$0xff] %v1197_v35  ;;  %v376_v39 = vpop.f32.mrf.mxu0  ;;  %v833_v40 = vpop.f32.mrf.mxu1 }
  0xe7   :  { %v1142_v41 = vsel %vm1044_vm9, %v829_v34, %v1093_v38  ;;  %v834_v42 = vadd.f32 %v833_v40, %v376_v39 }
  0xe8   :  { %v1198_v43 = vadd.f32 %v2437_v0, %v1142_v41  ;;  %v1524_v44 = vpop.f32.mrf.mxu0  ;;  %v1675_v45 = vpop.f32.mrf.mxu1 }
  0xe9   :  { %vm1045_vm10 = vcmp.ge.f32.partialorder %v834_v42, 0.0  ;;  %v1094_v46 = vmul.f32 0.2, %v834_v42 }
  0xea   :  { %1247 = vst [vmem:[%s2640_s5 + $0x38] sm:$0xff] %v1198_v43  ;;  %v381_v47 = vpop.f32.mrf.mxu0  ;;  %v838_v48 = vpop.f32.mrf.mxu1 }
  0xeb   :  { %v1143_v49 = vsel %vm1045_vm10, %v834_v42, %v1094_v46  ;;  %v839_v50 = vadd.f32 %v838_v48, %v381_v47 }
  0xec   :  { %v1199_v51 = vadd.f32 %v2437_v0, %v1143_v49  ;;  %v1527_v52 = vpop.f32.mrf.mxu0  ;;  %v1678_v53 = vpop.f32.mrf.mxu1 }
  0xed   :  { %vm1046_vm11 = vcmp.ge.f32.partialorder %v839_v50, 0.0  ;;  %v1095_v54 = vmul.f32 0.2, %v839_v50 }
  0xee   :  { %1248 = vst [vmem:[%s2640_s5 + $0x40] sm:$0xff] %v1199_v51  ;;  %v386_v55 = vpop.f32.mrf.mxu0  ;;  %v843_v56 = vpop.f32.mrf.mxu1 }
  0xef   :  { %v1144_v57 = vsel %vm1046_vm11, %v839_v50, %v1095_v54  ;;  %v844_v58 = vadd.f32 %v843_v56, %v386_v55 }
  0xf0   :  { %v1200_v59 = vadd.f32 %v2437_v0, %v1144_v57  ;;  %v1530_v60 = vpop.f32.mrf.mxu0  ;;  %v1681_v61 = vpop.f32.mrf.mxu1 }
  0xf1   :  { %vm1047_vm12 = vcmp.ge.f32.partialorder %v844_v58, 0.0  ;;  %v1096_v62 = vmul.f32 0.2, %v844_v58 }
  0xf2   :  { %1249 = vst [vmem:[%s2640_s5 + $0x48] sm:$0xff] %v1200_v59  ;;  %v391_v63 = vpop.f32.mrf.mxu0  ;;  %v848_v1 = vpop.f32.mrf.mxu1 }
  0xf3   :  { %v1145_v2 = vsel %vm1047_vm12, %v844_v58, %v1096_v62  ;;  %v849_v3 = vadd.f32 %v848_v1, %v391_v63 }
  0xf4   :  { %v1201_v4 = vadd.f32 %v2437_v0, %v1145_v2  ;;  %v1533_v5 = vpop.f32.mrf.mxu0  ;;  %v1684_v6 = vpop.f32.mrf.mxu1 }
  0xf5   :  { %vm1048_vm13 = vcmp.ge.f32.partialorder %v849_v3, 0.0  ;;  %v1097_v7 = vmul.f32 0.2, %v849_v3 }
  0xf6   :  { %1250 = vst [vmem:[%s2640_s5 + $0x50] sm:$0xff] %v1201_v4  ;;  %v396_v8 = vpop.f32.mrf.mxu0  ;;  %v853_v9 = vpop.f32.mrf.mxu1 }
  0xf7   :  { %v1146_v10 = vsel %vm1048_vm13, %v849_v3, %v1097_v7  ;;  %v854_v11 = vadd.f32 %v853_v9, %v396_v8 }
  0xf8   :  { %v1202_v12 = vadd.f32 %v2437_v0, %v1146_v10  ;;  %v1536_v13 = vpop.f32.mrf.mxu0  ;;  %v1687_v14 = vpop.f32.mrf.mxu1 }
  0xf9   :  { %vm1049_vm14 = vcmp.ge.f32.partialorder %v854_v11, 0.0  ;;  %v1098_v15 = vmul.f32 0.2, %v854_v11 }
  0xfa   :  { %1251 = vst [vmem:[%s2640_s5 + $0x58] sm:$0xff] %v1202_v12  ;;  %v401_v16 = vpop.f32.mrf.mxu0  ;;  %v858_v17 = vpop.f32.mrf.mxu1 }
  0xfb   :  { %v1147_v18 = vsel %vm1049_vm14, %v854_v11, %v1098_v15  ;;  %v859_v19 = vadd.f32 %v858_v17, %v401_v16 }
  0xfc   :  { %v1203_v20 = vadd.f32 %v2437_v0, %v1147_v18  ;;  %v1539_v21 = vpop.f32.mrf.mxu0  ;;  %v1690_v22 = vpop.f32.mrf.mxu1 }
  0xfd   :  { %vm1050_vm15 = vcmp.ge.f32.partialorder %v859_v19, 0.0  ;;  %v1099_v23 = vmul.f32 0.2, %v859_v19 }
  0xfe   :  { %1252 = vst [vmem:[%s2640_s5 + $0x60] sm:$0xff] %v1203_v20  ;;  %v406_v24 = vpop.f32.mrf.mxu0  ;;  %v863_v25 = vpop.f32.mrf.mxu1 }
  0xff   :  { %v1148_v26 = vsel %vm1050_vm15, %v859_v19, %v1099_v23  ;;  %v864_v27 = vadd.f32 %v863_v25, %v406_v24 }
 0x100   :  { %v1204_v28 = vadd.f32 %v2437_v0, %v1148_v26  ;;  %v1542_v29 = vpop.f32.mrf.mxu0  ;;  %v1693_v30 = vpop.f32.mrf.mxu1 }
 0x101   :  { %vm1051_vm0 = vcmp.ge.f32.partialorder %v864_v27, 0.0  ;;  %v1100_v31 = vmul.f32 0.2, %v864_v27 }
 0x102   :  { %1253 = vst [vmem:[%s2640_s5 + $0x68] sm:$0xff] %v1204_v28  ;;  %v411_v32 = vpop.f32.mrf.mxu0  ;;  %v868_v33 = vpop.f32.mrf.mxu1 }
 0x103   :  { %v1149_v34 = vsel %vm1051_vm0, %v864_v27, %v1100_v31  ;;  %v869_v35 = vadd.f32 %v868_v33, %v411_v32 }
 0x104   :  { %v1205_v36 = vadd.f32 %v2437_v0, %v1149_v34  ;;  %v1545_v37 = vpop.f32.mrf.mxu0  ;;  %v1696_v38 = vpop.f32.mrf.mxu1 }
 0x105   :  { %vm1052_vm1 = vcmp.ge.f32.partialorder %v869_v35, 0.0  ;;  %v1101_v39 = vmul.f32 0.2, %v869_v35 }
 0x106   :  { %1254 = vst [vmem:[%s2640_s5 + $0x70] sm:$0xff] %v1205_v36  ;;  %v416_v40 = vpop.f32.mrf.mxu0  ;;  %v873_v41 = vpop.f32.mrf.mxu1 }
 0x107   :  { %v1150_v42 = vsel %vm1052_vm1, %v869_v35, %v1101_v39  ;;  %v874_v43 = vadd.f32 %v873_v41, %v416_v40 }
 0x108   :  { %v1206_v44 = vadd.f32 %v2437_v0, %v1150_v42  ;;  %v1548_v45 = vpop.f32.mrf.mxu0  ;;  %v1699_v46 = vpop.f32.mrf.mxu1 }
 0x109   :  { %vm1053_vm2 = vcmp.ge.f32.partialorder %v874_v43, 0.0  ;;  %v1102_v47 = vmul.f32 0.2, %v874_v43 }
 0x10a   :  { %1255 = vst [vmem:[%s2640_s5 + $0x78] sm:$0xff] %v1206_v44  ;;  %v421_v48 = vpop.f32.mrf.mxu0  ;;  %v878_v49 = vpop.f32.mrf.mxu1 }
 0x10b   :  { %v1151_v50 = vsel %vm1053_vm2, %v874_v43, %v1102_v47  ;;  %v879_v51 = vadd.f32 %v878_v49, %v421_v48 }
 0x10c   :  { %v1207_v52 = vadd.f32 %v2437_v0, %v1151_v50  ;;  %v1551_v53 = vpop.f32.mrf.mxu0  ;;  %v1702_v54 = vpop.f32.mrf.mxu1 }
 0x10d   :  { %vm1054_vm3 = vcmp.ge.f32.partialorder %v879_v51, 0.0  ;;  %v1103_v55 = vmul.f32 0.2, %v879_v51 }
 0x10e   :  { %1256 = vst [vmem:[%s2640_s5 + $0x80] sm:$0xff] %v1207_v52  ;;  %v426_v56 = vpop.f32.mrf.mxu0  ;;  %v883_v57 = vpop.f32.mrf.mxu1 }
 0x10f   :  { %v1152_v58 = vsel %vm1054_vm3, %v879_v51, %v1103_v55  ;;  %v884_v59 = vadd.f32 %v883_v57, %v426_v56 }
 0x110   :  { %v1208_v60 = vadd.f32 %v2437_v0, %v1152_v58  ;;  %v1554_v61 = vpop.f32.mrf.mxu0  ;;  %v1705_v62 = vpop.f32.mrf.mxu1 }
 0x111   :  { %vm1055_vm4 = vcmp.ge.f32.partialorder %v884_v59, 0.0  ;;  %v1104_v63 = vmul.f32 0.2, %v884_v59 }
 0x112   :  { %1257 = vst [vmem:[%s2640_s5 + $0x88] sm:$0xff] %v1208_v60  ;;  %v431_v1 = vpop.f32.mrf.mxu0  ;;  %v888_v2 = vpop.f32.mrf.mxu1 }
 0x113   :  { %v1153_v3 = vsel %vm1055_vm4, %v884_v59, %v1104_v63  ;;  %v889_v4 = vadd.f32 %v888_v2, %v431_v1 }
 0x114   :  { %v1209_v5 = vadd.f32 %v2437_v0, %v1153_v3  ;;  %v1557_v6 = vpop.f32.mrf.mxu0  ;;  %v1708_v7 = vpop.f32.mrf.mxu1 }
 0x115   :  { %vm1056_vm5 = vcmp.ge.f32.partialorder %v889_v4, 0.0  ;;  %v1105_v8 = vmul.f32 0.2, %v889_v4 }
 0x116   :  { %1258 = vst [vmem:[%s2640_s5 + $0x90] sm:$0xff] %v1209_v5  ;;  %v436_v9 = vpop.f32.mrf.mxu0  ;;  %v893_v10 = vpop.f32.mrf.mxu1 }
 0x117   :  { %v1154_v11 = vsel %vm1056_vm5, %v889_v4, %v1105_v8  ;;  %v894_v12 = vadd.f32 %v893_v10, %v436_v9 }
 0x118   :  { %v1210_v13 = vadd.f32 %v2437_v0, %v1154_v11  ;;  %v1560_v14 = vpop.f32.mrf.mxu0  ;;  %v1711_v15 = vpop.f32.mrf.mxu1 }
 0x119   :  { %vm1057_vm6 = vcmp.ge.f32.partialorder %v894_v12, 0.0  ;;  %v1106_v16 = vmul.f32 0.2, %v894_v12 }
 0x11a   :  { %1259 = vst [vmem:[%s2640_s5 + $0x98] sm:$0xff] %v1210_v13  ;;  %v441_v17 = vpop.f32.mrf.mxu0  ;;  %v898_v18 = vpop.f32.mrf.mxu1 }
 0x11b   :  { %v1155_v19 = vsel %vm1057_vm6, %v894_v12, %v1106_v16  ;;  %v899_v20 = vadd.f32 %v898_v18, %v441_v17 }
 0x11c   :  { %v1211_v21 = vadd.f32 %v2437_v0, %v1155_v19  ;;  %v1563_v22 = vpop.f32.mrf.mxu0  ;;  %v1714_v23 = vpop.f32.mrf.mxu1 }
 0x11d   :  { %vm1058_vm7 = vcmp.ge.f32.partialorder %v899_v20, 0.0  ;;  %v1107_v24 = vmul.f32 0.2, %v899_v20 }
 0x11e   :  { %1260 = vst [vmem:[%s2640_s5 + $0xa0] sm:$0xff] %v1211_v21  ;;  %v446_v25 = vpop.f32.mrf.mxu0  ;;  %v903_v26 = vpop.f32.mrf.mxu1 }
 0x11f   :  { %v1156_v27 = vsel %vm1058_vm7, %v899_v20, %v1107_v24  ;;  %v904_v28 = vadd.f32 %v903_v26, %v446_v25 }
 0x120   :  { %v1212_v29 = vadd.f32 %v2437_v0, %v1156_v27  ;;  %v1566_v30 = vpop.f32.mrf.mxu0  ;;  %v1717_v31 = vpop.f32.mrf.mxu1 }
 0x121   :  { %vm1059_vm8 = vcmp.ge.f32.partialorder %v904_v28, 0.0  ;;  %v1108_v32 = vmul.f32 0.2, %v904_v28 }
 0x122   :  { %1261 = vst [vmem:[%s2640_s5 + $0xa8] sm:$0xff] %v1212_v29  ;;  %v451_v33 = vpop.f32.mrf.mxu0  ;;  %v908_v34 = vpop.f32.mrf.mxu1 }
 0x123   :  { %v1157_v35 = vsel %vm1059_vm8, %v904_v28, %v1108_v32  ;;  %v909_v36 = vadd.f32 %v908_v34, %v451_v33 }
 0x124   :  { %v1213_v37 = vadd.f32 %v2437_v0, %v1157_v35  ;;  %v1569_v38 = vpop.f32.mrf.mxu0  ;;  %v1720_v39 = vpop.f32.mrf.mxu1 }
 0x125   :  { %vm1060_vm9 = vcmp.ge.f32.partialorder %v909_v36, 0.0  ;;  %v1109_v40 = vmul.f32 0.2, %v909_v36 }
 0x126   :  { %1262 = vst [vmem:[%s2640_s5 + $0xb0] sm:$0xff] %v1213_v37  ;;  %v456_v41 = vpop.f32.mrf.mxu0  ;;  %v913_v42 = vpop.f32.mrf.mxu1 }
 0x127   :  { %v1158_v43 = vsel %vm1060_vm9, %v909_v36, %v1109_v40  ;;  %v914_v44 = vadd.f32 %v913_v42, %v456_v41 }
 0x128   :  { %v1214_v45 = vadd.f32 %v2437_v0, %v1158_v43  ;;  %v1572_v46 = vpop.f32.mrf.mxu0  ;;  %v1723_v47 = vpop.f32.mrf.mxu1 }
 0x129   :  { %vm1061_vm10 = vcmp.ge.f32.partialorder %v914_v44, 0.0  ;;  %v1110_v48 = vmul.f32 0.2, %v914_v44 }
 0x12a   :  { %1263 = vst [vmem:[%s2640_s5 + $0xb8] sm:$0xff] %v1214_v45  ;;  %v461_v49 = vpop.f32.mrf.mxu0  ;;  %v918_v50 = vpop.f32.mrf.mxu1 }
 0x12b   :  { %v1159_v51 = vsel %vm1061_vm10, %v914_v44, %v1110_v48  ;;  %v919_v52 = vadd.f32 %v918_v50, %v461_v49 }
 0x12c   :  { %v1215_v53 = vadd.f32 %v2437_v0, %v1159_v51  ;;  %v1575_v54 = vpop.f32.mrf.mxu0  ;;  %v1726_v55 = vpop.f32.mrf.mxu1 }
 0x12d   :  { %vm1062_vm11 = vcmp.ge.f32.partialorder %v919_v52, 0.0  ;;  %v1111_v56 = vmul.f32 0.2, %v919_v52 }
 0x12e   :  { %1264 = vst [vmem:[%s2640_s5 + $0xc0] sm:$0xff] %v1215_v53  ;;  %v466_v57 = vpop.f32.mrf.mxu0  ;;  %v923_v58 = vpop.f32.mrf.mxu1 }
 0x12f   :  { %v1160_v59 = vsel %vm1062_vm11, %v919_v52, %v1111_v56  ;;  %v924_v60 = vadd.f32 %v923_v58, %v466_v57 }
 0x130   :  { %v1216_v61 = vadd.f32 %v2437_v0, %v1160_v59  ;;  %v1578_v62 = vpop.f32.mrf.mxu0  ;;  %v1729_v63 = vpop.f32.mrf.mxu1 }
 0x131   :  { %vm1063_vm12 = vcmp.ge.f32.partialorder %v924_v60, 0.0  ;;  %v1112_v1 = vmul.f32 0.2, %v924_v60 }
 0x132   :  { %1265 = vst [vmem:[%s2640_s5 + $0xc8] sm:$0xff] %v1216_v61  ;;  %v471_v2 = vpop.f32.mrf.mxu0  ;;  %v928_v3 = vpop.f32.mrf.mxu1 }
 0x133   :  { %v1161_v4 = vsel %vm1063_vm12, %v924_v60, %v1112_v1  ;;  %v929_v5 = vadd.f32 %v928_v3, %v471_v2 }
 0x134   :  { %v1217_v6 = vadd.f32 %v2437_v0, %v1161_v4  ;;  %v1581_v7 = vpop.f32.mrf.mxu0  ;;  %v1732_v8 = vpop.f32.mrf.mxu1 }
 0x135   :  { %vm1064_vm13 = vcmp.ge.f32.partialorder %v929_v5, 0.0  ;;  %v1113_v9 = vmul.f32 0.2, %v929_v5 }
 0x136   :  { %1266 = vst [vmem:[%s2640_s5 + $0xd0] sm:$0xff] %v1217_v6  ;;  %v476_v10 = vpop.f32.mrf.mxu0  ;;  %v933_v11 = vpop.f32.mrf.mxu1 }
 0x137   :  { %v1162_v12 = vsel %vm1064_vm13, %v929_v5, %v1113_v9  ;;  %v934_v13 = vadd.f32 %v933_v11, %v476_v10 }
 0x138   :  { %v1218_v14 = vadd.f32 %v2437_v0, %v1162_v12  ;;  %v1584_v15 = vpop.f32.mrf.mxu0  ;;  %v1735_v16 = vpop.f32.mrf.mxu1 }
 0x139   :  { %vm1065_vm14 = vcmp.ge.f32.partialorder %v934_v13, 0.0  ;;  %v1114_v17 = vmul.f32 0.2, %v934_v13 }
 0x13a   :  { %1267 = vst [vmem:[%s2640_s5 + $0xd8] sm:$0xff] %v1218_v14  ;;  %v481_v18 = vpop.f32.mrf.mxu0  ;;  %v938_v19 = vpop.f32.mrf.mxu1 }
 0x13b   :  { %v1163_v20 = vsel %vm1065_vm14, %v934_v13, %v1114_v17  ;;  %v939_v21 = vadd.f32 %v938_v19, %v481_v18 }
 0x13c   :  { %v1219_v22 = vadd.f32 %v2437_v0, %v1163_v20  ;;  %v1587_v23 = vpop.f32.mrf.mxu0  ;;  %v1738_v24 = vpop.f32.mrf.mxu1 }
 0x13d   :  { %vm1066_vm15 = vcmp.ge.f32.partialorder %v939_v21, 0.0  ;;  %v1115_v25 = vmul.f32 0.2, %v939_v21 }
 0x13e   :  { %1268 = vst [vmem:[%s2640_s5 + $0xe0] sm:$0xff] %v1219_v22  ;;  %v486_v26 = vpop.f32.mrf.mxu0  ;;  %v943_v27 = vpop.f32.mrf.mxu1 }
 0x13f   :  { %v1164_v28 = vsel %vm1066_vm15, %v939_v21, %v1115_v25  ;;  %v944_v29 = vadd.f32 %v943_v27, %v486_v26 }
 0x140   :  { %v1220_v30 = vadd.f32 %v2437_v0, %v1164_v28  ;;  %v1590_v31 = vpop.f32.mrf.mxu0  ;;  %v1741_v32 = vpop.f32.mrf.mxu1 }
 0x141   :  { %vm1067_vm0 = vcmp.ge.f32.partialorder %v944_v29, 0.0  ;;  %v1116_v33 = vmul.f32 0.2, %v944_v29 }
 0x142   :  { %1269 = vst [vmem:[%s2640_s5 + $0xe8] sm:$0xff] %v1220_v30  ;;  %v491_v34 = vpop.f32.mrf.mxu0  ;;  %v948_v35 = vpop.f32.mrf.mxu1 }
 0x143   :  { %v1165_v36 = vsel %vm1067_vm0, %v944_v29, %v1116_v33  ;;  %v949_v37 = vadd.f32 %v948_v35, %v491_v34 }
 0x144   :  { %v1221_v38 = vadd.f32 %v2437_v0, %v1165_v36  ;;  %v1593_v39 = vpop.f32.mrf.mxu0  ;;  %v1744_v40 = vpop.f32.mrf.mxu1 }
 0x145   :  { %vm1068_vm1 = vcmp.ge.f32.partialorder %v949_v37, 0.0  ;;  %v1117_v41 = vmul.f32 0.2, %v949_v37 }
 0x146   :  { %1270 = vst [vmem:[%s2640_s5 + $0xf0] sm:$0xff] %v1221_v38  ;;  %v496_v42 = vpop.f32.mrf.mxu0  ;;  %v953_v43 = vpop.f32.mrf.mxu1 }
 0x147   :  { %v1166_v44 = vsel %vm1068_vm1, %v949_v37, %v1117_v41  ;;  %v954_v45 = vadd.f32 %v953_v43, %v496_v42 }
 0x148   :  { %v1222_v46 = vadd.f32 %v2437_v0, %v1166_v44  ;;  %v1596_v47 = vpop.f32.mrf.mxu0  ;;  %v1747_v48 = vpop.f32.mrf.mxu1 }
 0x149   :  { %vm1069_vm2 = vcmp.ge.f32.partialorder %v954_v45, 0.0  ;;  %v1118_v49 = vmul.f32 0.2, %v954_v45 }
 0x14a   :  { %1271 = vst [vmem:[%s2640_s5 + $0xf8] sm:$0xff] %v1222_v46  ;;  %v501_v50 = vpop.f32.mrf.mxu0  ;;  %v958_v51 = vpop.f32.mrf.mxu1 }
 0x14b   :  { %v1167_v52 = vsel %vm1069_vm2, %v954_v45, %v1118_v49  ;;  %v959_v53 = vadd.f32 %v958_v51, %v501_v50 }
 0x14c   :  { %v1223_v54 = vadd.f32 %v2437_v0, %v1167_v52  ;;  %v1599_v55 = vpop.f32.mrf.mxu0  ;;  %v1750_v56 = vpop.f32.mrf.mxu1 }
 0x14d   :  { %vm1070_vm3 = vcmp.ge.f32.partialorder %v959_v53, 0.0  ;;  %v1119_v57 = vmul.f32 0.2, %v959_v53 }
 0x14e   :  { %1272 = vst [vmem:[%s2640_s5 + $0x100] sm:$0xff] %v1223_v54  ;;  %v506_v58 = vpop.f32.mrf.mxu0  ;;  %v963_v59 = vpop.f32.mrf.mxu1 }
 0x14f   :  { %v1168_v60 = vsel %vm1070_vm3, %v959_v53, %v1119_v57  ;;  %v964_v61 = vadd.f32 %v963_v59, %v506_v58 }
 0x150   :  { %v1224_v62 = vadd.f32 %v2437_v0, %v1168_v60  ;;  %v1602_v63 = vpop.f32.mrf.mxu0  ;;  %v1753_v1 = vpop.f32.mrf.mxu1 }
 0x151   :  { %vm1071_vm4 = vcmp.ge.f32.partialorder %v964_v61, 0.0  ;;  %v1120_v2 = vmul.f32 0.2, %v964_v61 }
 0x152   :  { %1273 = vst [vmem:[%s2640_s5 + $0x108] sm:$0xff] %v1224_v62  ;;  %v511_v3 = vpop.f32.mrf.mxu0  ;;  %v968_v4 = vpop.f32.mrf.mxu1 }
 0x153   :  { %v1169_v5 = vsel %vm1071_vm4, %v964_v61, %v1120_v2  ;;  %v969_v6 = vadd.f32 %v968_v4, %v511_v3 }
 0x154   :  { %v1225_v7 = vadd.f32 %v2437_v0, %v1169_v5  ;;  %v1605_v8 = vpop.f32.mrf.mxu0  ;;  %v1756_v9 = vpop.f32.mrf.mxu1 }
 0x155   :  { %vm1072_vm5 = vcmp.ge.f32.partialorder %v969_v6, 0.0  ;;  %v1121_v10 = vmul.f32 0.2, %v969_v6 }
 0x156   :  { %1274 = vst [vmem:[%s2640_s5 + $0x110] sm:$0xff] %v1225_v7  ;;  %v516_v11 = vpop.f32.mrf.mxu0  ;;  %v973_v12 = vpop.f32.mrf.mxu1 }
 0x157   :  { %v1170_v13 = vsel %vm1072_vm5, %v969_v6, %v1121_v10  ;;  %v974_v14 = vadd.f32 %v973_v12, %v516_v11 }
 0x158   :  { %v1226_v15 = vadd.f32 %v2437_v0, %v1170_v13  ;;  %v1608_v16 = vpop.f32.mrf.mxu0  ;;  %v1759_v17 = vpop.f32.mrf.mxu1 }
 0x159   :  { %vm1073_vm6 = vcmp.ge.f32.partialorder %v974_v14, 0.0  ;;  %v1122_v18 = vmul.f32 0.2, %v974_v14 }
 0x15a   :  { %1275 = vst [vmem:[%s2640_s5 + $0x118] sm:$0xff] %v1226_v15  ;;  %v521_v19 = vpop.f32.mrf.mxu0  ;;  %v978_v20 = vpop.f32.mrf.mxu1 }
 0x15b   :  { %v1171_v21 = vsel %vm1073_vm6, %v974_v14, %v1122_v18  ;;  %v979_v22 = vadd.f32 %v978_v20, %v521_v19 }
 0x15c   :  { %v1227_v23 = vadd.f32 %v2437_v0, %v1171_v21  ;;  %v1611_v24 = vpop.f32.mrf.mxu0  ;;  %v1762_v25 = vpop.f32.mrf.mxu1 }
 0x15d   :  { %vm1074_vm7 = vcmp.ge.f32.partialorder %v979_v22, 0.0  ;;  %v1123_v26 = vmul.f32 0.2, %v979_v22 }
 0x15e   :  { %1276 = vst [vmem:[%s2640_s5 + $0x120] sm:$0xff] %v1227_v23  ;;  %v526_v27 = vpop.f32.mrf.mxu0  ;;  %v983_v28 = vpop.f32.mrf.mxu1 }
 0x15f   :  { %v1172_v29 = vsel %vm1074_vm7, %v979_v22, %v1123_v26  ;;  %v984_v30 = vadd.f32 %v983_v28, %v526_v27 }
 0x160   :  { %v1228_v31 = vadd.f32 %v2437_v0, %v1172_v29  ;;  %v1614_v32 = vpop.f32.mrf.mxu0  ;;  %v1765_v33 = vpop.f32.mrf.mxu1 }
 0x161   :  { %vm1075_vm8 = vcmp.ge.f32.partialorder %v984_v30, 0.0  ;;  %v1124_v34 = vmul.f32 0.2, %v984_v30 }
 0x162   :  { %1277 = vst [vmem:[%s2640_s5 + $0x128] sm:$0xff] %v1228_v31  ;;  %v531_v35 = vpop.f32.mrf.mxu0  ;;  %v988_v36 = vpop.f32.mrf.mxu1 }
 0x163   :  { %v1173_v37 = vsel %vm1075_vm8, %v984_v30, %v1124_v34  ;;  %v989_v38 = vadd.f32 %v988_v36, %v531_v35 }
 0x164   :  { %v1229_v39 = vadd.f32 %v2437_v0, %v1173_v37  ;;  %v1617_v40 = vpop.f32.mrf.mxu0  ;;  %v1768_v41 = vpop.f32.mrf.mxu1 }
 0x165   :  { %vm1076_vm9 = vcmp.ge.f32.partialorder %v989_v38, 0.0  ;;  %v1125_v42 = vmul.f32 0.2, %v989_v38 }
 0x166   :  { %1278 = vst [vmem:[%s2640_s5 + $0x130] sm:$0xff] %v1229_v39  ;;  %v536_v43 = vpop.f32.mrf.mxu0  ;;  %v993_v44 = vpop.f32.mrf.mxu1 }
 0x167   :  { %v1174_v45 = vsel %vm1076_vm9, %v989_v38, %v1125_v42  ;;  %v994_v46 = vadd.f32 %v993_v44, %v536_v43 }
 0x168   :  { %v1230_v47 = vadd.f32 %v2437_v0, %v1174_v45  ;;  %v1620_v48 = vpop.f32.mrf.mxu0  ;;  %v1771_v49 = vpop.f32.mrf.mxu1 }
 0x169   :  { %vm1077_vm10 = vcmp.ge.f32.partialorder %v994_v46, 0.0  ;;  %v1126_v50 = vmul.f32 0.2, %v994_v46 }
 0x16a   :  { %1279 = vst [vmem:[%s2640_s5 + $0x138] sm:$0xff] %v1230_v47  ;;  %v541_v51 = vpop.f32.mrf.mxu0  ;;  %v998_v52 = vpop.f32.mrf.mxu1 }
 0x16b   :  { %v1175_v53 = vsel %vm1077_vm10, %v994_v46, %v1126_v50  ;;  %v999_v54 = vadd.f32 %v998_v52, %v541_v51 }
 0x16c   :  { %v1231_v55 = vadd.f32 %v2437_v0, %v1175_v53  ;;  %v1623_v56 = vpop.f32.mrf.mxu0  ;;  %v1774_v57 = vpop.f32.mrf.mxu1 }
 0x16d   :  { %vm1078_vm11 = vcmp.ge.f32.partialorder %v999_v54, 0.0  ;;  %v1127_v58 = vmul.f32 0.2, %v999_v54 }
 0x16e   :  { %1280 = vst [vmem:[%s2640_s5 + $0x140] sm:$0xff] %v1231_v55  ;;  %v546_v59 = vpop.f32.mrf.mxu0  ;;  %v1003_v60 = vpop.f32.mrf.mxu1 }
 0x16f   :  { %v1176_v61 = vsel %vm1078_vm11, %v999_v54, %v1127_v58  ;;  %v1004_v62 = vadd.f32 %v1003_v60, %v546_v59 }
 0x170   :  { %v1232_v63 = vadd.f32 %v2437_v0, %v1176_v61  ;;  %v1626_v1 = vpop.f32.mrf.mxu0  ;;  %v1777_v2 = vpop.f32.mrf.mxu1 }
 0x171   :  { %vm1079_vm12 = vcmp.ge.f32.partialorder %v1004_v62, 0.0  ;;  %v1128_v3 = vmul.f32 0.2, %v1004_v62 }
 0x172   :  { %1281 = vst [vmem:[%s2640_s5 + $0x148] sm:$0xff] %v1232_v63  ;;  %v551_v4 = vpop.f32.mrf.mxu0  ;;  %v1008_v5 = vpop.f32.mrf.mxu1 }
 0x173   :  { %v1177_v6 = vsel %vm1079_vm12, %v1004_v62, %v1128_v3  ;;  %v1009_v7 = vadd.f32 %v1008_v5, %v551_v4 }
 0x174   :  { %v1233_v8 = vadd.f32 %v2437_v0, %v1177_v6  ;;  %v1629_v9 = vpop.f32.mrf.mxu0  ;;  %v1780_v10 = vpop.f32.mrf.mxu1 }
 0x175   :  { %vm1080_vm13 = vcmp.ge.f32.partialorder %v1009_v7, 0.0  ;;  %v1129_v11 = vmul.f32 0.2, %v1009_v7 }
 0x176   :  { %1282 = vst [vmem:[%s2640_s5 + $0x150] sm:$0xff] %v1233_v8  ;;  %v556_v12 = vpop.f32.mrf.mxu0  ;;  %v1013_v13 = vpop.f32.mrf.mxu1 }
 0x177   :  { %v1178_v14 = vsel %vm1080_vm13, %v1009_v7, %v1129_v11  ;;  %v1014_v15 = vadd.f32 %v1013_v13, %v556_v12 }
 0x178   :  { %v1234_v16 = vadd.f32 %v2437_v0, %v1178_v14  ;;  %v1632_v17 = vpop.f32.mrf.mxu0  ;;  %v1783_v18 = vpop.f32.mrf.mxu1 }
 0x179   :  { %vm1081_vm14 = vcmp.ge.f32.partialorder %v1014_v15, 0.0  ;;  %v1130_v19 = vmul.f32 0.2, %v1014_v15 }
 0x17a   :  { %1283 = vst [vmem:[%s2640_s5 + $0x158] sm:$0xff] %v1234_v16  ;;  %v561_v20 = vpop.f32.mrf.mxu0  ;;  %v1018_v21 = vpop.f32.mrf.mxu1 }
 0x17b   :  { %v1179_v22 = vsel %vm1081_vm14, %v1014_v15, %v1130_v19  ;;  %v1019_v23 = vadd.f32 %v1018_v21, %v561_v20 }
 0x17c   :  { %v1235_v24 = vadd.f32 %v2437_v0, %v1179_v22  ;;  %v1635_v25 = vpop.f32.mrf.mxu0  ;;  %v1786_v26 = vpop.f32.mrf.mxu1 }
 0x17d   :  { %vm1082_vm15 = vcmp.ge.f32.partialorder %v1019_v23, 0.0  ;;  %v1131_v27 = vmul.f32 0.2, %v1019_v23 }
 0x17e   :  { %1284 = vst [vmem:[%s2640_s5 + $0x160] sm:$0xff] %v1235_v24  ;;  %v566_v28 = vpop.f32.mrf.mxu0  ;;  %v1023_v29 = vpop.f32.mrf.mxu1 }
 0x17f   :  { %v1180_v30 = vsel %vm1082_vm15, %v1019_v23, %v1131_v27  ;;  %v1024_v31 = vadd.f32 %v1023_v29, %v566_v28 }
 0x180   :  { %v1236_v32 = vadd.f32 %v2437_v0, %v1180_v30  ;;  %v1638_v33 = vpop.f32.mrf.mxu0  ;;  %v1789_v34 = vpop.f32.mrf.mxu1 }
 0x181   :  { %vm1083_vm0 = vcmp.ge.f32.partialorder %v1024_v31, 0.0  ;;  %v1132_v35 = vmul.f32 0.2, %v1024_v31 }
 0x182   :  { %1285 = vst [vmem:[%s2640_s5 + $0x168] sm:$0xff] %v1236_v32  ;;  %v571_v36 = vpop.f32.mrf.mxu0  ;;  %v1028_v37 = vpop.f32.mrf.mxu1 }
 0x183   :  { %v1181_v38 = vsel %vm1083_vm0, %v1024_v31, %v1132_v35  ;;  %v1029_v39 = vadd.f32 %v1028_v37, %v571_v36 }
 0x184   :  { %v1237_v40 = vadd.f32 %v2437_v0, %v1181_v38  ;;  %v1641_v41 = vpop.f32.mrf.mxu0  ;;  %v1792_v42 = vpop.f32.mrf.mxu1 }
 0x185   :  { %vm1084_vm1 = vcmp.ge.f32.partialorder %v1029_v39, 0.0  ;;  %v1133_v43 = vmul.f32 0.2, %v1029_v39 }
 0x186   :  { %1286 = vst [vmem:[%s2640_s5 + $0x170] sm:$0xff] %v1237_v40  ;;  %v576_v44 = vpop.f32.mrf.mxu0  ;;  %v1033_v45 = vpop.f32.mrf.mxu1 }
 0x187   :  { %v1182_v46 = vsel %vm1084_vm1, %v1029_v39, %v1133_v43  ;;  %v1034_v47 = vadd.f32 %v1033_v45, %v576_v44 }
 0x188   :  { %v1238_v48 = vadd.f32 %v2437_v0, %v1182_v46  ;;  %v1644_v49 = vpop.f32.mrf.mxu0  ;;  %v1795_v50 = vpop.f32.mrf.mxu1 }
 0x189   :  { %vm1085_vm2 = vcmp.ge.f32.partialorder %v1034_v47, 0.0  ;;  %v1134_v51 = vmul.f32 0.2, %v1034_v47 }
 0x18a   :  { %1287 = vst [vmem:[%s2640_s5 + $0x178] sm:$0xff] %v1238_v48 }
 0x18b   :  { %v1183_v52 = vsel %vm1085_vm2, %v1034_v47, %v1134_v51 }
 0x18c   :  { %v1239_v53 = vadd.f32 %v2437_v0, %v1183_v52 }
 0x18e   :  { %1288 = vst [vmem:[%s2640_s5 + $0x180] sm:$0xff] %v1239_v53 }

// kernel: forward.8
= control target key start
LH: loop header
LB: loop body
LE: loop exit
PB: predicated region body
PF: predicated region fallthrough
CT: control target
= control target key end

     0   :  { %v2431_v0 = vmov 0.0   ;;  %vm499_vm0 = vcmask 130048   ;;  %vm2432_vm1 = vmmov 0   ;;  %s4237_s3 = inlined_call_operand.vmem [shape: f32[16,128], index: 3, kind: input, shape index: {}]   ;;  %s4238_s1 = inlined_call_operand.vmem [shape: f32[98,16], index: 1, kind: input, shape index: {}]   ;;  %s4239_s2 = inlined_call_operand.vmem [shape: f32[2048,128], index: 2, kind: input, shape index: {}]   ;;  %s4240_s0 = inlined_call_operand.vmem [shape: f32[98,2048], index: 0, kind: input, shape index: {}]   ;;  %s4241_s4 = inlined_call_operand.vmem [shape: f32[1,128], index: 4, kind: input, shape index: {}]   ;;  %s4242_s5 = inlined_call_operand.vmem [shape: f32[98,128], index: 5, kind: output, shape index: {}]  }
   0x1   :  { %2425 = vmatprep.subr.mxu1 %v2431_v0  ;;  %2382 = vmatprep.subr.mxu0 %v2431_v0  ;;  %v498_v1 = vld [vmem:[%s4237_s3 + $0x8] sm:$0xff]  ;;  %v497_v2 = vld [vmem:[%s4237_s3] sm:$0xff]  ;;  %v259_v4 = vld [vmem:[%s4239_s2 + $0xf8] sm:$0xff] }
   0x2   :  { %2427 = vmatpush3.msra.mxu1 %v498_v1  ;;  %2383 = vmatpush3.msra.mxu0 %v498_v1  ;;  %v492_v3 = vld [vmem:[%s4238_s1 + $0x40] sm:$0xff]  ;;  %v243_v6 = vld [vmem:[%s4239_s2 + $0x78] sm:$0xff]  ;;  %v258_v8 = vld [vmem:[%s4239_s2 + $0xf0] sm:$0xff] }
   0x3   :  { %2426 = vmatprep.subr.mxu1 %v2431_v0  ;;  %2384 = vmatprep.subr.mxu0 %v2431_v0  ;;  %v484_v5 = vld [vmem:[%s4238_s1] sm:$0xff]  ;;  %v291_v7 = vld [vmem:[%s4239_s2 + $0x1f8] sm:$0xff]  ;;  %v242_v10 = vld [vmem:[%s4239_s2 + $0x70] sm:$0xff] }
   0x4   :  { %2428 = vmatpush3.msra.mxu1 %v497_v2  ;;  %2410 = vmatprep.mubr.msk.f32.mxu1 %vm2432_vm1, %v2431_v0  ;;  %v275_v9 = vld [vmem:[%s4239_s2 + $0x178] sm:$0xff]  ;;  %v290_v11 = vld [vmem:[%s4239_s2 + $0x1f0] sm:$0xff]  ;;  %v257_v12 = vld [vmem:[%s4239_s2 + $0xe8] sm:$0xff] }
   0x5   :  { %2385 = vmatpush3.msra.mxu0 %v497_v2  ;;  %2386 = vmatprep.mubr.msk.f32.mxu0 %vm2432_vm1, %v2431_v0  ;;  %v274_v13 = vld [vmem:[%s4239_s2 + $0x170] sm:$0xff]  ;;  %v485_v14 = vld [vmem:[%s4238_s1 + $0x8] sm:$0xff]  ;;  %v256_v17 = vld [vmem:[%s4239_s2 + $0xe0] sm:$0xff] }
   0x6   :  { %2411 = vmatmul.mubr.msk.f32.vlgmr.msra.gmra.mxu1 %vm499_vm0, %v492_v3  ;;  %1814 = vmatprep.subr.mxu1 %v259_v4  ;;  %v241_v15 = vld [vmem:[%s4239_s2 + $0x68] sm:$0xff]  ;;  %v240_v19 = vld [vmem:[%s4239_s2 + $0x60] sm:$0xff]  ;;  %v255_v21 = vld [vmem:[%s4239_s2 + $0xd8] sm:$0xff] }
   0x7   :  { %2387 = vmatmul.mubr.msk.f32.vlgmr.msra.gmra.mxu0 %vm499_vm0, %v484_v5  ;;  %1815 = vmatpush3.msra.mxu1 %v243_v6  ;;  %v289_v16 = vld [vmem:[%s4239_s2 + $0x1e8] sm:$0xff]  ;;  %v288_v20 = vld [vmem:[%s4239_s2 + $0x1e0] sm:$0xff]  ;;  %v486_v23 = vld [vmem:[%s4238_s1 + $0x10] sm:$0xff] }
   0x8   :  { %1885 = vmatprep.subr.mxu0 %v291_v7  ;;  %1816 = vmatprep.subr.mxu1 %v258_v8  ;;  %v273_v18 = vld [vmem:[%s4239_s2 + $0x168] sm:$0xff]  ;;  %v272_v22 = vld [vmem:[%s4239_s2 + $0x160] sm:$0xff]  ;;  %v239_v24 = vld [vmem:[%s4239_s2 + $0x58] sm:$0xff] }
   0x9   :  { %1886 = vmatpush3.msra.mxu0 %v275_v9  ;;  %1817 = vmatpush3.msra.mxu1 %v242_v10  ;;  %v287_v25 = vld [vmem:[%s4239_s2 + $0x1d8] sm:$0xff]  ;;  %v254_v26 = vld [vmem:[%s4239_s2 + $0xd0] sm:$0xff]  ;;  %v253_v30 = vld [vmem:[%s4239_s2 + $0xc8] sm:$0xff] }
   0xa   :  { %1887 = vmatprep.subr.mxu0 %v290_v11  ;;  %2389 = vmatprep.mubr.msk.f32.mxu0 %vm2432_vm1, %v2431_v0  ;;  %v271_v27 = vld [vmem:[%s4239_s2 + $0x158] sm:$0xff]  ;;  %v238_v28 = vld [vmem:[%s4239_s2 + $0x50] sm:$0xff]  ;;  %v237_v33 = vld [vmem:[%s4239_s2 + $0x48] sm:$0xff] }
   0xb   :  { %1818 = vmatprep.subr.mxu1 %v257_v12  ;;  %1888 = vmatpush3.msra.mxu0 %v274_v13  ;;  %v286_v29 = vld [vmem:[%s4239_s2 + $0x1d0] sm:$0xff]  ;;  %v487_v32 = vld [vmem:[%s4238_s1 + $0x18] sm:$0xff]  ;;  %v285_v34 = vld [vmem:[%s4239_s2 + $0x1c8] sm:$0xff] }
   0xc   :  { %2390 = vmatmul.mubr.msk.f32.gmra.mxu0 %vm499_vm0, %v485_v14  ;;  %1819 = vmatpush3.msra.mxu1 %v241_v15  ;;  %v270_v31 = vld [vmem:[%s4239_s2 + $0x150] sm:$0xff]  ;;  %v252_v35 = vld [vmem:[%s4239_s2 + $0xc0] sm:$0xff]  ;;  %v269_v36 = vld [vmem:[%s4239_s2 + $0x148] sm:$0xff] }
   0xd   :  { %1889 = vmatprep.subr.mxu0 %v289_v16  ;;  %1820 = vmatprep.subr.mxu1 %v256_v17  ;;  %v493_v37 = vld [vmem:[%s4238_s1 + $0x48] sm:$0xff]  ;;  %v284_v38 = vld [vmem:[%s4239_s2 + $0x1c0] sm:$0xff]  ;;  %v251_v40 = vld [vmem:[%s4239_s2 + $0xb8] sm:$0xff] }
   0xe   :  { %1890 = vmatpush3.msra.mxu0 %v273_v18  ;;  %1821 = vmatpush3.msra.mxu1 %v240_v19  ;;  %v236_v39 = vld [vmem:[%s4239_s2 + $0x40] sm:$0xff]  ;;  %v235_v43 = vld [vmem:[%s4239_s2 + $0x38] sm:$0xff]  ;;  %v250_v45 = vld [vmem:[%s4239_s2 + $0xb0] sm:$0xff] }
   0xf   :  { %1891 = vmatprep.subr.mxu0 %v288_v20  ;;  %2392 = vmatprep.mubr.msk.f32.mxu0 %vm2432_vm1, %v2431_v0  ;;  %v268_v41 = vld [vmem:[%s4239_s2 + $0x140] sm:$0xff]  ;;  %v283_v44 = vld [vmem:[%s4239_s2 + $0x1b8] sm:$0xff]  ;;  %v494_v47 = vld [vmem:[%s4238_s1 + $0x50] sm:$0xff] }
  0x10   :  { %1822 = vmatprep.subr.mxu1 %v255_v21  ;;  %1892 = vmatpush3.msra.mxu0 %v272_v22  ;;  %v488_v42 = vld [vmem:[%s4238_s1 + $0x20] sm:$0xff]  ;;  %v267_v46 = vld [vmem:[%s4239_s2 + $0x138] sm:$0xff]  ;;  %v282_v48 = vld [vmem:[%s4239_s2 + $0x1b0] sm:$0xff] }
  0x11   :  { %2393 = vmatmul.mubr.msk.f32.gmra.mxu0 %vm499_vm0, %v486_v23  ;;  %1823 = vmatpush3.msra.mxu1 %v239_v24  ;;  %v234_v49 = vld [vmem:[%s4239_s2 + $0x30] sm:$0xff]  ;;  %v249_v50 = vld [vmem:[%s4239_s2 + $0xa8] sm:$0xff]  ;;  %v248_v55 = vld [vmem:[%s4239_s2 + $0xa0] sm:$0xff] }
  0x12   :  { %1893 = vmatprep.subr.mxu0 %v287_v25  ;;  %1824 = vmatprep.subr.mxu1 %v254_v26  ;;  %v266_v51 = vld [vmem:[%s4239_s2 + $0x130] sm:$0xff]  ;;  %v489_v52 = vld [vmem:[%s4238_s1 + $0x28] sm:$0xff]  ;;  %v495_v57 = vld [vmem:[%s4238_s1 + $0x58] sm:$0xff] }
  0x13   :  { %1894 = vmatpush3.msra.mxu0 %v271_v27  ;;  %1825 = vmatpush3.msra.mxu1 %v238_v28  ;;  %v233_v53 = vld [vmem:[%s4239_s2 + $0x28] sm:$0xff]  ;;  %v280_v58 = vld [vmem:[%s4239_s2 + $0x1a0] sm:$0xff]  ;;  %v247_v60 = vld [vmem:[%s4239_s2 + $0x98] sm:$0xff] }
  0x14   :  { %1895 = vmatprep.subr.mxu0 %v286_v29  ;;  %2395 = vmatprep.mubr.msk.f32.mxu0 %vm2432_vm1, %v2431_v0  ;;  %v281_v54 = vld [vmem:[%s4239_s2 + $0x1a8] sm:$0xff]  ;;  %v232_v59 = vld [vmem:[%s4239_s2 + $0x20] sm:$0xff]  ;;  %v490_v62 = vld [vmem:[%s4238_s1 + $0x30] sm:$0xff] }
  0x15   :  { %1826 = vmatprep.subr.mxu1 %v253_v30  ;;  %1896 = vmatpush3.msra.mxu0 %v270_v31  ;;  %v265_v56 = vld [vmem:[%s4239_s2 + $0x128] sm:$0xff]  ;;  %v264_v61 = vld [vmem:[%s4239_s2 + $0x120] sm:$0xff]  ;;  %v231_v63 = vld [vmem:[%s4239_s2 + $0x18] sm:$0xff] }
  0x16   :  { %2396 = vmatmul.mubr.msk.f32.gmra.mxu0 %vm499_vm0, %v487_v32  ;;  %1827 = vmatpush3.msra.mxu1 %v237_v33  ;;  %v279_v1 = vld [vmem:[%s4239_s2 + $0x198] sm:$0xff]  ;;  %v246_v2 = vld [vmem:[%s4239_s2 + $0x90] sm:$0xff]  ;;  %v496_v4 = vld [vmem:[%s4238_s1 + $0x60] sm:$0x3] }
  0x17   :  { %1897 = vmatprep.subr.mxu0 %v285_v34  ;;  %2413 = vmatprep.mubr.msk.f32.mxu1 %vm2432_vm1, %v2431_v0  ;;  %v263_v3 = vld [vmem:[%s4239_s2 + $0x118] sm:$0xff]  ;;  %v278_v5 = vld [vmem:[%s4239_s2 + $0x190] sm:$0xff]  ;;  %v245_v7 = vld [vmem:[%s4239_s2 + $0x88] sm:$0xff] }
  0x18   :  { %1828 = vmatprep.subr.mxu1 %v252_v35  ;;  %1898 = vmatpush3.msra.mxu0 %v269_v36  ;;  %v230_v6 = vld [vmem:[%s4239_s2 + $0x10] sm:$0xff]  ;;  %v491_v9 = vld [vmem:[%s4238_s1 + $0x38] sm:$0xff]  ;;  %v229_v10 = vld [vmem:[%s4239_s2 + $0x8] sm:$0xff] }
  0x19   :  { %2414 = vmatmul.mubr.msk.f32.gmra.mxu1 %vm499_vm0, %v493_v37  ;;  %1899 = vmatprep.subr.mxu0 %v284_v38  ;;  %v262_v8 = vld [vmem:[%s4239_s2 + $0x110] sm:$0xff]  ;;  %v277_v11 = vld [vmem:[%s4239_s2 + $0x188] sm:$0xff]  ;;  %v244_v12 = vld [vmem:[%s4239_s2 + $0x80] sm:$0xff] }
  0x1a   :  { %1829 = vmatpush3.msra.mxu1 %v236_v39  ;;  %2398 = vmatprep.mubr.msk.f32.mxu0 %vm2432_vm1, %v2431_v0  ;;  %v261_v13 = vld [vmem:[%s4239_s2 + $0x108] sm:$0xff]  ;;  %v228_v14 = vld [vmem:[%s4239_s2] sm:$0xff]  ;;  %v23_v18 = vld [vmem:[%s4240_s0 + $0x18] sm:$0xff] }
  0x1b   :  { %1830 = vmatprep.subr.mxu1 %v251_v40  ;;  %1900 = vmatpush3.msra.mxu0 %v268_v41  ;;  %v276_v15 = vld [vmem:[%s4239_s2 + $0x180] sm:$0xff]  ;;  %v323_v19 = vld [vmem:[%s4239_s2 + $0x2f8] sm:$0xff]  ;;  %v22_v20 = vld [vmem:[%s4240_s0 + $0x10] sm:$0xff] }
  0x1c   :  { %2399 = vmatmul.mubr.msk.f32.gmra.mxu0 %vm499_vm0, %v488_v42  ;;  %1831 = vmatpush3.msra.mxu1 %v235_v43  ;;  %v20_v16 = vld [vmem:[%s4240_s0] sm:$0xff]  ;;  %v307_v21 = vld [vmem:[%s4239_s2 + $0x278] sm:$0xff]  ;;  %v37_v23 = vld [vmem:[%s4240_s0 + $0x88] sm:$0xff] }
  0x1d   :  { %1901 = vmatprep.subr.mxu0 %v283_v44  ;;  %2416 = vmatprep.mubr.msk.f32.mxu1 %vm2432_vm1, %v2431_v0  ;;  %v260_v17 = vld [vmem:[%s4239_s2 + $0x100] sm:$0xff]  ;;  %v355_v22 = vld [vmem:[%s4239_s2 + $0x3f8] sm:$0xff]  ;;  %v322_v27 = vld [vmem:[%s4239_s2 + $0x2f0] sm:$0xff] }
  0x1e   :  { %1832 = vmatprep.subr.mxu1 %v250_v45  ;;  %1902 = vmatpush3.msra.mxu0 %v267_v46  ;;  %v339_v24 = vld [vmem:[%s4239_s2 + $0x378] sm:$0xff]  ;;  %v36_v25 = vld [vmem:[%s4240_s0 + $0x80] sm:$0xff]  ;;  %v38_v28 = vld [vmem:[%s4240_s0 + $0x90] sm:$0xff] }
  0x1f   :  { %2417 = vmatmul.mubr.msk.f32.gmra.mxu1 %vm499_vm0, %v494_v47  ;;  %1903 = vmatprep.subr.mxu0 %v282_v48  ;;  %v39_v26 = vld [vmem:[%s4240_s0 + $0x98] sm:$0xff]  ;;  %v306_v29 = vld [vmem:[%s4239_s2 + $0x270] sm:$0xff]  ;;  %v53_v31 = vld [vmem:[%s4240_s0 + $0x108] sm:$0xff] }
  0x20   :  { %1833 = vmatpush3.msra.mxu1 %v234_v49  ;;  %2401 = vmatprep.mubr.msk.f32.mxu0 %vm2432_vm1, %v2431_v0  ;;  %v354_v30 = vld [vmem:[%s4239_s2 + $0x3f0] sm:$0xff]  ;;  %v321_v32 = vld [vmem:[%s4239_s2 + $0x2e8] sm:$0xff]  ;;  %v52_v34 = vld [vmem:[%s4240_s0 + $0x100] sm:$0xff] }
  0x21   :  { %1834 = vmatprep.subr.mxu1 %v249_v50  ;;  %1904 = vmatpush3.msra.mxu0 %v266_v51  ;;  %v338_v33 = vld [vmem:[%s4239_s2 + $0x370] sm:$0xff]  ;;  %v55_v35 = vld [vmem:[%s4240_s0 + $0x118] sm:$0xff]  ;;  %v305_v36 = vld [vmem:[%s4239_s2 + $0x268] sm:$0xff] }
  0x22   :  { %2402 = vmatmul.mubr.msk.f32.gmra.mxu0 %vm499_vm0, %v489_v52  ;;  %1835 = vmatpush3.msra.mxu1 %v233_v53  ;;  %v54_v37 = vld [vmem:[%s4240_s0 + $0x110] sm:$0xff]  ;;  %v353_v38 = vld [vmem:[%s4239_s2 + $0x3e8] sm:$0xff]  ;;  %v320_v39 = vld [vmem:[%s4239_s2 + $0x2e0] sm:$0xff] }
  0x23   :  { %1905 = vmatprep.subr.mxu0 %v281_v54  ;;  %2419 = vmatprep.mubr.msk.f32.mxu1 %vm2432_vm1, %v2431_v0  ;;  %v337_v40 = vld [vmem:[%s4239_s2 + $0x368] sm:$0xff]  ;;  %v304_v42 = vld [vmem:[%s4239_s2 + $0x260] sm:$0xff]  ;;  %v71_v43 = vld [vmem:[%s4240_s0 + $0x198] sm:$0xff] }
  0x24   :  { %1836 = vmatprep.subr.mxu1 %v248_v55  ;;  %1906 = vmatpush3.msra.mxu0 %v265_v56  ;;  %v69_v41 = vld [vmem:[%s4240_s0 + $0x188] sm:$0xff]  ;;  %v68_v44 = vld [vmem:[%s4240_s0 + $0x180] sm:$0xff]  ;;  %v70_v46 = vld [vmem:[%s4240_s0 + $0x190] sm:$0xff] }
  0x25   :  { %2420 = vmatmul.mubr.msk.f32.gmra.mxu1 %vm499_vm0, %v495_v57  ;;  %1907 = vmatprep.subr.mxu0 %v280_v58  ;;  %v352_v45 = vld [vmem:[%s4239_s2 + $0x3e0] sm:$0xff]  ;;  %v319_v47 = vld [vmem:[%s4239_s2 + $0x2d8] sm:$0xff]  ;;  %v85_v50 = vld [vmem:[%s4240_s0 + $0x208] sm:$0xff] }
  0x26   :  { %1837 = vmatpush3.msra.mxu1 %v232_v59  ;;  %2404 = vmatprep.mubr.msk.f32.mxu0 %vm2432_vm1, %v2431_v0  ;;  %v336_v48 = vld [vmem:[%s4239_s2 + $0x360] sm:$0xff]  ;;  %v303_v49 = vld [vmem:[%s4239_s2 + $0x258] sm:$0xff]  ;;  %v318_v55 = vld [vmem:[%s4239_s2 + $0x2d0] sm:$0xff] }
  0x27   :  { %1838 = vmatprep.subr.mxu1 %v247_v60  ;;  %1908 = vmatpush3.msra.mxu0 %v264_v61  ;;  %v351_v51 = vld [vmem:[%s4239_s2 + $0x3d8] sm:$0xff]  ;;  %v84_v52 = vld [vmem:[%s4240_s0 + $0x200] sm:$0xff]  ;;  %v86_v56 = vld [vmem:[%s4240_s0 + $0x210] sm:$0xff] }
  0x28   :  { %2405 = vmatmul.mubr.msk.f32.gmra.mxu0 %vm499_vm0, %v490_v62  ;;  %1839 = vmatpush3.msra.mxu1 %v231_v63  ;;  %v87_v53 = vld [vmem:[%s4240_s0 + $0x218] sm:$0xff]  ;;  %v302_v57 = vld [vmem:[%s4239_s2 + $0x250] sm:$0xff]  ;;  %v101_v58 = vld [vmem:[%s4240_s0 + $0x288] sm:$0xff] }
  0x29   :  { %1909 = vmatprep.subr.mxu0 %v279_v1  ;;  %2422 = vmatprep.mubr.msk.f32.mxu1 %vm2432_vm1, %v2431_v0  ;;  %v335_v54 = vld [vmem:[%s4239_s2 + $0x358] sm:$0xff]  ;;  %v350_v59 = vld [vmem:[%s4239_s2 + $0x3d0] sm:$0xff]  ;;  %v100_v60 = vld [vmem:[%s4240_s0 + $0x280] sm:$0xff] }
  0x2a   :  { %1840 = vmatprep.subr.mxu1 %v246_v2  ;;  %1910 = vmatpush3.msra.mxu0 %v263_v3  ;;  %v103_v61 = vld [vmem:[%s4240_s0 + $0x298] sm:$0xff]  ;;  %v317_v62 = vld [vmem:[%s4239_s2 + $0x2c8] sm:$0xff]  ;;  %v334_v63 = vld [vmem:[%s4239_s2 + $0x350] sm:$0xff] }
  0x2b   :  { %2423 = vmatmul.mubr.msk.f32.gmra.mxu1 %vm499_vm0, %v496_v4  ;;  %1911 = vmatprep.subr.mxu0 %v278_v5  ;;  %v102_v1 = vld [vmem:[%s4240_s0 + $0x290] sm:$0xff]  ;;  %v301_v2 = vld [vmem:[%s4239_s2 + $0x248] sm:$0xff]  ;;  %v316_v5 = vld [vmem:[%s4239_s2 + $0x2c0] sm:$0xff] }
  0x2c   :  { %1841 = vmatpush3.msra.mxu1 %v230_v6  ;;  %2407 = vmatprep.mubr.msk.f32.mxu0 %vm2432_vm1, %v2431_v0  ;;  %v21_v0 = vld [vmem:[%s4240_s0 + $0x8] sm:$0xff] }
  0x2d   :  { %1842 = vmatprep.subr.mxu1 %v245_v7  ;;  %1912 = vmatpush3.msra.mxu0 %v262_v8  ;;  %v349_v3 = vld [vmem:[%s4239_s2 + $0x3c8] sm:$0xff]  ;;  %v116_v7 = vld [vmem:[%s4240_s0 + $0x300] sm:$0xff]  ;;  %v119_v8 = vld [vmem:[%s4240_s0 + $0x318] sm:$0xff] }
  0x2e   :  { %2408 = vmatmul.mubr.msk.f32.gmra.mxu0 %vm499_vm0, %v491_v9  ;;  %1843 = vmatpush3.msra.mxu1 %v229_v10  ;;  %v117_v4 = vld [vmem:[%s4240_s0 + $0x308] sm:$0xff]  ;;  %v300_v9 = vld [vmem:[%s4239_s2 + $0x240] sm:$0xff]  ;;  %v118_v10 = vld [vmem:[%s4240_s0 + $0x310] sm:$0xff] }
  0x2f   :  { %1913 = vmatprep.subr.mxu0 %v277_v11  ;;  %1844 = vmatprep.subr.mxu1 %v244_v12  ;;  %v333_v6 = vld [vmem:[%s4239_s2 + $0x348] sm:$0xff]  ;;  %v348_v11 = vld [vmem:[%s4239_s2 + $0x3c0] sm:$0xff]  ;;  %v315_v12 = vld [vmem:[%s4239_s2 + $0x2b8] sm:$0xff] }
  0x30   :  { %1914 = vmatpush3.msra.mxu0 %v261_v13  ;;  %1845 = vmatpush3.msra.mxu1 %v228_v14  ;;  %v332_v13 = vld [vmem:[%s4239_s2 + $0x340] sm:$0xff]  ;;  %v133_v14 = vld [vmem:[%s4240_s0 + $0x388] sm:$0xff] }
  0x31   :  { %733 = vmatprep.mubr.f32.mxu1 %v21_v0  ;;  %1915 = vmatprep.subr.mxu0 %v276_v15  ;;  %v299_v0 = vld [vmem:[%s4239_s2 + $0x238] sm:$0xff] }
  0x32   :  { %734 = vmatmul.mubr.f32.vlgmr.msra.gmra.mxu1 %v20_v16  ;;  %1916 = vmatpush3.msra.mxu0 %v260_v17  ;;  %v135_v15 = vld [vmem:[%s4240_s0 + $0x398] sm:$0xff]  ;;  %v132_v16 = vld [vmem:[%s4240_s0 + $0x380] sm:$0xff] }
  0x33   :  { %863 = vmatprep.mubr.f32.mxu0 %v23_v18  ;;  %1956 = vmatprep.subr.mxu1 %v323_v19  ;;  %v347_v17 = vld [vmem:[%s4239_s2 + $0x3b8] sm:$0xff]  ;;  %v134_v18 = vld [vmem:[%s4240_s0 + $0x390] sm:$0xff] }
  0x34   :  { %864 = vmatmul.mubr.f32.vlgmr.msra.gmra.mxu0 %v22_v20  ;;  %1957 = vmatpush3.msra.mxu1 %v307_v21  ;;  %v314_v19 = vld [vmem:[%s4239_s2 + $0x2b0] sm:$0xff]  ;;  %v331_v20 = vld [vmem:[%s4239_s2 + $0x338] sm:$0xff]  ;;  %v149_v21 = vld [vmem:[%s4240_s0 + $0x408] sm:$0xff] }
  0x35   :  { %2027 = vmatprep.subr.mxu0 %v355_v22  ;;  %738 = vmatprep.mubr.f32.mxu1 %v37_v23  ;;  %v298_v22 = vld [vmem:[%s4239_s2 + $0x230] sm:$0xff]  ;;  %v151_v23 = vld [vmem:[%s4240_s0 + $0x418] sm:$0xff] }
  0x36   :  { %2028 = vmatpush3.msra.mxu0 %v339_v24  ;;  %739 = vmatmul.mubr.f32.gmra.mxu1 %v36_v25  ;;  %v148_v24 = vld [vmem:[%s4240_s0 + $0x400] sm:$0xff]  ;;  %v346_v25 = vld [vmem:[%s4239_s2 + $0x3b0] sm:$0xff] }
  0x37   :  { %868 = vmatprep.mubr.f32.mxu0 %v39_v26  ;;  %1958 = vmatprep.subr.mxu1 %v322_v27  ;;  %v150_v26 = vld [vmem:[%s4240_s0 + $0x410] sm:$0xff]  ;;  %v313_v27 = vld [vmem:[%s4239_s2 + $0x2a8] sm:$0xff] }
  0x38   :  { %869 = vmatmul.mubr.f32.gmra.mxu0 %v38_v28  ;;  %1959 = vmatpush3.msra.mxu1 %v306_v29  ;;  %v330_v28 = vld [vmem:[%s4239_s2 + $0x330] sm:$0xff]  ;;  %v297_v29 = vld [vmem:[%s4239_s2 + $0x228] sm:$0xff] }
  0x39   :  { %2029 = vmatprep.subr.mxu0 %v354_v30  ;;  %743 = vmatprep.mubr.f32.mxu1 %v53_v31  ;;  %v165_v30 = vld [vmem:[%s4240_s0 + $0x488] sm:$0xff] }
  0x3a   :  { %1960 = vmatprep.subr.mxu1 %v321_v32  ;;  %2030 = vmatpush3.msra.mxu0 %v338_v33  ;;  %v345_v31 = vld [vmem:[%s4239_s2 + $0x3a8] sm:$0xff]  ;;  %v164_v32 = vld [vmem:[%s4240_s0 + $0x480] sm:$0xff]  ;;  %v167_v33 = vld [vmem:[%s4240_s0 + $0x498] sm:$0xff] }
  0x3b   :  { %744 = vmatmul.mubr.f32.gmra.mxu1 %v52_v34  ;;  %873 = vmatprep.mubr.f32.mxu0 %v55_v35  ;;  %v312_v34 = vld [vmem:[%s4239_s2 + $0x2a0] sm:$0xff]  ;;  %v329_v35 = vld [vmem:[%s4239_s2 + $0x328] sm:$0xff] }
  0x3c   :  { %1961 = vmatpush3.msra.mxu1 %v305_v36  ;;  %874 = vmatmul.mubr.f32.gmra.mxu0 %v54_v37  ;;  %v166_v36 = vld [vmem:[%s4240_s0 + $0x490] sm:$0xff]  ;;  %v296_v37 = vld [vmem:[%s4239_s2 + $0x220] sm:$0xff] }
  0x3d   :  { %2031 = vmatprep.subr.mxu0 %v353_v38  ;;  %1962 = vmatprep.subr.mxu1 %v320_v39  ;;  %v344_v38 = vld [vmem:[%s4239_s2 + $0x3a0] sm:$0xff]  ;;  %v181_v39 = vld [vmem:[%s4240_s0 + $0x508] sm:$0xff] }
  0x3e   :  { %2032 = vmatpush3.msra.mxu0 %v337_v40  ;;  %748 = vmatprep.mubr.f32.mxu1 %v69_v41  ;;  %v311_v40 = vld [vmem:[%s4239_s2 + $0x298] sm:$0xff]  ;;  %v328_v41 = vld [vmem:[%s4239_s2 + $0x320] sm:$0xff] }
  0x3f   :  { %1963 = vmatpush3.msra.mxu1 %v304_v42  ;;  %878 = vmatprep.mubr.f32.mxu0 %v71_v43  ;;  %v180_v42 = vld [vmem:[%s4240_s0 + $0x500] sm:$0xff]  ;;  %v183_v43 = vld [vmem:[%s4240_s0 + $0x518] sm:$0xff] }
  0x40   :  { %749 = vmatmul.mubr.f32.gmra.mxu1 %v68_v44  ;;  %2033 = vmatprep.subr.mxu0 %v352_v45  ;;  %v295_v44 = vld [vmem:[%s4239_s2 + $0x218] sm:$0xff]  ;;  %v182_v45 = vld [vmem:[%s4240_s0 + $0x510] sm:$0xff] }
  0x41   :  { %879 = vmatmul.mubr.f32.gmra.mxu0 %v70_v46  ;;  %1964 = vmatprep.subr.mxu1 %v319_v47  ;;  %v343_v46 = vld [vmem:[%s4239_s2 + $0x398] sm:$0xff]  ;;  %v197_v47 = vld [vmem:[%s4240_s0 + $0x588] sm:$0xff] }
  0x42   :  { %2034 = vmatpush3.msra.mxu0 %v336_v48  ;;  %1965 = vmatpush3.msra.mxu1 %v303_v49  ;;  %v327_v48 = vld [vmem:[%s4239_s2 + $0x318] sm:$0xff]  ;;  %v310_v49 = vld [vmem:[%s4239_s2 + $0x290] sm:$0xff] }
  0x43   :  { %753 = vmatprep.mubr.f32.mxu1 %v85_v50  ;;  %2035 = vmatprep.subr.mxu0 %v351_v51  ;;  %v196_v50 = vld [vmem:[%s4240_s0 + $0x580] sm:$0xff]  ;;  %v199_v51 = vld [vmem:[%s4240_s0 + $0x598] sm:$0xff] }
  0x44   :  { %754 = vmatmul.mubr.f32.gmra.mxu1 %v84_v52  ;;  %883 = vmatprep.mubr.f32.mxu0 %v87_v53  ;;  %v294_v52 = vld [vmem:[%s4239_s2 + $0x210] sm:$0xff] }
  0x45   :  { %2036 = vmatpush3.msra.mxu0 %v335_v54  ;;  %1966 = vmatprep.subr.mxu1 %v318_v55  ;;  %v198_v53 = vld [vmem:[%s4240_s0 + $0x590] sm:$0xff]  ;;  %v309_v55 = vld [vmem:[%s4239_s2 + $0x288] sm:$0xff] }
  0x46   :  { %884 = vmatmul.mubr.f32.gmra.mxu0 %v86_v56  ;;  %1967 = vmatpush3.msra.mxu1 %v302_v57  ;;  %v342_v54 = vld [vmem:[%s4239_s2 + $0x390] sm:$0xff]  ;;  %v213_v57 = vld [vmem:[%s4240_s0 + $0x608] sm:$0x3] }
  0x47   :  { %758 = vmatprep.mubr.f32.mxu1 %v101_v58  ;;  %2037 = vmatprep.subr.mxu0 %v350_v59  ;;  %v326_v56 = vld [vmem:[%s4239_s2 + $0x310] sm:$0xff]  ;;  %v293_v58 = vld [vmem:[%s4239_s2 + $0x208] sm:$0xff]  ;;  %v215_v59 = vld [vmem:[%s4240_s0 + $0x618] sm:$0x3] }
  0x48   :  { %759 = vmatmul.mubr.f32.gmra.mxu1 %v100_v60  ;;  %888 = vmatprep.mubr.f32.mxu0 %v103_v61  ;;  %v212_v60 = vld [vmem:[%s4240_s0 + $0x600] sm:$0x3]  ;;  %v341_v61 = vld [vmem:[%s4239_s2 + $0x388] sm:$0xff] }
  0x49   :  { %1968 = vmatprep.subr.mxu1 %v317_v62  ;;  %2038 = vmatpush3.msra.mxu0 %v334_v63  ;;  %v214_v62 = vld [vmem:[%s4240_s0 + $0x610] sm:$0x3]  ;;  %v308_v63 = vld [vmem:[%s4239_s2 + $0x280] sm:$0xff] }
  0x4a   :  { %889 = vmatmul.mubr.f32.gmra.mxu0 %v102_v1  ;;  %1969 = vmatpush3.msra.mxu1 %v301_v2  ;;  %v325_v1 = vld [vmem:[%s4239_s2 + $0x308] sm:$0xff]  ;;  %v292_v2 = vld [vmem:[%s4239_s2 + $0x200] sm:$0xff] }
  0x4b   :  { %2039 = vmatprep.subr.mxu0 %v349_v3  ;;  %763 = vmatprep.mubr.f32.mxu1 %v117_v4  ;;  %v25_v3 = vld [vmem:[%s4240_s0 + $0x28] sm:$0xff]  ;;  %v340_v4 = vld [vmem:[%s4239_s2 + $0x380] sm:$0xff] }
  0x4c   :  { %1970 = vmatprep.subr.mxu1 %v316_v5  ;;  %2040 = vmatpush3.msra.mxu0 %v333_v6  ;;  %v24_v5 = vld [vmem:[%s4240_s0 + $0x20] sm:$0xff] }
  0x4d   :  { %764 = vmatmul.mubr.f32.gmra.mxu1 %v116_v7  ;;  %893 = vmatprep.mubr.f32.mxu0 %v119_v8  ;;  %v324_v6 = vld [vmem:[%s4239_s2 + $0x300] sm:$0xff]  ;;  %v27_v7 = vld [vmem:[%s4240_s0 + $0x38] sm:$0xff] }
  0x4e   :  { %1971 = vmatpush3.msra.mxu1 %v300_v9  ;;  %894 = vmatmul.mubr.f32.gmra.mxu0 %v118_v10  ;;  %v387_v8 = vld [vmem:[%s4239_s2 + $0x4f8] sm:$0xff]  ;;  %v26_v9 = vld [vmem:[%s4240_s0 + $0x30] sm:$0xff] }
  0x4f   :  { %2041 = vmatprep.subr.mxu0 %v348_v11  ;;  %1972 = vmatprep.subr.mxu1 %v315_v12  ;;  %v371_v10 = vld [vmem:[%s4239_s2 + $0x478] sm:$0xff]  ;;  %v41_v12 = vld [vmem:[%s4240_s0 + $0xa8] sm:$0xff] }
  0x50   :  { %2042 = vmatpush3.msra.mxu0 %v332_v13  ;;  %768 = vmatprep.mubr.f32.mxu1 %v133_v14  ;;  %v419_v11 = vld [vmem:[%s4239_s2 + $0x5f8] sm:$0xff]  ;;  %v40_v14 = vld [vmem:[%s4240_s0 + $0xa0] sm:$0xff] }
  0x51   :  { %1973 = vmatpush3.msra.mxu1 %v299_v0  ;;  %898 = vmatprep.mubr.f32.mxu0 %v135_v15  ;;  %v403_v13 = vld [vmem:[%s4239_s2 + $0x578] sm:$0xff]  ;;  %v386_v15 = vld [vmem:[%s4239_s2 + $0x4f0] sm:$0xff] }
  0x52   :  { %769 = vmatmul.mubr.f32.gmra.mxu1 %v132_v16  ;;  %2043 = vmatprep.subr.mxu0 %v347_v17  ;;  %v43_v0 = vld [vmem:[%s4240_s0 + $0xb8] sm:$0xff]  ;;  %v42_v16 = vld [vmem:[%s4240_s0 + $0xb0] sm:$0xff] }
  0x53   :  { %899 = vmatmul.mubr.f32.gmra.mxu0 %v134_v18  ;;  %1974 = vmatprep.subr.mxu1 %v314_v19  ;;  %v370_v17 = vld [vmem:[%s4239_s2 + $0x470] sm:$0xff]  ;;  %v57_v19 = vld [vmem:[%s4240_s0 + $0x128] sm:$0xff] }
  0x54   :  { %2044 = vmatpush3.msra.mxu0 %v331_v20  ;;  %773 = vmatprep.mubr.f32.mxu1 %v149_v21  ;;  %v418_v18 = vld [vmem:[%s4239_s2 + $0x5f0] sm:$0xff]  ;;  %v385_v20 = vld [vmem:[%s4239_s2 + $0x4e8] sm:$0xff] }
  0x55   :  { %1975 = vmatpush3.msra.mxu1 %v298_v22  ;;  %903 = vmatprep.mubr.f32.mxu0 %v151_v23  ;;  %v402_v21 = vld [vmem:[%s4239_s2 + $0x570] sm:$0xff]  ;;  %v56_v22 = vld [vmem:[%s4240_s0 + $0x120] sm:$0xff]  ;;  %v59_v23 = vld [vmem:[%s4240_s0 + $0x138] sm:$0xff] }
  0x56   :  { %774 = vmatmul.mubr.f32.gmra.mxu1 %v148_v24  ;;  %2045 = vmatprep.subr.mxu0 %v346_v25  ;;  %v369_v24 = vld [vmem:[%s4239_s2 + $0x468] sm:$0xff]  ;;  %v58_v25 = vld [vmem:[%s4240_s0 + $0x130] sm:$0xff] }
  0x57   :  { %904 = vmatmul.mubr.f32.gmra.mxu0 %v150_v26  ;;  %1976 = vmatprep.subr.mxu1 %v313_v27  ;;  %v417_v26 = vld [vmem:[%s4239_s2 + $0x5e8] sm:$0xff]  ;;  %v384_v27 = vld [vmem:[%s4239_s2 + $0x4e0] sm:$0xff] }
  0x58   :  { %2046 = vmatpush3.msra.mxu0 %v330_v28  ;;  %1977 = vmatpush3.msra.mxu1 %v297_v29  ;;  %v401_v28 = vld [vmem:[%s4239_s2 + $0x568] sm:$0xff] }
  0x59   :  { %778 = vmatprep.mubr.f32.mxu1 %v165_v30  ;;  %2047 = vmatprep.subr.mxu0 %v345_v31  ;;  %v73_v29 = vld [vmem:[%s4240_s0 + $0x1a8] sm:$0xff]  ;;  %v368_v30 = vld [vmem:[%s4239_s2 + $0x460] sm:$0xff]  ;;  %v75_v31 = vld [vmem:[%s4240_s0 + $0x1b8] sm:$0xff] }
  0x5a   :  { %779 = vmatmul.mubr.f32.gmra.mxu1 %v164_v32  ;;  %908 = vmatprep.mubr.f32.mxu0 %v167_v33  ;;  %v72_v32 = vld [vmem:[%s4240_s0 + $0x1a0] sm:$0xff] }
  0x5b   :  { %1978 = vmatprep.subr.mxu1 %v312_v34  ;;  %2048 = vmatpush3.msra.mxu0 %v329_v35  ;;  %v416_v33 = vld [vmem:[%s4239_s2 + $0x5e0] sm:$0xff]  ;;  %v74_v34 = vld [vmem:[%s4240_s0 + $0x1b0] sm:$0xff]  ;;  %v383_v35 = vld [vmem:[%s4239_s2 + $0x4d8] sm:$0xff] }
  0x5c   :  { %909 = vmatmul.mubr.f32.gmra.mxu0 %v166_v36  ;;  %1979 = vmatpush3.msra.mxu1 %v296_v37  ;;  %v400_v36 = vld [vmem:[%s4239_s2 + $0x560] sm:$0xff]  ;;  %v367_v37 = vld [vmem:[%s4239_s2 + $0x458] sm:$0xff] }
  0x5d   :  { %2049 = vmatprep.subr.mxu0 %v344_v38  ;;  %783 = vmatprep.mubr.f32.mxu1 %v181_v39  ;;  %v89_v38 = vld [vmem:[%s4240_s0 + $0x228] sm:$0xff]  ;;  %v415_v39 = vld [vmem:[%s4239_s2 + $0x5d8] sm:$0xff] }
  0x5e   :  { %1980 = vmatprep.subr.mxu1 %v311_v40  ;;  %2050 = vmatpush3.msra.mxu0 %v328_v41  ;;  %v88_v40 = vld [vmem:[%s4240_s0 + $0x220] sm:$0xff]  ;;  %v91_v41 = vld [vmem:[%s4240_s0 + $0x238] sm:$0xff] }
  0x5f   :  { %784 = vmatmul.mubr.f32.gmra.mxu1 %v180_v42  ;;  %913 = vmatprep.mubr.f32.mxu0 %v183_v43  ;;  %v399_v42 = vld [vmem:[%s4239_s2 + $0x558] sm:$0xff]  ;;  %v382_v43 = vld [vmem:[%s4239_s2 + $0x4d0] sm:$0xff] }
  0x60   :  { %1981 = vmatpush3.msra.mxu1 %v295_v44  ;;  %914 = vmatmul.mubr.f32.gmra.mxu0 %v182_v45  ;;  %v90_v44 = vld [vmem:[%s4240_s0 + $0x230] sm:$0xff] }
  0x61   :  { %2051 = vmatprep.subr.mxu0 %v343_v46  ;;  %788 = vmatprep.mubr.f32.mxu1 %v197_v47  ;;  %v366_v45 = vld [vmem:[%s4239_s2 + $0x450] sm:$0xff]  ;;  %v105_v46 = vld [vmem:[%s4240_s0 + $0x2a8] sm:$0xff] }
  0x62   :  { %2052 = vmatpush3.msra.mxu0 %v327_v48  ;;  %1982 = vmatprep.subr.mxu1 %v310_v49  ;;  %v414_v47 = vld [vmem:[%s4239_s2 + $0x5d0] sm:$0xff]  ;;  %v104_v48 = vld [vmem:[%s4240_s0 + $0x2a0] sm:$0xff]  ;;  %v107_v49 = vld [vmem:[%s4240_s0 + $0x2b8] sm:$0xff] }
  0x63   :  { %789 = vmatmul.mubr.f32.gmra.mxu1 %v196_v50  ;;  %918 = vmatprep.mubr.f32.mxu0 %v199_v51  ;;  %v381_v50 = vld [vmem:[%s4239_s2 + $0x4c8] sm:$0xff]  ;;  %v398_v51 = vld [vmem:[%s4239_s2 + $0x550] sm:$0xff] }
  0x64   :  { %1983 = vmatpush3.msra.mxu1 %v294_v52  ;;  %919 = vmatmul.mubr.f32.gmra.mxu0 %v198_v53  ;;  %v106_v52 = vld [vmem:[%s4240_s0 + $0x2b0] sm:$0xff]  ;;  %v365_v53 = vld [vmem:[%s4239_s2 + $0x448] sm:$0xff] }
  0x65   :  { %2053 = vmatprep.subr.mxu0 %v342_v54  ;;  %1984 = vmatprep.subr.mxu1 %v309_v55  ;;  %v413_v54 = vld [vmem:[%s4239_s2 + $0x5c8] sm:$0xff] }
  0x66   :  { %2054 = vmatpush3.msra.mxu0 %v326_v56  ;;  %793 = vmatprep.mubr.f32.mxu1 %v213_v57  ;;  %v121_v55 = vld [vmem:[%s4240_s0 + $0x328] sm:$0xff]  ;;  %v380_v56 = vld [vmem:[%s4239_s2 + $0x4c0] sm:$0xff] }
  0x67   :  { %1985 = vmatpush3.msra.mxu1 %v293_v58  ;;  %923 = vmatprep.mubr.f32.mxu0 %v215_v59  ;;  %v397_v57 = vld [vmem:[%s4239_s2 + $0x548] sm:$0xff]  ;;  %v120_v58 = vld [vmem:[%s4240_s0 + $0x320] sm:$0xff]  ;;  %v123_v59 = vld [vmem:[%s4240_s0 + $0x338] sm:$0xff] }
  0x68   :  { %794 = vmatmul.mubr.f32.gmra.mxu1 %v212_v60  ;;  %2055 = vmatprep.subr.mxu0 %v341_v61  ;;  %v364_v60 = vld [vmem:[%s4239_s2 + $0x440] sm:$0xff]  ;;  %v122_v61 = vld [vmem:[%s4240_s0 + $0x330] sm:$0xff] }
  0x69   :  { %924 = vmatmul.mubr.f32.gmra.mxu0 %v214_v62  ;;  %1986 = vmatprep.subr.mxu1 %v308_v63  ;;  %v412_v62 = vld [vmem:[%s4239_s2 + $0x5c0] sm:$0xff]  ;;  %v379_v63 = vld [vmem:[%s4239_s2 + $0x4b8] sm:$0xff] }
  0x6a   :  { %2056 = vmatpush3.msra.mxu0 %v325_v1  ;;  %1987 = vmatpush3.msra.mxu1 %v292_v2  ;;  %v396_v1 = vld [vmem:[%s4239_s2 + $0x540] sm:$0xff]  ;;  %v137_v2 = vld [vmem:[%s4240_s0 + $0x3a8] sm:$0xff] }
  0x6b   :  { %993 = vmatprep.mubr.f32.mxu1 %v25_v3  ;;  %2057 = vmatprep.subr.mxu0 %v340_v4  ;;  %v363_v3 = vld [vmem:[%s4239_s2 + $0x438] sm:$0xff] }
  0x6c   :  { %994 = vmatmul.mubr.f32.vlgmr.msra.gmra.mxu1 %v24_v5  ;;  %2058 = vmatpush3.msra.mxu0 %v324_v6  ;;  %v139_v4 = vld [vmem:[%s4240_s0 + $0x3b8] sm:$0xff]  ;;  %v136_v5 = vld [vmem:[%s4240_s0 + $0x3a0] sm:$0xff] }
  0x6d   :  { %1123 = vmatprep.mubr.f32.mxu0 %v27_v7  ;;  %2098 = vmatprep.subr.mxu1 %v387_v8  ;;  %v411_v6 = vld [vmem:[%s4239_s2 + $0x5b8] sm:$0xff]  ;;  %v138_v7 = vld [vmem:[%s4240_s0 + $0x3b0] sm:$0xff] }
  0x6e   :  { %1124 = vmatmul.mubr.f32.vlgmr.msra.gmra.mxu0 %v26_v9  ;;  %2099 = vmatpush3.msra.mxu1 %v371_v10  ;;  %v378_v8 = vld [vmem:[%s4239_s2 + $0x4b0] sm:$0xff]  ;;  %v395_v9 = vld [vmem:[%s4239_s2 + $0x538] sm:$0xff]  ;;  %v153_v10 = vld [vmem:[%s4240_s0 + $0x428] sm:$0xff] }
  0x6f   :  { %2169 = vmatprep.subr.mxu0 %v419_v11  ;;  %998 = vmatprep.mubr.f32.mxu1 %v41_v12  ;;  %v362_v11 = vld [vmem:[%s4239_s2 + $0x430] sm:$0xff]  ;;  %v155_v12 = vld [vmem:[%s4240_s0 + $0x438] sm:$0xff] }
  0x70   :  { %2170 = vmatpush3.msra.mxu0 %v403_v13  ;;  %999 = vmatmul.mubr.f32.gmra.mxu1 %v40_v14  ;;  %v152_v13 = vld [vmem:[%s4240_s0 + $0x420] sm:$0xff]  ;;  %v410_v14 = vld [vmem:[%s4239_s2 + $0x5b0] sm:$0xff] }
  0x71   :  { %1128 = vmatprep.mubr.f32.mxu0 %v43_v0  ;;  %2100 = vmatprep.subr.mxu1 %v386_v15  ;;  %v154_v0 = vld [vmem:[%s4240_s0 + $0x430] sm:$0xff]  ;;  %v377_v15 = vld [vmem:[%s4239_s2 + $0x4a8] sm:$0xff] }
  0x72   :  { %1129 = vmatmul.mubr.f32.gmra.mxu0 %v42_v16  ;;  %2101 = vmatpush3.msra.mxu1 %v370_v17  ;;  %v394_v16 = vld [vmem:[%s4239_s2 + $0x530] sm:$0xff]  ;;  %v361_v17 = vld [vmem:[%s4239_s2 + $0x428] sm:$0xff] }
  0x73   :  { %2171 = vmatprep.subr.mxu0 %v418_v18  ;;  %1003 = vmatprep.mubr.f32.mxu1 %v57_v19  ;;  %v169_v18 = vld [vmem:[%s4240_s0 + $0x4a8] sm:$0xff] }
  0x74   :  { %2102 = vmatprep.subr.mxu1 %v385_v20  ;;  %2172 = vmatpush3.msra.mxu0 %v402_v21  ;;  %v409_v19 = vld [vmem:[%s4239_s2 + $0x5a8] sm:$0xff]  ;;  %v168_v20 = vld [vmem:[%s4240_s0 + $0x4a0] sm:$0xff]  ;;  %v171_v21 = vld [vmem:[%s4240_s0 + $0x4b8] sm:$0xff] }
  0x75   :  { %1004 = vmatmul.mubr.f32.gmra.mxu1 %v56_v22  ;;  %1133 = vmatprep.mubr.f32.mxu0 %v59_v23  ;;  %v376_v22 = vld [vmem:[%s4239_s2 + $0x4a0] sm:$0xff]  ;;  %v393_v23 = vld [vmem:[%s4239_s2 + $0x528] sm:$0xff] }
  0x76   :  { %2103 = vmatpush3.msra.mxu1 %v369_v24  ;;  %1134 = vmatmul.mubr.f32.gmra.mxu0 %v58_v25  ;;  %v170_v24 = vld [vmem:[%s4240_s0 + $0x4b0] sm:$0xff]  ;;  %v360_v25 = vld [vmem:[%s4239_s2 + $0x420] sm:$0xff] }
  0x77   :  { %2173 = vmatprep.subr.mxu0 %v417_v26  ;;  %2104 = vmatprep.subr.mxu1 %v384_v27  ;;  %v408_v26 = vld [vmem:[%s4239_s2 + $0x5a0] sm:$0xff]  ;;  %v185_v27 = vld [vmem:[%s4240_s0 + $0x528] sm:$0xff] }
  0x78   :  { %2174 = vmatpush3.msra.mxu0 %v401_v28  ;;  %1008 = vmatprep.mubr.f32.mxu1 %v73_v29  ;;  %v375_v28 = vld [vmem:[%s4239_s2 + $0x498] sm:$0xff]  ;;  %v392_v29 = vld [vmem:[%s4239_s2 + $0x520] sm:$0xff] }
  0x79   :  { %2105 = vmatpush3.msra.mxu1 %v368_v30  ;;  %1138 = vmatprep.mubr.f32.mxu0 %v75_v31  ;;  %v184_v30 = vld [vmem:[%s4240_s0 + $0x520] sm:$0xff]  ;;  %v187_v31 = vld [vmem:[%s4240_s0 + $0x538] sm:$0xff] }
  0x7a   :  { %1009 = vmatmul.mubr.f32.gmra.mxu1 %v72_v32  ;;  %2175 = vmatprep.subr.mxu0 %v416_v33  ;;  %v359_v32 = vld [vmem:[%s4239_s2 + $0x418] sm:$0xff]  ;;  %v186_v33 = vld [vmem:[%s4240_s0 + $0x530] sm:$0xff] }
  0x7b   :  { %1139 = vmatmul.mubr.f32.gmra.mxu0 %v74_v34  ;;  %2106 = vmatprep.subr.mxu1 %v383_v35  ;;  %v407_v34 = vld [vmem:[%s4239_s2 + $0x598] sm:$0xff]  ;;  %v201_v35 = vld [vmem:[%s4240_s0 + $0x5a8] sm:$0xff] }
  0x7c   :  { %2176 = vmatpush3.msra.mxu0 %v400_v36  ;;  %2107 = vmatpush3.msra.mxu1 %v367_v37  ;;  %v391_v36 = vld [vmem:[%s4239_s2 + $0x518] sm:$0xff]  ;;  %v374_v37 = vld [vmem:[%s4239_s2 + $0x490] sm:$0xff] }
  0x7d   :  { %1013 = vmatprep.mubr.f32.mxu1 %v89_v38  ;;  %2177 = vmatprep.subr.mxu0 %v415_v39  ;;  %v200_v38 = vld [vmem:[%s4240_s0 + $0x5a0] sm:$0xff]  ;;  %v203_v39 = vld [vmem:[%s4240_s0 + $0x5b8] sm:$0xff] }
  0x7e   :  { %1014 = vmatmul.mubr.f32.gmra.mxu1 %v88_v40  ;;  %1143 = vmatprep.mubr.f32.mxu0 %v91_v41  ;;  %v358_v40 = vld [vmem:[%s4239_s2 + $0x410] sm:$0xff] }
  0x7f   :  { %2178 = vmatpush3.msra.mxu0 %v399_v42  ;;  %2108 = vmatprep.subr.mxu1 %v382_v43  ;;  %v202_v41 = vld [vmem:[%s4240_s0 + $0x5b0] sm:$0xff]  ;;  %v373_v43 = vld [vmem:[%s4239_s2 + $0x488] sm:$0xff] }
  0x80   :  { %1144 = vmatmul.mubr.f32.gmra.mxu0 %v90_v44  ;;  %2109 = vmatpush3.msra.mxu1 %v366_v45  ;;  %v406_v42 = vld [vmem:[%s4239_s2 + $0x590] sm:$0xff]  ;;  %v217_v45 = vld [vmem:[%s4240_s0 + $0x628] sm:$0x3] }
  0x81   :  { %1018 = vmatprep.mubr.f32.mxu1 %v105_v46  ;;  %2179 = vmatprep.subr.mxu0 %v414_v47  ;;  %v390_v44 = vld [vmem:[%s4239_s2 + $0x510] sm:$0xff]  ;;  %v357_v46 = vld [vmem:[%s4239_s2 + $0x408] sm:$0xff]  ;;  %v219_v47 = vld [vmem:[%s4240_s0 + $0x638] sm:$0x3] }
  0x82   :  { %1019 = vmatmul.mubr.f32.gmra.mxu1 %v104_v48  ;;  %1148 = vmatprep.mubr.f32.mxu0 %v107_v49  ;;  %v216_v48 = vld [vmem:[%s4240_s0 + $0x620] sm:$0x3]  ;;  %v405_v49 = vld [vmem:[%s4239_s2 + $0x588] sm:$0xff] }
  0x83   :  { %2110 = vmatprep.subr.mxu1 %v381_v50  ;;  %2180 = vmatpush3.msra.mxu0 %v398_v51  ;;  %v218_v50 = vld [vmem:[%s4240_s0 + $0x630] sm:$0x3]  ;;  %v372_v51 = vld [vmem:[%s4239_s2 + $0x480] sm:$0xff] }
  0x84   :  { %1149 = vmatmul.mubr.f32.gmra.mxu0 %v106_v52  ;;  %2111 = vmatpush3.msra.mxu1 %v365_v53  ;;  %v389_v52 = vld [vmem:[%s4239_s2 + $0x508] sm:$0xff]  ;;  %v356_v53 = vld [vmem:[%s4239_s2 + $0x400] sm:$0xff] }
  0x85   :  { %2181 = vmatprep.subr.mxu0 %v413_v54  ;;  %1023 = vmatprep.mubr.f32.mxu1 %v121_v55  ;;  %v29_v54 = vld [vmem:[%s4240_s0 + $0x48] sm:$0xff]  ;;  %v404_v55 = vld [vmem:[%s4239_s2 + $0x580] sm:$0xff] }
  0x86   :  { %2112 = vmatprep.subr.mxu1 %v380_v56  ;;  %2182 = vmatpush3.msra.mxu0 %v397_v57  ;;  %v28_v56 = vld [vmem:[%s4240_s0 + $0x40] sm:$0xff] }
  0x87   :  { %1024 = vmatmul.mubr.f32.gmra.mxu1 %v120_v58  ;;  %1153 = vmatprep.mubr.f32.mxu0 %v123_v59  ;;  %v388_v57 = vld [vmem:[%s4239_s2 + $0x500] sm:$0xff]  ;;  %v31_v58 = vld [vmem:[%s4240_s0 + $0x58] sm:$0xff] }
  0x88   :  { %2113 = vmatpush3.msra.mxu1 %v364_v60  ;;  %1154 = vmatmul.mubr.f32.gmra.mxu0 %v122_v61  ;;  %v451_v59 = vld [vmem:[%s4239_s2 + $0x6f8] sm:$0xff]  ;;  %v30_v60 = vld [vmem:[%s4240_s0 + $0x50] sm:$0xff] }
  0x89   :  { %2183 = vmatprep.subr.mxu0 %v412_v62  ;;  %2114 = vmatprep.subr.mxu1 %v379_v63  ;;  %v435_v61 = vld [vmem:[%s4239_s2 + $0x678] sm:$0xff]  ;;  %v45_v63 = vld [vmem:[%s4240_s0 + $0xc8] sm:$0xff] }
  0x8a   :  { %2184 = vmatpush3.msra.mxu0 %v396_v1  ;;  %1028 = vmatprep.mubr.f32.mxu1 %v137_v2  ;;  %v483_v62 = vld [vmem:[%s4239_s2 + $0x7f8] sm:$0xff]  ;;  %v44_v2 = vld [vmem:[%s4240_s0 + $0xc0] sm:$0xff] }
  0x8b   :  { %2115 = vmatpush3.msra.mxu1 %v363_v3  ;;  %1158 = vmatprep.mubr.f32.mxu0 %v139_v4  ;;  %v467_v1 = vld [vmem:[%s4239_s2 + $0x778] sm:$0xff]  ;;  %v450_v4 = vld [vmem:[%s4239_s2 + $0x6f0] sm:$0xff] }
  0x8c   :  { %1029 = vmatmul.mubr.f32.gmra.mxu1 %v136_v5  ;;  %2185 = vmatprep.subr.mxu0 %v411_v6  ;;  %v47_v3 = vld [vmem:[%s4240_s0 + $0xd8] sm:$0xff]  ;;  %v46_v5 = vld [vmem:[%s4240_s0 + $0xd0] sm:$0xff] }
  0x8d   :  { %1159 = vmatmul.mubr.f32.gmra.mxu0 %v138_v7  ;;  %2116 = vmatprep.subr.mxu1 %v378_v8  ;;  %v434_v6 = vld [vmem:[%s4239_s2 + $0x670] sm:$0xff]  ;;  %v61_v8 = vld [vmem:[%s4240_s0 + $0x148] sm:$0xff] }
  0x8e   :  { %2186 = vmatpush3.msra.mxu0 %v395_v9  ;;  %1033 = vmatprep.mubr.f32.mxu1 %v153_v10  ;;  %v482_v7 = vld [vmem:[%s4239_s2 + $0x7f0] sm:$0xff]  ;;  %v449_v9 = vld [vmem:[%s4239_s2 + $0x6e8] sm:$0xff] }
  0x8f   :  { %2117 = vmatpush3.msra.mxu1 %v362_v11  ;;  %1163 = vmatprep.mubr.f32.mxu0 %v155_v12  ;;  %v466_v10 = vld [vmem:[%s4239_s2 + $0x770] sm:$0xff]  ;;  %v60_v11 = vld [vmem:[%s4240_s0 + $0x140] sm:$0xff]  ;;  %v63_v12 = vld [vmem:[%s4240_s0 + $0x158] sm:$0xff] }
  0x90   :  { %1034 = vmatmul.mubr.f32.gmra.mxu1 %v152_v13  ;;  %2187 = vmatprep.subr.mxu0 %v410_v14  ;;  %v433_v13 = vld [vmem:[%s4239_s2 + $0x668] sm:$0xff]  ;;  %v62_v14 = vld [vmem:[%s4240_s0 + $0x150] sm:$0xff] }
  0x91   :  { %1164 = vmatmul.mubr.f32.gmra.mxu0 %v154_v0  ;;  %2118 = vmatprep.subr.mxu1 %v377_v15  ;;  %v481_v0 = vld [vmem:[%s4239_s2 + $0x7e8] sm:$0xff]  ;;  %v448_v15 = vld [vmem:[%s4239_s2 + $0x6e0] sm:$0xff] }
  0x92   :  { %2188 = vmatpush3.msra.mxu0 %v394_v16  ;;  %2119 = vmatpush3.msra.mxu1 %v361_v17  ;;  %v465_v16 = vld [vmem:[%s4239_s2 + $0x768] sm:$0xff] }
  0x93   :  { %1038 = vmatprep.mubr.f32.mxu1 %v169_v18  ;;  %2189 = vmatprep.subr.mxu0 %v409_v19  ;;  %v77_v17 = vld [vmem:[%s4240_s0 + $0x1c8] sm:$0xff]  ;;  %v432_v18 = vld [vmem:[%s4239_s2 + $0x660] sm:$0xff]  ;;  %v79_v19 = vld [vmem:[%s4240_s0 + $0x1d8] sm:$0xff] }
  0x94   :  { %1039 = vmatmul.mubr.f32.gmra.mxu1 %v168_v20  ;;  %1168 = vmatprep.mubr.f32.mxu0 %v171_v21  ;;  %v76_v20 = vld [vmem:[%s4240_s0 + $0x1c0] sm:$0xff] }
  0x95   :  { %2120 = vmatprep.subr.mxu1 %v376_v22  ;;  %2190 = vmatpush3.msra.mxu0 %v393_v23  ;;  %v480_v21 = vld [vmem:[%s4239_s2 + $0x7e0] sm:$0xff]  ;;  %v78_v22 = vld [vmem:[%s4240_s0 + $0x1d0] sm:$0xff]  ;;  %v447_v23 = vld [vmem:[%s4239_s2 + $0x6d8] sm:$0xff] }
  0x96   :  { %1169 = vmatmul.mubr.f32.gmra.mxu0 %v170_v24  ;;  %2121 = vmatpush3.msra.mxu1 %v360_v25  ;;  %v464_v24 = vld [vmem:[%s4239_s2 + $0x760] sm:$0xff]  ;;  %v431_v25 = vld [vmem:[%s4239_s2 + $0x658] sm:$0xff] }
  0x97   :  { %2191 = vmatprep.subr.mxu0 %v408_v26  ;;  %1043 = vmatprep.mubr.f32.mxu1 %v185_v27  ;;  %v93_v26 = vld [vmem:[%s4240_s0 + $0x248] sm:$0xff]  ;;  %v479_v27 = vld [vmem:[%s4239_s2 + $0x7d8] sm:$0xff] }
  0x98   :  { %2122 = vmatprep.subr.mxu1 %v375_v28  ;;  %2192 = vmatpush3.msra.mxu0 %v392_v29  ;;  %v92_v28 = vld [vmem:[%s4240_s0 + $0x240] sm:$0xff]  ;;  %v95_v29 = vld [vmem:[%s4240_s0 + $0x258] sm:$0xff] }
  0x99   :  { %1044 = vmatmul.mubr.f32.gmra.mxu1 %v184_v30  ;;  %1173 = vmatprep.mubr.f32.mxu0 %v187_v31  ;;  %v463_v30 = vld [vmem:[%s4239_s2 + $0x758] sm:$0xff]  ;;  %v446_v31 = vld [vmem:[%s4239_s2 + $0x6d0] sm:$0xff] }
  0x9a   :  { %2123 = vmatpush3.msra.mxu1 %v359_v32  ;;  %1174 = vmatmul.mubr.f32.gmra.mxu0 %v186_v33  ;;  %v94_v32 = vld [vmem:[%s4240_s0 + $0x250] sm:$0xff] }
  0x9b   :  { %2193 = vmatprep.subr.mxu0 %v407_v34  ;;  %1048 = vmatprep.mubr.f32.mxu1 %v201_v35  ;;  %v430_v33 = vld [vmem:[%s4239_s2 + $0x650] sm:$0xff]  ;;  %v109_v34 = vld [vmem:[%s4240_s0 + $0x2c8] sm:$0xff] }
  0x9c   :  { %2194 = vmatpush3.msra.mxu0 %v391_v36  ;;  %2124 = vmatprep.subr.mxu1 %v374_v37  ;;  %v478_v35 = vld [vmem:[%s4239_s2 + $0x7d0] sm:$0xff]  ;;  %v108_v36 = vld [vmem:[%s4240_s0 + $0x2c0] sm:$0xff]  ;;  %v111_v37 = vld [vmem:[%s4240_s0 + $0x2d8] sm:$0xff] }
  0x9d   :  { %1049 = vmatmul.mubr.f32.gmra.mxu1 %v200_v38  ;;  %1178 = vmatprep.mubr.f32.mxu0 %v203_v39  ;;  %v445_v38 = vld [vmem:[%s4239_s2 + $0x6c8] sm:$0xff]  ;;  %v462_v39 = vld [vmem:[%s4239_s2 + $0x750] sm:$0xff] }
  0x9e   :  { %2125 = vmatpush3.msra.mxu1 %v358_v40  ;;  %1179 = vmatmul.mubr.f32.gmra.mxu0 %v202_v41  ;;  %v110_v40 = vld [vmem:[%s4240_s0 + $0x2d0] sm:$0xff]  ;;  %v429_v41 = vld [vmem:[%s4239_s2 + $0x648] sm:$0xff] }
  0x9f   :  { %2195 = vmatprep.subr.mxu0 %v406_v42  ;;  %2126 = vmatprep.subr.mxu1 %v373_v43  ;;  %v477_v42 = vld [vmem:[%s4239_s2 + $0x7c8] sm:$0xff] }
  0xa0   :  { %2196 = vmatpush3.msra.mxu0 %v390_v44  ;;  %1053 = vmatprep.mubr.f32.mxu1 %v217_v45  ;;  %v125_v43 = vld [vmem:[%s4240_s0 + $0x348] sm:$0xff]  ;;  %v444_v44 = vld [vmem:[%s4239_s2 + $0x6c0] sm:$0xff] }
  0xa1   :  { %2127 = vmatpush3.msra.mxu1 %v357_v46  ;;  %1183 = vmatprep.mubr.f32.mxu0 %v219_v47  ;;  %v461_v45 = vld [vmem:[%s4239_s2 + $0x748] sm:$0xff]  ;;  %v124_v46 = vld [vmem:[%s4240_s0 + $0x340] sm:$0xff]  ;;  %v127_v47 = vld [vmem:[%s4240_s0 + $0x358] sm:$0xff] }
  0xa2   :  { %1054 = vmatmul.mubr.f32.gmra.mxu1 %v216_v48  ;;  %2197 = vmatprep.subr.mxu0 %v405_v49  ;;  %v428_v48 = vld [vmem:[%s4239_s2 + $0x640] sm:$0xff]  ;;  %v126_v49 = vld [vmem:[%s4240_s0 + $0x350] sm:$0xff] }
  0xa3   :  { %1184 = vmatmul.mubr.f32.gmra.mxu0 %v218_v50  ;;  %2128 = vmatprep.subr.mxu1 %v372_v51  ;;  %v476_v50 = vld [vmem:[%s4239_s2 + $0x7c0] sm:$0xff]  ;;  %v443_v51 = vld [vmem:[%s4239_s2 + $0x6b8] sm:$0xff] }
  0xa4   :  { %2198 = vmatpush3.msra.mxu0 %v389_v52  ;;  %2129 = vmatpush3.msra.mxu1 %v356_v53  ;;  %v460_v52 = vld [vmem:[%s4239_s2 + $0x740] sm:$0xff]  ;;  %v141_v53 = vld [vmem:[%s4240_s0 + $0x3c8] sm:$0xff] }
  0xa5   :  { %1253 = vmatprep.mubr.f32.mxu1 %v29_v54  ;;  %2199 = vmatprep.subr.mxu0 %v404_v55  ;;  %v427_v54 = vld [vmem:[%s4239_s2 + $0x638] sm:$0xff] }
  0xa6   :  { %1254 = vmatmul.mubr.f32.vlgmr.msra.gmra.mxu1 %v28_v56  ;;  %2200 = vmatpush3.msra.mxu0 %v388_v57  ;;  %v143_v55 = vld [vmem:[%s4240_s0 + $0x3d8] sm:$0xff]  ;;  %v140_v56 = vld [vmem:[%s4240_s0 + $0x3c0] sm:$0xff] }
  0xa7   :  { %1383 = vmatprep.mubr.f32.mxu0 %v31_v58  ;;  %2240 = vmatprep.subr.mxu1 %v451_v59  ;;  %v475_v57 = vld [vmem:[%s4239_s2 + $0x7b8] sm:$0xff]  ;;  %v142_v58 = vld [vmem:[%s4240_s0 + $0x3d0] sm:$0xff] }
  0xa8   :  { %1384 = vmatmul.mubr.f32.vlgmr.msra.gmra.mxu0 %v30_v60  ;;  %2241 = vmatpush3.msra.mxu1 %v435_v61  ;;  %v442_v59 = vld [vmem:[%s4239_s2 + $0x6b0] sm:$0xff]  ;;  %v459_v60 = vld [vmem:[%s4239_s2 + $0x738] sm:$0xff]  ;;  %v157_v61 = vld [vmem:[%s4240_s0 + $0x448] sm:$0xff] }
  0xa9   :  { %2311 = vmatprep.subr.mxu0 %v483_v62  ;;  %1258 = vmatprep.mubr.f32.mxu1 %v45_v63  ;;  %v426_v62 = vld [vmem:[%s4239_s2 + $0x630] sm:$0xff]  ;;  %v159_v63 = vld [vmem:[%s4240_s0 + $0x458] sm:$0xff] }
  0xaa   :  { %2312 = vmatpush3.msra.mxu0 %v467_v1  ;;  %1259 = vmatmul.mubr.f32.gmra.mxu1 %v44_v2  ;;  %v156_v2 = vld [vmem:[%s4240_s0 + $0x440] sm:$0xff] }
  0xab   :  { %1388 = vmatprep.mubr.f32.mxu0 %v47_v3  ;;  %2242 = vmatprep.subr.mxu1 %v450_v4  ;;  %v474_v3 = vld [vmem:[%s4239_s2 + $0x7b0] sm:$0xff] }
  0xac   :  { %1389 = vmatmul.mubr.f32.gmra.mxu0 %v46_v5  ;;  %2243 = vmatpush3.msra.mxu1 %v434_v6  ;;  %v158_v5 = vld [vmem:[%s4240_s0 + $0x450] sm:$0xff]  ;;  %v441_v6 = vld [vmem:[%s4239_s2 + $0x6a8] sm:$0xff] }
  0xad   :  { %2313 = vmatprep.subr.mxu0 %v482_v7  ;;  %1263 = vmatprep.mubr.f32.mxu1 %v61_v8  ;;  %v458_v8 = vld [vmem:[%s4239_s2 + $0x730] sm:$0xff] }
  0xae   :  { %2244 = vmatprep.subr.mxu1 %v449_v9  ;;  %2314 = vmatpush3.msra.mxu0 %v466_v10  ;;  %v425_v9 = vld [vmem:[%s4239_s2 + $0x628] sm:$0xff] }
  0xaf   :  { %1264 = vmatmul.mubr.f32.gmra.mxu1 %v60_v11  ;;  %1393 = vmatprep.mubr.f32.mxu0 %v63_v12  ;;  %v173_v11 = vld [vmem:[%s4240_s0 + $0x4c8] sm:$0xff] }
  0xb0   :  { %2245 = vmatpush3.msra.mxu1 %v433_v13  ;;  %1394 = vmatmul.mubr.f32.gmra.mxu0 %v62_v14  ;;  %v473_v12 = vld [vmem:[%s4239_s2 + $0x7a8] sm:$0xff]  ;;  %v172_v13 = vld [vmem:[%s4240_s0 + $0x4c0] sm:$0xff]  ;;  %v175_v14 = vld [vmem:[%s4240_s0 + $0x4d8] sm:$0xff] }
  0xb1   :  { %2315 = vmatprep.subr.mxu0 %v481_v0  ;;  %2246 = vmatprep.subr.mxu1 %v448_v15  ;;  %v440_v0 = vld [vmem:[%s4239_s2 + $0x6a0] sm:$0xff]  ;;  %v457_v15 = vld [vmem:[%s4239_s2 + $0x728] sm:$0xff] }
  0xb2   :  { %2316 = vmatpush3.msra.mxu0 %v465_v16  ;;  %1268 = vmatprep.mubr.f32.mxu1 %v77_v17  ;;  %v174_v17 = vld [vmem:[%s4240_s0 + $0x4d0] sm:$0xff] }
  0xb3   :  { %2247 = vmatpush3.msra.mxu1 %v432_v18  ;;  %1398 = vmatprep.mubr.f32.mxu0 %v79_v19  ;;  %v424_v18 = vld [vmem:[%s4239_s2 + $0x620] sm:$0xff] }
  0xb4   :  { %1269 = vmatmul.mubr.f32.gmra.mxu1 %v76_v20  ;;  %2317 = vmatprep.subr.mxu0 %v480_v21  ;;  %v472_v19 = vld [vmem:[%s4239_s2 + $0x7a0] sm:$0xff]  ;;  %v189_v20 = vld [vmem:[%s4240_s0 + $0x548] sm:$0xff] }
  0xb5   :  { %1399 = vmatmul.mubr.f32.gmra.mxu0 %v78_v22  ;;  %2248 = vmatprep.subr.mxu1 %v447_v23  ;;  %v439_v22 = vld [vmem:[%s4239_s2 + $0x698] sm:$0xff]  ;;  %v456_v23 = vld [vmem:[%s4239_s2 + $0x720] sm:$0xff] }
  0xb6   :  { %2318 = vmatpush3.msra.mxu0 %v464_v24  ;;  %2249 = vmatpush3.msra.mxu1 %v431_v25  ;;  %v188_v24 = vld [vmem:[%s4240_s0 + $0x540] sm:$0xff]  ;;  %v191_v25 = vld [vmem:[%s4240_s0 + $0x558] sm:$0xff] }
  0xb7   :  { %1273 = vmatprep.mubr.f32.mxu1 %v93_v26  ;;  %2319 = vmatprep.subr.mxu0 %v479_v27  ;;  %v423_v26 = vld [vmem:[%s4239_s2 + $0x618] sm:$0xff]  ;;  %v190_v27 = vld [vmem:[%s4240_s0 + $0x550] sm:$0xff] }
  0xb8   :  { %1274 = vmatmul.mubr.f32.gmra.mxu1 %v92_v28  ;;  %1403 = vmatprep.mubr.f32.mxu0 %v95_v29  ;;  %v471_v29 = vld [vmem:[%s4239_s2 + $0x798] sm:$0xff] }
  0xb9   :  { %2320 = vmatpush3.msra.mxu0 %v463_v30  ;;  %2250 = vmatprep.subr.mxu1 %v446_v31  ;;  %v205_v30 = vld [vmem:[%s4240_s0 + $0x5c8] sm:$0xff]  ;;  %v455_v31 = vld [vmem:[%s4239_s2 + $0x718] sm:$0xff] }
  0xba   :  { %1404 = vmatmul.mubr.f32.gmra.mxu0 %v94_v32  ;;  %2251 = vmatpush3.msra.mxu1 %v430_v33  ;;  %v438_v32 = vld [vmem:[%s4239_s2 + $0x690] sm:$0xff] }
  0xbb   :  { %1278 = vmatprep.mubr.f32.mxu1 %v109_v34  ;;  %2321 = vmatprep.subr.mxu0 %v478_v35  ;;  %v204_v34 = vld [vmem:[%s4240_s0 + $0x5c0] sm:$0xff]  ;;  %v207_v35 = vld [vmem:[%s4240_s0 + $0x5d8] sm:$0xff] }
  0xbc   :  { %1279 = vmatmul.mubr.f32.gmra.mxu1 %v108_v36  ;;  %1408 = vmatprep.mubr.f32.mxu0 %v111_v37  ;;  %v422_v36 = vld [vmem:[%s4239_s2 + $0x610] sm:$0xff] }
  0xbd   :  { %2252 = vmatprep.subr.mxu1 %v445_v38  ;;  %2322 = vmatpush3.msra.mxu0 %v462_v39  ;;  %v206_v37 = vld [vmem:[%s4240_s0 + $0x5d0] sm:$0xff]  ;;  %v437_v39 = vld [vmem:[%s4239_s2 + $0x688] sm:$0xff] }
  0xbe   :  { %1409 = vmatmul.mubr.f32.gmra.mxu0 %v110_v40  ;;  %2253 = vmatpush3.msra.mxu1 %v429_v41  ;;  %v470_v38 = vld [vmem:[%s4239_s2 + $0x790] sm:$0xff] }
  0xbf   :  { %2323 = vmatprep.subr.mxu0 %v477_v42  ;;  %1283 = vmatprep.mubr.f32.mxu1 %v125_v43  ;;  %v454_v41 = vld [vmem:[%s4239_s2 + $0x710] sm:$0xff]  ;;  %v221_v42 = vld [vmem:[%s4240_s0 + $0x648] sm:$0x3] }
  0xc0   :  { %2254 = vmatprep.subr.mxu1 %v444_v44  ;;  %2324 = vmatpush3.msra.mxu0 %v461_v45  ;;  %v421_v43 = vld [vmem:[%s4239_s2 + $0x608] sm:$0xff]  ;;  %v223_v44 = vld [vmem:[%s4240_s0 + $0x658] sm:$0x3] }
  0xc1   :  { %1284 = vmatmul.mubr.f32.gmra.mxu1 %v124_v46  ;;  %1413 = vmatprep.mubr.f32.mxu0 %v127_v47  ;;  %v220_v46 = vld [vmem:[%s4240_s0 + $0x640] sm:$0x3]  ;;  %v469_v47 = vld [vmem:[%s4239_s2 + $0x788] sm:$0xff] }
  0xc2   :  { %2255 = vmatpush3.msra.mxu1 %v428_v48  ;;  %1414 = vmatmul.mubr.f32.gmra.mxu0 %v126_v49  ;;  %v222_v49 = vld [vmem:[%s4240_s0 + $0x650] sm:$0x3] }
  0xc3   :  { %2325 = vmatprep.subr.mxu0 %v476_v50  ;;  %2256 = vmatprep.subr.mxu1 %v443_v51  ;;  %v436_v50 = vld [vmem:[%s4239_s2 + $0x680] sm:$0xff]  ;;  %v453_v51 = vld [vmem:[%s4239_s2 + $0x708] sm:$0xff] }
  0xc4   :  { %2326 = vmatpush3.msra.mxu0 %v460_v52  ;;  %1288 = vmatprep.mubr.f32.mxu1 %v141_v53  ;;  %v420_v52 = vld [vmem:[%s4239_s2 + $0x600] sm:$0xff] }
  0xc5   :  { %2257 = vmatpush3.msra.mxu1 %v427_v54  ;;  %1418 = vmatprep.mubr.f32.mxu0 %v143_v55  ;;  %v33_v54 = vld [vmem:[%s4240_s0 + $0x68] sm:$0xff]  ;;  %v468_v55 = vld [vmem:[%s4239_s2 + $0x780] sm:$0xff] }
  0xc6   :  { %1289 = vmatmul.mubr.f32.gmra.mxu1 %v140_v56  ;;  %2327 = vmatprep.subr.mxu0 %v475_v57  ;;  %v3655_v1 = vpop.f32.mrf.mxu1  ;;  %v32_v57 = vld [vmem:[%s4240_s0 + $0x60] sm:$0xff] }
  0xc7   :  { %1419 = vmatmul.mubr.f32.gmra.mxu0 %v142_v58  ;;  %2258 = vmatprep.subr.mxu1 %v442_v59  ;;  %v3663_v4 = vpop.f32.mrf.mxu0  ;;  %v452_v58 = vld [vmem:[%s4239_s2 + $0x700] sm:$0xff]  ;;  %v35_v59 = vld [vmem:[%s4240_s0 + $0x78] sm:$0xff] }
  0xc8   :  { %2328 = vmatpush3.msra.mxu0 %v459_v60  ;;  %1293 = vmatprep.mubr.f32.mxu1 %v157_v61  ;;  %v2412_v7 = vpop.f32.mrf.mxu1  ;;  %v49_v60 = vld [vmem:[%s4240_s0 + $0xe8] sm:$0xff] }
  0xc9   :  { %2259 = vmatpush3.msra.mxu1 %v426_v62  ;;  %1423 = vmatprep.mubr.f32.mxu0 %v159_v63  ;;  %v2388_v10 = vpop.f32.mrf.mxu0  ;;  %v34_v62 = vld [vmem:[%s4240_s0 + $0x70] sm:$0xff] }
  0xca   :  { %1294 = vmatmul.mubr.f32.gmra.mxu1 %v156_v2  ;;  %2329 = vmatprep.subr.mxu0 %v474_v3  ;;  %v51_v2 = vld [vmem:[%s4240_s0 + $0xf8] sm:$0xff]  ;;  %v48_v3 = vld [vmem:[%s4240_s0 + $0xe0] sm:$0xff] }
  0xcb   :  { %1424 = vmatmul.mubr.f32.gmra.mxu0 %v158_v5  ;;  %2260 = vmatprep.subr.mxu1 %v441_v6  ;;  %v65_v6 = vld [vmem:[%s4240_s0 + $0x168] sm:$0xff] }
  0xcc   :  { %2330 = vmatpush3.msra.mxu0 %v458_v8  ;;  %2261 = vmatpush3.msra.mxu1 %v425_v9  ;;  %v3695_v16 = vpop.f32.mrf.mxu0  ;;  %v50_v8 = vld [vmem:[%s4240_s0 + $0xf0] sm:$0xff]  ;;  %v67_v9 = vld [vmem:[%s4240_s0 + $0x178] sm:$0xff] }
  0xcd   :  { %1298 = vmatprep.mubr.f32.mxu1 %v173_v11  ;;  %2331 = vmatprep.subr.mxu0 %v473_v12  ;;  %v64_v11 = vld [vmem:[%s4240_s0 + $0x160] sm:$0xff] }
  0xce   :  { %1299 = vmatmul.mubr.f32.gmra.mxu1 %v172_v13  ;;  %1428 = vmatprep.mubr.f32.mxu0 %v175_v14  ;;  %v2391_v21 = vpop.f32.mrf.mxu0  ;;  %v81_v13 = vld [vmem:[%s4240_s0 + $0x1e8] sm:$0xff]  ;;  %v66_v14 = vld [vmem:[%s4240_s0 + $0x170] sm:$0xff] }
  0xcf   :  { %2262 = vmatprep.subr.mxu1 %v440_v0  ;;  %2332 = vmatpush3.msra.mxu0 %v457_v15  ;;  %v83_v15 = vld [vmem:[%s4240_s0 + $0x1f8] sm:$0xff]  ;;  %v82_v21 = vld [vmem:[%s4240_s0 + $0x1f0] sm:$0xff] }
  0xd0   :  { %1429 = vmatmul.mubr.f32.gmra.mxu0 %v174_v17  ;;  %2263 = vmatpush3.msra.mxu1 %v424_v18  ;;  %v80_v18 = vld [vmem:[%s4240_s0 + $0x1e0] sm:$0xff] }
  0xd1   :  { %2333 = vmatprep.subr.mxu0 %v472_v19  ;;  %1303 = vmatprep.mubr.f32.mxu1 %v189_v20  ;;  %v3727_v28 = vpop.f32.mrf.mxu0  ;;  %v97_v19 = vld [vmem:[%s4240_s0 + $0x268] sm:$0xff] }
  0xd2   :  { %2264 = vmatprep.subr.mxu1 %v439_v22  ;;  %2334 = vmatpush3.msra.mxu0 %v456_v23  ;;  %v99_v23 = vld [vmem:[%s4240_s0 + $0x278] sm:$0xff] }
  0xd3   :  { %1304 = vmatmul.mubr.f32.gmra.mxu1 %v188_v24  ;;  %1433 = vmatprep.mubr.f32.mxu0 %v191_v25  ;;  %v2394_v33 = vpop.f32.mrf.mxu0  ;;  %v96_v24 = vld [vmem:[%s4240_s0 + $0x260] sm:$0xff] }
  0xd4   :  { %2265 = vmatpush3.msra.mxu1 %v423_v26  ;;  %1434 = vmatmul.mubr.f32.gmra.mxu0 %v190_v27  ;;  %v113_v26 = vld [vmem:[%s4240_s0 + $0x2e8] sm:$0xff] }
  0xd5   :  { %2335 = vmatprep.subr.mxu0 %v471_v29  ;;  %1308 = vmatprep.mubr.f32.mxu1 %v205_v30  ;;  %v98_v29 = vld [vmem:[%s4240_s0 + $0x270] sm:$0xff]  ;;  %v115_v30 = vld [vmem:[%s4240_s0 + $0x2f8] sm:$0xff]  ;;  %v129_v33 = vld [vmem:[%s4240_s0 + $0x368] sm:$0xff] }
  0xd6   :  { %2336 = vmatpush3.msra.mxu0 %v455_v31  ;;  %2266 = vmatprep.subr.mxu1 %v438_v32  ;;  %v3759_v40 = vpop.f32.mrf.mxu0  ;;  %v112_v32 = vld [vmem:[%s4240_s0 + $0x2e0] sm:$0xff] }
  0xd7   :  { %1309 = vmatmul.mubr.f32.gmra.mxu1 %v204_v34  ;;  %1438 = vmatprep.mubr.f32.mxu0 %v207_v35  ;;  %v114_v35 = vld [vmem:[%s4240_s0 + $0x2f0] sm:$0xff] }
  0xd8   :  { %2267 = vmatpush3.msra.mxu1 %v422_v36  ;;  %1439 = vmatmul.mubr.f32.gmra.mxu0 %v206_v37  ;;  %v2397_v45 = vpop.f32.mrf.mxu0  ;;  %v131_v36 = vld [vmem:[%s4240_s0 + $0x378] sm:$0xff] }
  0xd9   :  { %2337 = vmatprep.subr.mxu0 %v470_v38  ;;  %2268 = vmatprep.subr.mxu1 %v437_v39  ;;  %v3779_v48 = vpop.f32.mrf.mxu1  ;;  %v128_v39 = vld [vmem:[%s4240_s0 + $0x360] sm:$0xff]  ;;  %v130_v45 = vld [vmem:[%s4240_s0 + $0x370] sm:$0xff] }
  0xda   :  { %2338 = vmatpush3.msra.mxu0 %v454_v41  ;;  %1313 = vmatprep.mubr.f32.mxu1 %v221_v42  ;;  %v145_v42 = vld [vmem:[%s4240_s0 + $0x3e8] sm:$0xff] }
  0xdb   :  { %2269 = vmatpush3.msra.mxu1 %v421_v43  ;;  %1443 = vmatprep.mubr.f32.mxu0 %v223_v44  ;;  %v2415_v53 = vpop.f32.mrf.mxu1 }
  0xdc   :  { %1314 = vmatmul.mubr.f32.gmra.mxu1 %v220_v46  ;;  %2339 = vmatprep.subr.mxu0 %v469_v47  ;;  %v3799_v56 = vpop.f32.mrf.mxu0 }
  0xdd   :  { %1444 = vmatmul.mubr.f32.gmra.mxu0 %v222_v49  ;;  %2270 = vmatprep.subr.mxu1 %v436_v50  ;;  %v147_v49 = vld [vmem:[%s4240_s0 + $0x3f8] sm:$0xff] }
  0xde   :  { %2340 = vmatpush3.msra.mxu0 %v453_v51  ;;  %2271 = vmatpush3.msra.mxu1 %v420_v52  ;;  %v2400_v61 = vpop.f32.mrf.mxu0  ;;  %v144_v52 = vld [vmem:[%s4240_s0 + $0x3e0] sm:$0xff] }
  0xdf   :  { %1513 = vmatprep.mubr.f32.mxu1 %v33_v54  ;;  %2341 = vmatprep.subr.mxu0 %v468_v55  ;;  %v3816_v63 = vpop.f32.mrf.mxu1  ;;  %v163_v61 = vld [vmem:[%s4240_s0 + $0x478] sm:$0xff] }
  0xe0   :  { %1514 = vmatmul.mubr.f32.vlgmr.msra.gmra.mxu1 %v32_v57  ;;  %2342 = vmatpush3.msra.mxu0 %v452_v58  ;;  %v146_v57 = vld [vmem:[%s4240_s0 + $0x3f0] sm:$0xff] }
  0xe1   :  { %1643 = vmatprep.mubr.f32.mxu0 %v35_v59  ;;  %1518 = vmatprep.mubr.f32.mxu1 %v49_v60  ;;  %v2418_v5 = vpop.f32.mrf.mxu1 }
  0xe2   :  { %1644 = vmatmul.mubr.f32.vlgmr.msra.gmra.mxu0 %v34_v62  ;;  %v3827_v7 = vpop.f32.mrf.mxu0 }
  0xe3   :  { %1648 = vmatprep.mubr.f32.mxu0 %v51_v2  ;;  %v160_v2 = vld [vmem:[%s4240_s0 + $0x460] sm:$0xff] }
  0xe4   :  { %1519 = vmatmul.mubr.f32.gmra.mxu1 %v48_v3  ;;  %v2403_v10 = vpop.f32.mrf.mxu0 }
  0xe5   :  { %1523 = vmatprep.mubr.f32.mxu1 %v65_v6  ;;  %v3838_v12 = vpop.f32.mrf.mxu1 }
  0xe6   :  { %1649 = vmatmul.mubr.f32.gmra.mxu0 %v50_v8 }
  0xe7   :  { %1653 = vmatprep.mubr.f32.mxu0 %v67_v9  ;;  %v2421_v0 = vpop.f32.mrf.mxu1  ;;  %v162_v9 = vld [vmem:[%s4240_s0 + $0x470] sm:$0xff] }
  0xe8   :  { %1524 = vmatmul.mubr.f32.gmra.mxu1 %v64_v11  ;;  %v3849_v17 = vpop.f32.mrf.mxu0  ;;  %v179_v11 = vld [vmem:[%s4240_s0 + $0x4f8] sm:$0xff]  ;;  %v176_v0 = vld [vmem:[%s4240_s0 + $0x4e0] sm:$0xff] }
  0xe9   :  { %1528 = vmatprep.mubr.f32.mxu1 %v81_v13 }
  0xea   :  { %1654 = vmatmul.mubr.f32.gmra.mxu0 %v66_v14  ;;  %v2406_v20 = vpop.f32.mrf.mxu0 }
  0xeb   :  { %1658 = vmatprep.mubr.f32.mxu0 %v83_v15  ;;  %v3860_v22 = vpop.f32.mrf.mxu1 }
  0xec   :  { %1529 = vmatmul.mubr.f32.gmra.mxu1 %v80_v18  ;;  %v193_v18 = vld [vmem:[%s4240_s0 + $0x568] sm:$0xff] }
  0xed   :  { %1533 = vmatprep.mubr.f32.mxu1 %v97_v19  ;;  %v2424_v25 = vpop.f32.mrf.mxu1 }
  0xee   :  { %1659 = vmatmul.mubr.f32.gmra.mxu0 %v82_v21  ;;  %v3871_v27 = vpop.f32.mrf.mxu0 }
  0xef   :  { %1663 = vmatprep.mubr.f32.mxu0 %v99_v23 }
  0xf0   :  { %1534 = vmatmul.mubr.f32.gmra.mxu1 %v96_v24  ;;  %v2409_v31 = vpop.f32.mrf.mxu0  ;;  %v195_v24 = vld [vmem:[%s4240_s0 + $0x578] sm:$0xff] }
  0xf1   :  { %1538 = vmatprep.mubr.f32.mxu1 %v113_v26  ;;  %v209_v31 = vld [vmem:[%s4240_s0 + $0x5e8] sm:$0xff] }
  0xf2   :  { %1664 = vmatmul.mubr.f32.gmra.mxu0 %v98_v29  ;;  %v1846_v34 = vpop.f32.mrf.mxu1  ;;  %v192_v29 = vld [vmem:[%s4240_s0 + $0x560] sm:$0xff] }
  0xf3   :  { %1668 = vmatprep.mubr.f32.mxu0 %v115_v30 }
  0xf4   :  { %1539 = vmatmul.mubr.f32.gmra.mxu1 %v112_v32  ;;  %v1917_v37 = vpop.f32.mrf.mxu0  ;;  %v1847_v38 = vpop.f32.mrf.mxu1 }
  0xf5   :  { %1543 = vmatprep.mubr.f32.mxu1 %v129_v33  ;;  %v1848_v41 = vadd.f32 %v1847_v38, %v1846_v34  ;;  %v194_v34 = vld [vmem:[%s4240_s0 + $0x570] sm:$0xff] }
  0xf6   :  { %1669 = vmatmul.mubr.f32.gmra.mxu0 %v114_v35  ;;  %v1918_v43 = vpop.f32.mrf.mxu0  ;;  %v1849_v44 = vpop.f32.mrf.mxu1 }
  0xf7   :  { %1673 = vmatprep.mubr.f32.mxu0 %v131_v36  ;;  %v736_v46 = vadd.f32 %v1848_v41, %v3663_v4  ;;  %v1919_v47 = vadd.f32 %v1918_v43, %v1917_v37  ;;  %v161_v4 = vld [vmem:[%s4240_s0 + $0x468] sm:$0xff] }
  0xf8   :  { %1544 = vmatmul.mubr.f32.gmra.mxu1 %v128_v39  ;;  %v1920_v50 = vpop.f32.mrf.mxu0  ;;  %v1850_v51 = vpop.f32.mrf.mxu1  ;;  %v208_v39 = vld [vmem:[%s4240_s0 + $0x5e0] sm:$0xff]  ;;  %v225_v43 = vld [vmem:[%s4240_s0 + $0x668] sm:$0x3] }
  0xf9   :  { %1548 = vmatprep.mubr.f32.mxu1 %v145_v42  ;;  %v3907_v53 = vadd.f32 %v1919_v47, %v736_v46  ;;  %v1851_v54 = vadd.f32 %v1850_v51, %v1849_v44  ;;  %v210_v46 = vld [vmem:[%s4240_s0 + $0x5f0] sm:$0xff]  ;;  %v224_v51 = vld [vmem:[%s4240_s0 + $0x660] sm:$0x3] }
  0xfa   :  { %1674 = vmatmul.mubr.f32.gmra.mxu0 %v130_v45  ;;  %v1921_v55 = vpop.f32.mrf.mxu0 }
  0xfb   :  { %1678 = vmatprep.mubr.f32.mxu0 %v147_v49  ;;  %v741_v58 = vadd.f32 %v1851_v54, %v3695_v16  ;;  %v1922_v59 = vadd.f32 %v1921_v55, %v1920_v50  ;;  %v1852_v60 = vpop.f32.mrf.mxu1  ;;  %v177_v16 = vld [vmem:[%s4240_s0 + $0x4e8] sm:$0xff] }
  0xfc   :  { %1549 = vmatmul.mubr.f32.gmra.mxu1 %v144_v52  ;;  %v1923_v62 = vpop.f32.mrf.mxu0 }
  0xfd   :  { %1553 = vmatprep.mubr.f32.mxu1 %v161_v4  ;;  %v3922_v3 = vadd.f32 %v1922_v59, %v741_v58  ;;  %v1853_v5 = vpop.f32.mrf.mxu1 }
  0xfe   :  { %1679 = vmatmul.mubr.f32.gmra.mxu0 %v146_v57  ;;  %v1854_v6 = vadd.f32 %v1853_v5, %v1852_v60  ;;  %v1924_v8 = vpop.f32.mrf.mxu0  ;;  %v226_v57 = vld [vmem:[%s4240_s0 + $0x670] sm:$0x3] }
  0xff   :  { %1683 = vmatprep.mubr.f32.mxu0 %v163_v61  ;;  %v1925_v10 = vadd.f32 %v1924_v8, %v1923_v62 }
 0x100   :  { %1554 = vmatmul.mubr.f32.gmra.mxu1 %v160_v2  ;;  %v746_v13 = vadd.f32 %v1854_v6, %v3727_v28  ;;  %v1855_v14 = vpop.f32.mrf.mxu1  ;;  %v178_v28 = vld [vmem:[%s4240_s0 + $0x4f0] sm:$0xff] }
 0x101   :  { %1558 = vmatprep.mubr.f32.mxu1 %v177_v16  ;;  %v1926_v15 = vpop.f32.mrf.mxu0 }
 0x102   :  { %1684 = vmatmul.mubr.f32.gmra.mxu0 %v162_v9  ;;  %v3940_v19 = vadd.f32 %v1925_v10, %v746_v13  ;;  %v1856_v20 = vpop.f32.mrf.mxu1 }
 0x103   :  { %1688 = vmatprep.mubr.f32.mxu0 %v179_v11  ;;  %v1857_v21 = vadd.f32 %v1856_v20, %v1855_v14  ;;  %v1927_v23 = vpop.f32.mrf.mxu0 }
 0x104   :  { %1559 = vmatmul.mubr.f32.gmra.mxu1 %v176_v0  ;;  %v1928_v25 = vadd.f32 %v1927_v23, %v1926_v15  ;;  %v1858_v26 = vpop.f32.mrf.mxu1 }
 0x105   :  { %1563 = vmatprep.mubr.f32.mxu1 %v193_v18  ;;  %v751_v30 = vadd.f32 %v1857_v21, %v3759_v40  ;;  %v211_v40 = vld [vmem:[%s4240_s0 + $0x5f8] sm:$0xff] }
 0x106   :  { %1689 = vmatmul.mubr.f32.gmra.mxu0 %v178_v28  ;;  %v1929_v32 = vpop.f32.mrf.mxu0  ;;  %v1859_v33 = vpop.f32.mrf.mxu1 }
 0x107   :  { %1693 = vmatprep.mubr.f32.mxu0 %v195_v24  ;;  %v3958_v35 = vadd.f32 %v1928_v25, %v751_v30  ;;  %v1860_v36 = vadd.f32 %v1859_v33, %v1858_v26 }
 0x108   :  { %1564 = vmatmul.mubr.f32.gmra.mxu1 %v192_v29  ;;  %v1930_v37 = vpop.f32.mrf.mxu0  ;;  %v1861_v38 = vpop.f32.mrf.mxu1 }
 0x109   :  { %1568 = vmatprep.mubr.f32.mxu1 %v209_v31  ;;  %v756_v41 = vadd.f32 %v1860_v36, %v3799_v56  ;;  %v1931_v42 = vadd.f32 %v1930_v37, %v1929_v32  ;;  %v227_v56 = vld [vmem:[%s4240_s0 + $0x678] sm:$0x3] }
 0x10a   :  { %1694 = vmatmul.mubr.f32.gmra.mxu0 %v194_v34  ;;  %v1932_v44 = vpop.f32.mrf.mxu0  ;;  %v1862_v45 = vpop.f32.mrf.mxu1 }
 0x10b   :  { %1698 = vmatprep.mubr.f32.mxu0 %v211_v40  ;;  %v3973_v47 = vadd.f32 %v1931_v42, %v756_v41  ;;  %v1863_v49 = vadd.f32 %v1862_v45, %v1861_v38 }
 0x10c   :  { %1569 = vmatmul.mubr.f32.gmra.mxu1 %v208_v39  ;;  %v1933_v50 = vpop.f32.mrf.mxu0 }
 0x10d   :  { %1573 = vmatprep.mubr.f32.mxu1 %v225_v43  ;;  %v761_v52 = vadd.f32 %v1863_v49, %v3827_v7  ;;  %v1934_v54 = vadd.f32 %v1933_v50, %v1932_v44  ;;  %v1864_v4 = vpop.f32.mrf.mxu1 }
 0x10e   :  { %1699 = vmatmul.mubr.f32.gmra.mxu0 %v210_v46  ;;  %v1935_v55 = vpop.f32.mrf.mxu0 }
 0x10f   :  { %1703 = vmatprep.mubr.f32.mxu0 %v227_v56  ;;  %v3985_v58 = vadd.f32 %v1934_v54, %v761_v52  ;;  %v1865_v59 = vpop.f32.mrf.mxu1 }
 0x110   :  { %1574 = vmatmul.mubr.f32.gmra.mxu1 %v224_v51  ;;  %v1866_v60 = vadd.f32 %v1865_v59, %v1864_v4  ;;  %v1936_v61 = vpop.f32.mrf.mxu0 }
 0x111   :  { %v1937_v62 = vadd.f32 %v1936_v61, %v1935_v55 }
 0x112   :  { %1704 = vmatmul.mubr.f32.gmra.mxu0 %v226_v57  ;;  %v766_v2 = vadd.f32 %v1866_v60, %v3849_v17  ;;  %v1867_v7 = vpop.f32.mrf.mxu1 }
 0x113   :  { %v1938_v5 = vpop.f32.mrf.mxu0 }
 0x114   :  { %v3988_v16 = vadd.f32 %v1937_v62, %v766_v2  ;;  %v1868_v6 = vpop.f32.mrf.mxu1 }
 0x115   :  { %v1869_v8 = vadd.f32 %v1868_v6, %v1867_v7  ;;  %v1939_v9 = vpop.f32.mrf.mxu0 }
 0x116   :  { %v1940_v10 = vadd.f32 %v1939_v9, %v1938_v5  ;;  %v1870_v11 = vpop.f32.mrf.mxu1 }
 0x117   :  { %v771_v13 = vadd.f32 %v1869_v8, %v3871_v27  ;;  %v1941_v14 = vpop.f32.mrf.mxu0 }
 0x118   :  { %v1871_v0 = vpop.f32.mrf.mxu1 }
 0x119   :  { %v3991_v15 = vadd.f32 %v1940_v10, %v771_v13  ;;  %v1872_v18 = vadd.f32 %v1871_v0, %v1870_v11  ;;  %v1942_v20 = vpop.f32.mrf.mxu0 }
 0x11a   :  { %v1943_v28 = vadd.f32 %v1942_v20, %v1941_v14  ;;  %v1873_v21 = vpop.f32.mrf.mxu1 }
 0x11b   :  { %v776_v17 = vadd.f32 %v1872_v18, %v3655_v1 }
 0x11c   :  { %v1944_v23 = vpop.f32.mrf.mxu0  ;;  %v1874_v24 = vpop.f32.mrf.mxu1 }
 0x11d   :  { %v3994_v25 = vadd.f32 %v1943_v28, %v776_v17  ;;  %v1875_v26 = vadd.f32 %v1874_v24, %v1873_v21 }
 0x11e   :  { %v1945_v29 = vpop.f32.mrf.mxu0 }
 0x11f   :  { %v781_v30 = vadd.f32 %v1875_v26, %v3779_v48  ;;  %v1946_v31 = vadd.f32 %v1945_v29, %v1944_v23  ;;  %v1876_v27 = vpop.f32.mrf.mxu1 }
 0x120   :  { %v1947_v32 = vpop.f32.mrf.mxu0 }
 0x121   :  { %v3997_v33 = vadd.f32 %v1946_v31, %v781_v30  ;;  %v1877_v34 = vpop.f32.mrf.mxu1 }
 0x122   :  { %v1878_v36 = vadd.f32 %v1877_v34, %v1876_v27  ;;  %v1948_v40 = vpop.f32.mrf.mxu0 }
 0x123   :  { %v1949_v37 = vadd.f32 %v1948_v40, %v1947_v32  ;;  %v1879_v38 = vpop.f32.mrf.mxu1 }
 0x124   :  { %v786_v1 = vadd.f32 %v1878_v36, %v3816_v63  ;;  %v1950_v39 = vpop.f32.mrf.mxu0 }
 0x125   :  { %v1880_v41 = vpop.f32.mrf.mxu1 }
 0x126   :  { %v4000_v42 = vadd.f32 %v1949_v37, %v786_v1  ;;  %v1881_v43 = vadd.f32 %v1880_v41, %v1879_v38  ;;  %v1951_v44 = vpop.f32.mrf.mxu0 }
 0x127   :  { %v1952_v45 = vadd.f32 %v1951_v44, %v1950_v39 }
 0x128   :  { %v791_v48 = vadd.f32 %v1881_v43, %v3838_v12  ;;  %v1882_v46 = vpop.f32.mrf.mxu1 }
 0x129   :  { %v1953_v49 = vpop.f32.mrf.mxu0 }
 0x12a   :  { %v4003_v56 = vadd.f32 %v1952_v45, %v791_v48  ;;  %v1883_v50 = vpop.f32.mrf.mxu1 }
 0x12b   :  { %v1884_v51 = vadd.f32 %v1883_v50, %v1882_v46  ;;  %v1954_v52 = vpop.f32.mrf.mxu0 }
 0x12c   :  { %v1955_v54 = vadd.f32 %v1954_v52, %v1953_v49  ;;  %v1988_v4 = vpop.f32.mrf.mxu1 }
 0x12d   :  { %v796_v63 = vadd.f32 %v1884_v51, %v3860_v22 }
 0x12e   :  { %v2059_v55 = vpop.f32.mrf.mxu0  ;;  %v1989_v57 = vpop.f32.mrf.mxu1 }
 0x12f   :  { %v4006_v59 = vadd.f32 %v1955_v54, %v796_v63  ;;  %v1990_v60 = vadd.f32 %v1989_v57, %v1988_v4 }
 0x130   :  { %v2060_v61 = vpop.f32.mrf.mxu0  ;;  %v1991_v62 = vpop.f32.mrf.mxu1 }
 0x131   :  { %v996_v12 = vadd.f32 %v1990_v60, %v3907_v53  ;;  %v2061_v2 = vadd.f32 %v2060_v61, %v2059_v55 }
 0x132   :  { %v2062_v7 = vpop.f32.mrf.mxu0  ;;  %v1992_v5 = vpop.f32.mrf.mxu1 }
 0x133   :  { %v4009_v6 = vadd.f32 %v2061_v2, %v996_v12  ;;  %v1993_v8 = vadd.f32 %v1992_v5, %v1991_v62 }
 0x134   :  { %v2063_v9 = vpop.f32.mrf.mxu0 }
 0x135   :  { %v1001_v10 = vadd.f32 %v1993_v8, %v3922_v3  ;;  %v2064_v11 = vadd.f32 %v2063_v9, %v2062_v7  ;;  %v1994_v22 = vpop.f32.mrf.mxu1 }
 0x136   :  { %v2065_v13 = vpop.f32.mrf.mxu0 }
 0x137   :  { %v4012_v14 = vadd.f32 %v2064_v11, %v1001_v10  ;;  %v1995_v0 = vpop.f32.mrf.mxu1 }
 0x138   :  { %v1996_v18 = vadd.f32 %v1995_v0, %v1994_v22  ;;  %v2066_v20 = vpop.f32.mrf.mxu0 }
 0x139   :  { %v2067_v28 = vadd.f32 %v2066_v20, %v2065_v13 }
 0x13a   :  { %v1006_v53 = vadd.f32 %v1996_v18, %v3940_v19  ;;  %v1997_v21 = vpop.f32.mrf.mxu1 }
 0x13b   :  { %v2068_v17 = vpop.f32.mrf.mxu0 }
 0x13c   :  { %v4015_v23 = vadd.f32 %v2067_v28, %v1006_v53  ;;  %v1998_v24 = vpop.f32.mrf.mxu1 }
 0x13d   :  { %v1999_v26 = vadd.f32 %v1998_v24, %v1997_v21  ;;  %v2069_v29 = vpop.f32.mrf.mxu0 }
 0x13e   :  { %v2070_v30 = vadd.f32 %v2069_v29, %v2068_v17  ;;  %v2000_v3 = vpop.f32.mrf.mxu1 }
 0x13f   :  { %v1011_v31 = vadd.f32 %v1999_v26, %v3958_v35 }
 0x140   :  { %v2071_v27 = vpop.f32.mrf.mxu0  ;;  %v2001_v32 = vpop.f32.mrf.mxu1 }
 0x141   :  { %v4018_v34 = vadd.f32 %v2070_v30, %v1011_v31  ;;  %v2002_v36 = vadd.f32 %v2001_v32, %v2000_v3 }
 0x142   :  { %v2072_v40 = vpop.f32.mrf.mxu0  ;;  %v2003_v37 = vpop.f32.mrf.mxu1 }
 0x143   :  { %v1016_v19 = vadd.f32 %v2002_v36, %v3973_v47  ;;  %v2073_v38 = vadd.f32 %v2072_v40, %v2071_v27 }
 0x144   :  { %v2074_v1 = vpop.f32.mrf.mxu0  ;;  %v2004_v39 = vpop.f32.mrf.mxu1 }
 0x145   :  { %v4021_v41 = vadd.f32 %v2073_v38, %v1016_v19  ;;  %v2005_v43 = vadd.f32 %v2004_v39, %v2003_v37 }
 0x146   :  { %v2075_v44 = vpop.f32.mrf.mxu0 }
 0x147   :  { %v1021_v45 = vadd.f32 %v2005_v43, %v3985_v58  ;;  %v2076_v48 = vadd.f32 %v2075_v44, %v2074_v1  ;;  %v2006_v35 = vpop.f32.mrf.mxu1 }
 0x148   :  { %v2077_v46 = vpop.f32.mrf.mxu0 }
 0x149   :  { %v4024_v49 = vadd.f32 %v2076_v48, %v1021_v45  ;;  %v2007_v50 = vpop.f32.mrf.mxu1 }
 0x14a   :  { %v2008_v51 = vadd.f32 %v2007_v50, %v2006_v35  ;;  %v2078_v52 = vpop.f32.mrf.mxu0 }
 0x14b   :  { %v2079_v54 = vadd.f32 %v2078_v52, %v2077_v46 }
 0x14c   :  { %v1026_v47 = vadd.f32 %v2008_v51, %v3988_v16  ;;  %v2009_v4 = vpop.f32.mrf.mxu1 }
 0x14d   :  { %v2080_v63 = vpop.f32.mrf.mxu0 }
 0x14e   :  { %v4027_v55 = vadd.f32 %v2079_v54, %v1026_v47  ;;  %v2010_v57 = vpop.f32.mrf.mxu1 }
 0x14f   :  { %v2011_v60 = vadd.f32 %v2010_v57, %v2009_v4  ;;  %v2081_v61 = vpop.f32.mrf.mxu0 }
 0x150   :  { %v2082_v62 = vadd.f32 %v2081_v61, %v2080_v63  ;;  %v2012_v58 = vpop.f32.mrf.mxu1 }
 0x151   :  { %v1031_v12 = vadd.f32 %v2011_v60, %v3991_v15  ;;  %v2083_v2 = vpop.f32.mrf.mxu0 }
 0x152   :  { %v2013_v7 = vpop.f32.mrf.mxu1 }
 0x153   :  { %v4030_v5 = vadd.f32 %v2082_v62, %v1031_v12  ;;  %v2014_v8 = vadd.f32 %v2013_v7, %v2012_v58  ;;  %v2084_v9 = vpop.f32.mrf.mxu0 }
 0x154   :  { %v2085_v10 = vadd.f32 %v2084_v9, %v2083_v2  ;;  %v2015_v11 = vpop.f32.mrf.mxu1 }
 0x155   :  { %v1036_v16 = vadd.f32 %v2014_v8, %v3994_v25 }
 0x156   :  { %v2086_v22 = vpop.f32.mrf.mxu0  ;;  %v2016_v13 = vpop.f32.mrf.mxu1 }
 0x157   :  { %v4033_v0 = vadd.f32 %v2085_v10, %v1036_v16  ;;  %v2017_v18 = vadd.f32 %v2016_v13, %v2015_v11 }
 0x158   :  { %v2087_v20 = vpop.f32.mrf.mxu0 }
 0x159   :  { %v1041_v28 = vadd.f32 %v2017_v18, %v3997_v33  ;;  %v2088_v53 = vadd.f32 %v2087_v20, %v2086_v22  ;;  %v2018_v15 = vpop.f32.mrf.mxu1 }
 0x15a   :  { %v2089_v21 = vpop.f32.mrf.mxu0 }
 0x15b   :  { %v4036_v17 = vadd.f32 %v2088_v53, %v1041_v28  ;;  %v2019_v24 = vpop.f32.mrf.mxu1 }
 0x15c   :  { %v2020_v26 = vadd.f32 %v2019_v24, %v2018_v15  ;;  %v2090_v29 = vpop.f32.mrf.mxu0 }
 0x15d   :  { %4243 = vst [vmem:[#allocation2_spill] sm:$0xff] %v4036_v17  ;;  %v2091_v30 = vadd.f32 %v2090_v29, %v2089_v21  ;;  %v2021_v3 = vpop.f32.mrf.mxu1 }
 0x15e   :  { %v1046_v25 = vadd.f32 %v2020_v26, %v4000_v42  ;;  %v2092_v31 = vpop.f32.mrf.mxu0 }
 0x15f   :  { %v2022_v27 = vpop.f32.mrf.mxu1 }
 0x160   :  { %v4039_v32 = vadd.f32 %v2091_v30, %v1046_v25  ;;  %v2023_v36 = vadd.f32 %v2022_v27, %v2021_v3  ;;  %v2093_v40 = vpop.f32.mrf.mxu0 }
 0x161   :  { %v2094_v37 = vadd.f32 %v2093_v40, %v2092_v31 }
 0x162   :  { %4244 = vst [vmem:[#allocation3_spill] sm:$0xff] %v4039_v32  ;;  %v1051_v33 = vadd.f32 %v2023_v36, %v4003_v56  ;;  %v2024_v19 = vpop.f32.mrf.mxu1 }
 0x163   :  { %v2095_v38 = vpop.f32.mrf.mxu0 }
 0x164   :  { %v4042_v1 = vadd.f32 %v2094_v37, %v1051_v33  ;;  %v2025_v39 = vpop.f32.mrf.mxu1 }
 0x165   :  { %v2026_v43 = vadd.f32 %v2025_v39, %v2024_v19  ;;  %v2096_v44 = vpop.f32.mrf.mxu0 }
 0x166   :  { %4245 = vst [vmem:[#allocation4_spill] sm:$0xff] %v4042_v1  ;;  %v2097_v45 = vadd.f32 %v2096_v44, %v2095_v38  ;;  %v2130_v48 = vpop.f32.mrf.mxu1 }
 0x167   :  { %v1056_v42 = vadd.f32 %v2026_v43, %v4006_v59 }
 0x168   :  { %v2201_v35 = vpop.f32.mrf.mxu0  ;;  %v2131_v46 = vpop.f32.mrf.mxu1 }
 0x169   :  { %v4045_v50 = vadd.f32 %v2097_v45, %v1056_v42  ;;  %v2132_v44 = vadd.f32 %v2131_v46, %v2130_v48 }
 0x16a   :  { %v2202_v51 = vpop.f32.mrf.mxu0  ;;  %v2133_v52 = vpop.f32.mrf.mxu1 }
 0x16b   :  { %4246 = vst [vmem:[#allocation5_spill] sm:$0xff] %v4045_v50  ;;  %v1256_v1 = vadd.f32 %v2132_v44, %v4009_v6 }
 0x16c   :  { %v2204_v54 = vpop.f32.mrf.mxu0  ;;  %v2134_v47 = vpop.f32.mrf.mxu1 }
 0x16e   :  { %v2205_v56 = vpop.f32.mrf.mxu0 }
 0x16f   :  { %v2136_v4 = vpop.f32.mrf.mxu1  ;;  %v2206_v17 = vadd.f32 %v2205_v56, %v2204_v54  ;;  %v4135_v54 = vld [vmem:[%s4241_s4] ss:$0 sm:$0xff] }
 0x170   :  { %v4047_v63 = vpop.f32.mrf.mxu0 }
 0x171   :  { %v2137_v57 = vpop.f32.mrf.mxu1 }
 0x172   :  { %v4049_v60 = vpop.f32.mrf.mxu0 }
 0x174   :  { %v2139_v61 = vpop.f32.mrf.mxu1 }
 0x175   :  { %v4051_v62 = vpop.f32.mrf.mxu0 }
 0x176   :  { %v2140_v58 = vpop.f32.mrf.mxu1 }
 0x177   :  { %v4053_v59 = vpop.f32.mrf.mxu0  ;;  %v2141_v44 = vadd.f32 %v2140_v58, %v2139_v61 }
 0x178   :  { %v4055_v12 = vpop.f32.mrf.mxu1 }
 0x17a   :  { %v4057_v2 = vpop.f32.mrf.mxu0  ;;  %v4059_v7 = vpop.f32.mrf.mxu1 }
 0x17c   :  { %v4061_v8 = vpop.f32.mrf.mxu0  ;;  %v4063_v9 = vpop.f32.mrf.mxu1 }
 0x17e   :  { %v4065_v10 = vpop.f32.mrf.mxu0  ;;  %v4067_v11 = vpop.f32.mrf.mxu1 }
 0x180   :  { %v4069_v16 = vpop.f32.mrf.mxu0 }
 0x181   :  { %v4071_v22 = vpop.f32.mrf.mxu1 }
 0x182   :  { %v4073_v13 = vpop.f32.mrf.mxu0 }
 0x183   :  { %v4075_v18 = vpop.f32.mrf.mxu1 }
 0x184   :  { %v4077_v20 = vpop.f32.mrf.mxu0 }
 0x186   :  { %v4079_v28 = vpop.f32.mrf.mxu1 }
 0x187   :  { %v4081_v53 = vpop.f32.mrf.mxu0 }
 0x188   :  { %v4083_v15 = vpop.f32.mrf.mxu1 }
 0x189   :  { %v4085_v21 = vpop.f32.mrf.mxu0 }
 0x18a   :  { %v4087_v24 = vpop.f32.mrf.mxu1 }
 0x18b   :  { %v4089_v26 = vpop.f32.mrf.mxu0 }
 0x18c   :  { %v4091_v29 = vpop.f32.mrf.mxu1 }
 0x18d   :  { %v4093_v30 = vpop.f32.mrf.mxu0 }
 0x18e   :  { %v4095_v3 = vpop.f32.mrf.mxu1 }
 0x190   :  { %v4097_v25 = vpop.f32.mrf.mxu0  ;;  %v4099_v31 = vpop.f32.mrf.mxu1 }
 0x191   :  { %4247 = vst [vmem:[#allocation6_spill] sm:$0xff] %v4097_v25 }
 0x192   :  { %v4101_v27 = vpop.f32.mrf.mxu0 }
 0x193   :  { %4248 = vst [vmem:[#allocation7_spill] sm:$0xff] %v4101_v27  ;;  %v4103_v36 = vpop.f32.mrf.mxu1  ;;  %v2138_v27 = vadd.f32 %v2137_v57, %v2136_v4 }
 0x194   :  { %v4105_v40 = vpop.f32.mrf.mxu0 }
 0x195   :  { %4249 = vst [vmem:[#allocation8_spill] sm:$0xff] %v4105_v40  ;;  %v4107_v37 = vpop.f32.mrf.mxu1  ;;  %v2135_v40 = vadd.f32 %v2134_v47, %v2133_v52 }
 0x196   :  { %4250 = vst [vmem:[#allocation9_spill] sm:$0xff] %v4107_v37  ;;  %v4109_v33 = vpop.f32.mrf.mxu0 }
 0x197   :  { %4251 = vst [vmem:[#allocation10_spill] sm:$0xff] %v4109_v33  ;;  %v4111_v19 = vpop.f32.mrf.mxu1 }
 0x198   :  { %4252 = vst [vmem:[#allocation11_spill] sm:$0xff] %v4111_v19  ;;  %v4113_v38 = vpop.f32.mrf.mxu0  ;;  %v2203_v19 = vadd.f32 %v2202_v51, %v2201_v35  ;;  %v2209_v51 = vadd.f32 %v4049_v60, %v4047_v63 }
 0x199   :  { %4253 = vst [vmem:[#allocation12_spill] sm:$0xff] %v4113_v38  ;;  %v4115_v39 = vpop.f32.mrf.mxu1 }
 0x19a   :  { %4254 = vst [vmem:[#allocation13_spill] sm:$0xff] %v4115_v39  ;;  %v4117_v43 = vpop.f32.mrf.mxu0  ;;  %v1386_v39 = vadd.f32 %v2203_v19, %v1256_v1 }
 0x19b   :  { %4255 = vst [vmem:[#allocation14_spill] sm:$0xff] %v4117_v43  ;;  %v1261_v43 = vadd.f32 %v2135_v40, %v4012_v14  ;;  %v2212_v40 = vadd.f32 %v4053_v59, %v4051_v62 }
 0x19c   :  { %v4119_v45 = vpop.f32.mrf.mxu1 }
 0x19d   :  { %4256 = vst [vmem:[#allocation15_spill] sm:$0xff] %v4119_v45  ;;  %v4121_v42 = vpop.f32.mrf.mxu0  ;;  %v1391_v47 = vadd.f32 %v2206_v17, %v1261_v43  ;;  %v2144_v17 = vadd.f32 %v4059_v7, %v4055_v12  ;;  %v2147_v7 = vadd.f32 %v4067_v11, %v4063_v9 }
 0x19e   :  { %4257 = vst [vmem:[#allocation16_spill] sm:$0xff] %v4121_v42  ;;  %v4123_v50 = vpop.f32.mrf.mxu1 }
 0x19f   :  { %4258 = vst [vmem:[#allocation17_spill] sm:$0xff] %v4123_v50  ;;  %v4126_v32 = vpop.f32.mrf.mxu0  ;;  %v1266_v50 = vadd.f32 %v2138_v27, %v4015_v23  ;;  %v1276_v12 = vadd.f32 %v2144_v17, %v4021_v41 }
 0x1a0   :  { %4259 = vst [vmem:[#allocation18_spill] sm:$0xff] %v4126_v32  ;;  %v2272_v33 = vpop.f32.mrf.mxu1 }
 0x1a1   :  { %v1396_v57 = vadd.f32 %v2209_v51, %v1266_v50 }
 0x1a2   :  { %v2343_v38 = vpop.f32.mrf.mxu0  ;;  %v2273_v25 = vpop.f32.mrf.mxu1 }
 0x1a3   :  { %v2274_v48 = vadd.f32 %v2273_v25, %v2272_v33  ;;  %v1271_v25 = vadd.f32 %v2141_v44, %v4018_v34 }
 0x1a4   :  { %v2344_v46 = vpop.f32.mrf.mxu0  ;;  %v2275_v45 = vpop.f32.mrf.mxu1 }
 0x1a5   :  { %v1516_v42 = vadd.f32 %v2274_v48, %v1386_v39  ;;  %v2345_v37 = vadd.f32 %v2344_v46, %v2343_v38  ;;  %v1401_v62 = vadd.f32 %v2212_v40, %v1271_v25 }
 0x1a6   :  { %v2346_v6 = vpop.f32.mrf.mxu0  ;;  %v2276_v52 = vpop.f32.mrf.mxu1 }
 0x1a7   :  { %v1646_v32 = vadd.f32 %v2345_v37, %v1516_v42  ;;  %v2277_v35 = vadd.f32 %v2276_v52, %v2275_v45  ;;  %v2215_v42 = vadd.f32 %v4061_v8, %v4057_v2  ;;  %v2150_v2 = vadd.f32 %v4075_v18, %v4071_v22 }
 0x1a8   :  { %v2347_v1 = vpop.f32.mrf.mxu0  ;;  %v2278_v4 = vpop.f32.mrf.mxu1 }
 0x1a9   :  { %vm1709_vm2 = vcmp.ge.f32.partialorder %v1646_v32, 0.0  ;;  %v1722_v14 = vmul.f32 0.2, %v1646_v32  ;;  %v1521_v56 = vadd.f32 %v2277_v35, %v1391_v47  ;;  %v2348_v23 = vadd.f32 %v2347_v1, %v2346_v6 }
 0x1aa   :  { %v2349_v61 = vpop.f32.mrf.mxu0  ;;  %v2279_v58 = vpop.f32.mrf.mxu1  ;;  %v1406_v52 = vadd.f32 %v2215_v42, %v1276_v12  ;;  %v1281_v47 = vadd.f32 %v2147_v7, %v4024_v49  ;;  %v2224_v7 = vadd.f32 %v4085_v21, %v4081_v53  ;;  %v2159_v53 = vadd.f32 %v4099_v31, %v4095_v3 }
 0x1ab   :  { %v1735_v63 = vsel %vm1709_vm2, %v1646_v32, %v1722_v14  ;;  %v1651_v60 = vadd.f32 %v2348_v23, %v1521_v56  ;;  %v2280_v27 = vadd.f32 %v2279_v58, %v2278_v4  ;;  %v2218_v4 = vadd.f32 %v4069_v16, %v4065_v10 }
 0x1ac   :  { %v1755_v37 = vadd.f32 %v4135_v54, %v1735_v63  ;;  %v2350_v33 = vpop.f32.mrf.mxu0  ;;  %v2281_v19 = vpop.f32.mrf.mxu1  ;;  %v2153_v58 = vadd.f32 %v4083_v15, %v4079_v28  ;;  %v1286_v10 = vadd.f32 %v2150_v2, %v4027_v55 }
 0x1ad   :  { %vm1710_vm3 = vcmp.ge.f32.partialorder %v1651_v60, 0.0  ;;  %v1723_v38 = vmul.f32 0.2, %v1651_v60  ;;  %v1526_v50 = vadd.f32 %v2280_v27, %v1396_v57  ;;  %v2351_v39 = vadd.f32 %v2350_v33, %v2349_v61 }
 0x1ae   :  { %1768 = vst [vmem:[%s4242_s5] sm:$0xff] %v1755_v37  ;;  %v2352_v34 = vpop.f32.mrf.mxu0  ;;  %v2282_v32 = vpop.f32.mrf.mxu1  ;;  %v1411_v61 = vadd.f32 %v2218_v4, %v1281_v47  ;;  %v4262_v4 = vld [vmem:[#allocation6_spill] sm:$0xff] }
 0x1af   :  { %v1736_v59 = vsel %vm1710_vm3, %v1651_v60, %v1723_v38  ;;  %v1656_v43 = vadd.f32 %v2351_v39, %v1526_v50  ;;  %v2283_v45 = vadd.f32 %v2282_v32, %v2281_v19  ;;  %v2221_v60 = vadd.f32 %v4077_v20, %v4073_v13 }
 0x1b0   :  { %v1756_v48 = vadd.f32 %v4135_v54, %v1736_v59  ;;  %v2353_v46 = vpop.f32.mrf.mxu0  ;;  %v2284_v41 = vpop.f32.mrf.mxu1  ;;  %v1291_v19 = vadd.f32 %v2153_v58, %v4030_v5  ;;  %v2156_v38 = vadd.f32 %v4091_v29, %v4087_v24  ;;  %v4264_v58 = vld [vmem:[#allocation3_spill] sm:$0xff] }
 0x1b1   :  { %vm1711_vm4 = vcmp.ge.f32.partialorder %v1656_v43, 0.0  ;;  %v1724_v6 = vmul.f32 0.2, %v1656_v43  ;;  %v1531_v9 = vadd.f32 %v2283_v45, %v1401_v62  ;;  %v2354_v11 = vadd.f32 %v2353_v46, %v2352_v34 }
 0x1b2   :  { %1769 = vst [vmem:[%s4242_s5 + $0x8] sm:$0xff] %v1756_v48  ;;  %v2355_v44 = vpop.f32.mrf.mxu0  ;;  %v2285_v35 = vpop.f32.mrf.mxu1  ;;  %v1416_v13 = vadd.f32 %v2221_v60, %v1286_v10  ;;  %v1421_v59 = vadd.f32 %v2224_v7, %v1291_v19  ;;  %v4266_v10 = vld [vmem:[#allocation13_spill] sm:$0xff] }
 0x1b3   :  { %v1737_v8 = vsel %vm1711_vm4, %v1656_v43, %v1724_v6  ;;  %v1661_v51 = vadd.f32 %v2354_v11, %v1531_v9  ;;  %v2286_v1 = vadd.f32 %v2285_v35, %v2284_v41  ;;  %v1296_v43 = vadd.f32 %v2156_v38, %v4033_v0  ;;  %v4260_v35 = vld [vmem:[#allocation9_spill] sm:$0xff] }
 0x1b4   :  { %v1757_v14 = vadd.f32 %v4135_v54, %v1737_v8  ;;  %v2356_v56 = vpop.f32.mrf.mxu0  ;;  %v2287_v23 = vpop.f32.mrf.mxu1  ;;  %v2227_v41 = vadd.f32 %v4093_v30, %v4089_v26  ;;  %v2162_v2 = vadd.f32 %v4260_v35, %v4103_v36  ;;  %v4261_v8 = vld [vmem:[#allocation2_spill] sm:$0xff] }
 0x1b5   :  { %vm1712_vm5 = vcmp.ge.f32.partialorder %v1661_v51, 0.0  ;;  %v1725_v49 = vmul.f32 0.2, %v1661_v51  ;;  %v1536_v57 = vadd.f32 %v2286_v1, %v1406_v52  ;;  %v2357_v17 = vadd.f32 %v2356_v56, %v2355_v44 }
 0x1b6   :  { %1770 = vst [vmem:[%s4242_s5 + $0x10] sm:$0xff] %v1757_v14  ;;  %v2358_v22 = vpop.f32.mrf.mxu0  ;;  %v2288_v18 = vpop.f32.mrf.mxu1  ;;  %v1426_v44 = vadd.f32 %v2227_v41, %v1296_v43  ;;  %v1301_v26 = vadd.f32 %v2159_v53, %v4261_v8  ;;  %v4263_v14 = vld [vmem:[#allocation7_spill] sm:$0xff]  ;;  %v4276_v8 = vld [vmem:[#allocation18_spill] sm:$0xff] }
 0x1b7   :  { %v1738_v16 = vsel %vm1712_vm5, %v1661_v51, %v1725_v49  ;;  %v1666_v25 = vadd.f32 %v2357_v17, %v1536_v57  ;;  %v2289_v63 = vadd.f32 %v2288_v18, %v2287_v23  ;;  %v2230_v56 = vadd.f32 %v4263_v14, %v4262_v4  ;;  %v4265_v18 = vld [vmem:[#allocation11_spill] sm:$0xff] }
 0x1b8   :  { %v1758_v27 = vadd.f32 %v4135_v54, %v1738_v16  ;;  %v2359_v40 = vpop.f32.mrf.mxu0  ;;  %v2290_v37 = vpop.f32.mrf.mxu1  ;;  %v2165_v16 = vadd.f32 %v4266_v10, %v4265_v18 }
 0x1b9   :  { %vm1713_vm6 = vcmp.ge.f32.partialorder %v1666_v25, 0.0  ;;  %v1726_v28 = vmul.f32 0.2, %v1666_v25  ;;  %v1541_v15 = vadd.f32 %v2289_v63, %v1411_v61  ;;  %v2360_v33 = vadd.f32 %v2359_v40, %v2358_v22 }
 0x1ba   :  { %1771 = vst [vmem:[%s4242_s5 + $0x18] sm:$0xff] %v1758_v27  ;;  %v2361_v55 = vpop.f32.mrf.mxu0  ;;  %v2291_v50 = vpop.f32.mrf.mxu1  ;;  %v1306_v22 = vadd.f32 %v2162_v2, %v4264_v58  ;;  %v1431_v60 = vadd.f32 %v2230_v56, %v1301_v26 }
 0x1bb   :  { %v1739_v20 = vsel %vm1713_vm6, %v1666_v25, %v1726_v28  ;;  %v1671_v39 = vadd.f32 %v2360_v33, %v1541_v15  ;;  %v2292_v12 = vadd.f32 %v2291_v50, %v2290_v37  ;;  %v4267_v28 = vld [vmem:[#allocation8_spill] sm:$0xff]  ;;  %v4268_v15 = vld [vmem:[#allocation10_spill] sm:$0xff] }
 0x1bc   :  { %v1759_v34 = vadd.f32 %v4135_v54, %v1739_v20  ;;  %v2362_v32 = vpop.f32.mrf.mxu0  ;;  %v2293_v5 = vpop.f32.mrf.mxu1  ;;  %v2233_v33 = vadd.f32 %v4268_v15, %v4267_v28 }
 0x1bd   :  { %vm1714_vm7 = vcmp.ge.f32.partialorder %v1671_v39, 0.0  ;;  %v1727_v62 = vmul.f32 0.2, %v1671_v39  ;;  %v1546_v24 = vadd.f32 %v2292_v12, %v1416_v13  ;;  %v2363_v29 = vadd.f32 %v2362_v32, %v2361_v55  ;;  %v4269_v12 = vld [vmem:[#allocation4_spill] sm:$0xff] }
 0x1be   :  { %1772 = vst [vmem:[%s4242_s5 + $0x20] sm:$0xff] %v1759_v34  ;;  %v2364_v45 = vpop.f32.mrf.mxu0  ;;  %v2294_v42 = vpop.f32.mrf.mxu1  ;;  %v1311_v7 = vadd.f32 %v2165_v16, %v4269_v12 }
 0x1bf   :  { %v1740_v21 = vsel %vm1714_vm7, %v1671_v39, %v1727_v62  ;;  %v1676_v48 = vadd.f32 %v2363_v29, %v1546_v24  ;;  %v2295_v46 = vadd.f32 %v2294_v42, %v2293_v5  ;;  %v1436_v39 = vadd.f32 %v2233_v33, %v1306_v22  ;;  %v4270_v5 = vld [vmem:[#allocation15_spill] sm:$0xff]  ;;  %v4271_v62 = vld [vmem:[#allocation17_spill] sm:$0xff]  ;;  %v4273_v42 = vld [vmem:[#allocation14_spill] sm:$0xff] }
 0x1c0   :  { %v1760_v6 = vadd.f32 %v4135_v54, %v1740_v21  ;;  %v2365_v9 = vpop.f32.mrf.mxu0  ;;  %v2296_v11 = vpop.f32.mrf.mxu1  ;;  %v2168_v24 = vadd.f32 %v4271_v62, %v4270_v5 }
 0x1c1   :  { %vm1715_vm8 = vcmp.ge.f32.partialorder %v1676_v48, 0.0  ;;  %v1728_v0 = vmul.f32 0.2, %v1676_v48  ;;  %v1551_v52 = vadd.f32 %v2295_v46, %v1421_v59  ;;  %v2366_v47 = vadd.f32 %v2365_v9, %v2364_v45  ;;  %v4272_v45 = vld [vmem:[#allocation12_spill] sm:$0xff] }
 0x1c2   :  { %1773 = vst [vmem:[%s4242_s5 + $0x28] sm:$0xff] %v1760_v6  ;;  %v2367_v3 = vpop.f32.mrf.mxu0  ;;  %v2297_v31 = vpop.f32.mrf.mxu1  ;;  %v2236_v53 = vadd.f32 %v4273_v42, %v4272_v45 }
 0x1c3   :  { %v1741_v30 = vsel %vm1715_vm8, %v1676_v48, %v1728_v0  ;;  %v1681_v51 = vadd.f32 %v2366_v47, %v1551_v52  ;;  %v2298_v1 = vadd.f32 %v2297_v31, %v2296_v11  ;;  %v4274_v47 = vld [vmem:[#allocation5_spill] sm:$0xff]  ;;  %v4275_v31 = vld [vmem:[#allocation16_spill] sm:$0xff] }
 0x1c4   :  { %v1761_v23 = vadd.f32 %v4135_v54, %v1741_v30  ;;  %v2368_v49 = vpop.f32.mrf.mxu0  ;;  %v2299_v57 = vpop.f32.mrf.mxu1  ;;  %v1441_v11 = vadd.f32 %v2236_v53, %v1311_v7  ;;  %v2239_v26 = vadd.f32 %v4276_v8, %v4275_v31 }
 0x1c5   :  { %vm1716_vm9 = vcmp.ge.f32.partialorder %v1681_v51, 0.0  ;;  %v1729_v36 = vmul.f32 0.2, %v1681_v51  ;;  %v1556_v17 = vadd.f32 %v2298_v1, %v1426_v44  ;;  %v2369_v61 = vadd.f32 %v2368_v49, %v2367_v3 }
 0x1c6   :  { %1774 = vst [vmem:[%s4242_s5 + $0x30] sm:$0xff] %v1761_v23  ;;  %v2370_v25 = vpop.f32.mrf.mxu0  ;;  %v2300_v63 = vpop.f32.mrf.mxu1  ;;  %v1316_v44 = vadd.f32 %v2168_v24, %v4274_v47 }
 0x1c7   :  { %v1742_v27 = vsel %vm1716_vm9, %v1681_v51, %v1729_v36  ;;  %v1686_v40 = vadd.f32 %v2369_v61, %v1556_v17  ;;  %v2301_v37 = vadd.f32 %v2300_v63, %v2299_v57 }
 0x1c8   :  { %v1762_v19 = vadd.f32 %v4135_v54, %v1742_v27  ;;  %v2371_v38 = vpop.f32.mrf.mxu0  ;;  %v2302_v55 = vpop.f32.mrf.mxu1  ;;  %v1446_v57 = vadd.f32 %v2239_v26, %v1316_v44 }
 0x1c9   :  { %vm1717_vm10 = vcmp.ge.f32.partialorder %v1686_v40, 0.0  ;;  %v1730_v50 = vmul.f32 0.2, %v1686_v40  ;;  %v1561_v13 = vadd.f32 %v2301_v37, %v1431_v60  ;;  %v2372_v20 = vadd.f32 %v2371_v38, %v2370_v25 }
 0x1ca   :  { %1775 = vst [vmem:[%s4242_s5 + $0x38] sm:$0xff] %v1762_v19  ;;  %v2373_v34 = vpop.f32.mrf.mxu0  ;;  %v2303_v32 = vpop.f32.mrf.mxu1 }
 0x1cb   :  { %v1743_v29 = vsel %vm1717_vm10, %v1686_v40, %v1730_v50  ;;  %v1691_v59 = vadd.f32 %v2372_v20, %v1561_v13  ;;  %v2304_v43 = vadd.f32 %v2303_v32, %v2302_v55 }
 0x1cc   :  { %v1763_v21 = vadd.f32 %v4135_v54, %v1743_v29  ;;  %v2374_v48 = vpop.f32.mrf.mxu0  ;;  %v2305_v46 = vpop.f32.mrf.mxu1 }
 0x1cd   :  { %vm1718_vm11 = vcmp.ge.f32.partialorder %v1691_v59, 0.0  ;;  %v1731_v41 = vmul.f32 0.2, %v1691_v59  ;;  %v1566_v6 = vadd.f32 %v2304_v43, %v1436_v39  ;;  %v2375_v9 = vadd.f32 %v2374_v48, %v2373_v34 }
 0x1ce   :  { %1776 = vst [vmem:[%s4242_s5 + $0x40] sm:$0xff] %v1763_v21  ;;  %v2376_v0 = vpop.f32.mrf.mxu0  ;;  %v2306_v52 = vpop.f32.mrf.mxu1 }
 0x1cf   :  { %v1744_v35 = vsel %vm1718_vm11, %v1691_v59, %v1731_v41  ;;  %v1696_v2 = vadd.f32 %v2375_v9, %v1566_v6  ;;  %v2307_v3 = vadd.f32 %v2306_v52, %v2305_v46 }
 0x1d0   :  { %v1764_v30 = vadd.f32 %v4135_v54, %v1744_v35  ;;  %v2377_v51 = vpop.f32.mrf.mxu0  ;;  %v2308_v1 = vpop.f32.mrf.mxu1 }
 0x1d1   :  { %vm1719_vm12 = vcmp.ge.f32.partialorder %v1696_v2, 0.0  ;;  %v1732_v4 = vmul.f32 0.2, %v1696_v2  ;;  %v1571_v14 = vadd.f32 %v2307_v3, %v1441_v11  ;;  %v2378_v56 = vadd.f32 %v2377_v51, %v2376_v0 }
 0x1d2   :  { %1777 = vst [vmem:[%s4242_s5 + $0x48] sm:$0xff] %v1764_v30  ;;  %v2379_v23 = vpop.f32.mrf.mxu0  ;;  %v2309_v49 = vpop.f32.mrf.mxu1 }
 0x1d3   :  { %v1745_v36 = vsel %vm1719_vm12, %v1696_v2, %v1732_v4  ;;  %v1701_v17 = vadd.f32 %v2378_v56, %v1571_v14  ;;  %v2310_v61 = vadd.f32 %v2309_v49, %v2308_v1 }
 0x1d4   :  { %v1765_v58 = vadd.f32 %v4135_v54, %v1745_v36  ;;  %v2380_v22 = vpop.f32.mrf.mxu0 }
 0x1d5   :  { %vm1720_vm13 = vcmp.ge.f32.partialorder %v1701_v17, 0.0  ;;  %v1733_v18 = vmul.f32 0.2, %v1701_v17  ;;  %v1576_v10 = vadd.f32 %v2310_v61, %v1446_v57  ;;  %v2381_v16 = vadd.f32 %v2380_v22, %v2379_v23 }
 0x1d6   :  { %1778 = vst [vmem:[%s4242_s5 + $0x50] sm:$0xff] %v1765_v58 }
 0x1d7   :  { %v1746_v25 = vsel %vm1720_vm13, %v1701_v17, %v1733_v18  ;;  %v1706_v63 = vadd.f32 %v2381_v16, %v1576_v10 }
 0x1d8   :  { %v1766_v60 = vadd.f32 %v4135_v54, %v1746_v25 }
 0x1d9   :  { %vm1721_vm14 = vcmp.ge.f32.partialorder %v1706_v63, 0.0  ;;  %v1734_v27 = vmul.f32 0.2, %v1706_v63 }
 0x1da   :  { %1779 = vst [vmem:[%s4242_s5 + $0x58] sm:$0xff] %v1766_v60 }
 0x1db   :  { %v1747_v40 = vsel %vm1721_vm14, %v1706_v63, %v1734_v27 }
 0x1dc   :  { %v1767_v37 = vadd.f32 %v4135_v54, %v1747_v40 }
 0x1de   :  { %1780 = vst [vmem:[%s4242_s5 + $0x60] sm:$0x3] %v1767_v37 }

// kernel: forward.9
= control target key start
LH: loop header
LB: loop body
LE: loop exit
PB: predicated region body
PF: predicated region fallthrough
CT: control target
= control target key end

     0   :  { %vm219_vm0 = vcmask 1040384   ;;  %vm206_vm1 = vcmask 72704   ;;  %s1627_s3 = inlined_call_operand.vmem [shape: f32[9,128], index: 3, kind: input, shape index: {}]   ;;  %s1628_s2 = inlined_call_operand.vmem [shape: f32[1152,128], index: 2, kind: input, shape index: {}]   ;;  %s1629_s1 = inlined_call_operand.vmem [shape: f32[32,9], index: 1, kind: input, shape index: {}]   ;;  %s1630_s0 = inlined_call_operand.vmem [shape: f32[32,1152], index: 0, kind: input, shape index: {}]   ;;  %s1631_s4 = inlined_call_operand.vmem [shape: f32[1,128], index: 4, kind: input, shape index: {}]   ;;  %s1632_s5 = inlined_call_operand.vmem [shape: f32[32,128], index: 5, kind: output, shape index: {}]  }
   0x1   :  { %v205_v0 = vld [vmem:[%s1627_s3 + $0x8] sm:$0x1]  ;;  %v87_v1 = vld [vmem:[%s1628_s2 + $0xf8] sm:$0xff]  ;;  %v204_v3 = vld [vmem:[%s1627_s3] sm:$0xff] }
   0x2   :  { %v71_v2 = vld [vmem:[%s1628_s2 + $0x78] sm:$0xff]  ;;  %972 = vmatprep.subr.msk.mxu0 %vm219_vm0, %v205_v0  ;;  %776 = vmatprep.subr.mxu1 %v87_v1  ;;  %v86_v4 = vld [vmem:[%s1628_s2 + $0xf0] sm:$0xff]  ;;  %v200_v6 = vld [vmem:[%s1629_s1] sm:$0xff] }
   0x3   :  { %v70_v5 = vld [vmem:[%s1628_s2 + $0x70] sm:$0xff]  ;;  %973 = vmatpush3.msk.msra.mxu0 %vm219_vm0, %v205_v0  ;;  %777 = vmatpush3.msra.mxu1 %v71_v2  ;;  %v85_v7 = vld [vmem:[%s1628_s2 + $0xe8] sm:$0xff]  ;;  %v119_v8 = vld [vmem:[%s1628_s2 + $0x1f8] sm:$0xff] }
   0x4   :  { %974 = vmatprep.subr.mxu0 %v204_v3  ;;  %778 = vmatprep.subr.mxu1 %v86_v4  ;;  %v201_v9 = vld [vmem:[%s1629_s1 + $0x8] sm:$0xff]  ;;  %v103_v11 = vld [vmem:[%s1628_s2 + $0x178] sm:$0xff]  ;;  %v84_v12 = vld [vmem:[%s1628_s2 + $0xe0] sm:$0xff] }
   0x5   :  { %975 = vmatpush3.msra.mxu0 %v204_v3  ;;  %779 = vmatpush3.msra.mxu1 %v70_v5  ;;  %v69_v10 = vld [vmem:[%s1628_s2 + $0x68] sm:$0xff]  ;;  %v118_v13 = vld [vmem:[%s1628_s2 + $0x1f0] sm:$0xff]  ;;  %v68_v14 = vld [vmem:[%s1628_s2 + $0x60] sm:$0xff] }
   0x6   :  { %976 = vmatprep.mubr.msk.f32.mxu0 %vm206_vm1, %v200_v6  ;;  %780 = vmatprep.subr.mxu1 %v85_v7  ;;  %v102_v15 = vld [vmem:[%s1628_s2 + $0x170] sm:$0xff]  ;;  %v83_v16 = vld [vmem:[%s1628_s2 + $0xd8] sm:$0xff]  ;;  %v117_v17 = vld [vmem:[%s1628_s2 + $0x1e8] sm:$0xff] }
   0x7   :  { %820 = vmatprep.subr.mxu0 %v119_v8  ;;  %977 = vmatmul.mubr.msk.f32.vlgmr.msra.gmra.mxu0 %vm206_vm1, %v201_v9  ;;  %v67_v18 = vld [vmem:[%s1628_s2 + $0x58] sm:$0xff]  ;;  %v101_v19 = vld [vmem:[%s1628_s2 + $0x168] sm:$0xff]  ;;  %v82_v20 = vld [vmem:[%s1628_s2 + $0xd0] sm:$0xff] }
   0x8   :  { %781 = vmatpush3.msra.mxu1 %v69_v10  ;;  %821 = vmatpush3.msra.mxu0 %v103_v11  ;;  %v116_v21 = vld [vmem:[%s1628_s2 + $0x1e0] sm:$0xff]  ;;  %v66_v22 = vld [vmem:[%s1628_s2 + $0x50] sm:$0xff]  ;;  %v81_v24 = vld [vmem:[%s1628_s2 + $0xc8] sm:$0xff] }
   0x9   :  { %782 = vmatprep.subr.mxu1 %v84_v12  ;;  %822 = vmatprep.subr.mxu0 %v118_v13  ;;  %v100_v23 = vld [vmem:[%s1628_s2 + $0x160] sm:$0xff]  ;;  %v115_v25 = vld [vmem:[%s1628_s2 + $0x1d8] sm:$0xff]  ;;  %v65_v26 = vld [vmem:[%s1628_s2 + $0x48] sm:$0xff] }
   0xa   :  { %783 = vmatpush3.msra.mxu1 %v68_v14  ;;  %823 = vmatpush3.msra.mxu0 %v102_v15  ;;  %v99_v27 = vld [vmem:[%s1628_s2 + $0x158] sm:$0xff]  ;;  %v80_v28 = vld [vmem:[%s1628_s2 + $0xc0] sm:$0xff]  ;;  %v114_v29 = vld [vmem:[%s1628_s2 + $0x1d0] sm:$0xff] }
   0xb   :  { %784 = vmatprep.subr.mxu1 %v83_v16  ;;  %824 = vmatprep.subr.mxu0 %v117_v17  ;;  %v64_v30 = vld [vmem:[%s1628_s2 + $0x40] sm:$0xff]  ;;  %v98_v31 = vld [vmem:[%s1628_s2 + $0x150] sm:$0xff]  ;;  %v79_v32 = vld [vmem:[%s1628_s2 + $0xb8] sm:$0xff] }
   0xc   :  { %785 = vmatpush3.msra.mxu1 %v67_v18  ;;  %825 = vmatpush3.msra.mxu0 %v101_v19  ;;  %v113_v33 = vld [vmem:[%s1628_s2 + $0x1c8] sm:$0xff]  ;;  %v63_v34 = vld [vmem:[%s1628_s2 + $0x38] sm:$0xff]  ;;  %v78_v36 = vld [vmem:[%s1628_s2 + $0xb0] sm:$0xff] }
   0xd   :  { %786 = vmatprep.subr.mxu1 %v82_v20  ;;  %826 = vmatprep.subr.mxu0 %v116_v21  ;;  %v97_v35 = vld [vmem:[%s1628_s2 + $0x148] sm:$0xff]  ;;  %v112_v37 = vld [vmem:[%s1628_s2 + $0x1c0] sm:$0xff]  ;;  %v62_v38 = vld [vmem:[%s1628_s2 + $0x30] sm:$0xff] }
   0xe   :  { %787 = vmatpush3.msra.mxu1 %v66_v22  ;;  %827 = vmatpush3.msra.mxu0 %v100_v23  ;;  %v96_v39 = vld [vmem:[%s1628_s2 + $0x140] sm:$0xff]  ;;  %v77_v40 = vld [vmem:[%s1628_s2 + $0xa8] sm:$0xff]  ;;  %v111_v41 = vld [vmem:[%s1628_s2 + $0x1b8] sm:$0xff] }
   0xf   :  { %788 = vmatprep.subr.mxu1 %v81_v24  ;;  %828 = vmatprep.subr.mxu0 %v115_v25  ;;  %v61_v42 = vld [vmem:[%s1628_s2 + $0x28] sm:$0xff]  ;;  %v95_v43 = vld [vmem:[%s1628_s2 + $0x138] sm:$0xff]  ;;  %v76_v44 = vld [vmem:[%s1628_s2 + $0xa0] sm:$0xff] }
  0x10   :  { %789 = vmatpush3.msra.mxu1 %v65_v26  ;;  %829 = vmatpush3.msra.mxu0 %v99_v27  ;;  %v110_v45 = vld [vmem:[%s1628_s2 + $0x1b0] sm:$0xff]  ;;  %v60_v46 = vld [vmem:[%s1628_s2 + $0x20] sm:$0xff]  ;;  %v75_v48 = vld [vmem:[%s1628_s2 + $0x98] sm:$0xff] }
  0x11   :  { %790 = vmatprep.subr.mxu1 %v80_v28  ;;  %830 = vmatprep.subr.mxu0 %v114_v29  ;;  %v94_v47 = vld [vmem:[%s1628_s2 + $0x130] sm:$0xff]  ;;  %v109_v49 = vld [vmem:[%s1628_s2 + $0x1a8] sm:$0xff]  ;;  %v59_v50 = vld [vmem:[%s1628_s2 + $0x18] sm:$0xff] }
  0x12   :  { %791 = vmatpush3.msra.mxu1 %v64_v30  ;;  %831 = vmatpush3.msra.mxu0 %v98_v31  ;;  %v93_v51 = vld [vmem:[%s1628_s2 + $0x128] sm:$0xff]  ;;  %v74_v52 = vld [vmem:[%s1628_s2 + $0x90] sm:$0xff]  ;;  %v108_v53 = vld [vmem:[%s1628_s2 + $0x1a0] sm:$0xff] }
  0x13   :  { %792 = vmatprep.subr.mxu1 %v79_v32  ;;  %832 = vmatprep.subr.mxu0 %v113_v33  ;;  %v58_v54 = vld [vmem:[%s1628_s2 + $0x10] sm:$0xff]  ;;  %v92_v55 = vld [vmem:[%s1628_s2 + $0x120] sm:$0xff]  ;;  %v73_v56 = vld [vmem:[%s1628_s2 + $0x88] sm:$0xff] }
  0x14   :  { %793 = vmatpush3.msra.mxu1 %v63_v34  ;;  %833 = vmatpush3.msra.mxu0 %v97_v35  ;;  %v107_v57 = vld [vmem:[%s1628_s2 + $0x198] sm:$0xff]  ;;  %v57_v58 = vld [vmem:[%s1628_s2 + $0x8] sm:$0xff]  ;;  %v72_v60 = vld [vmem:[%s1628_s2 + $0x80] sm:$0xff] }
  0x15   :  { %794 = vmatprep.subr.mxu1 %v78_v36  ;;  %834 = vmatprep.subr.mxu0 %v112_v37  ;;  %v91_v59 = vld [vmem:[%s1628_s2 + $0x118] sm:$0xff]  ;;  %v106_v61 = vld [vmem:[%s1628_s2 + $0x190] sm:$0xff]  ;;  %v56_v63 = vld [vmem:[%s1628_s2] sm:$0xff] }
  0x16   :  { %795 = vmatpush3.msra.mxu1 %v62_v38  ;;  %835 = vmatpush3.msra.mxu0 %v96_v39  ;;  %v202_v62 = vld [vmem:[%s1629_s1 + $0x10] sm:$0xff]  ;;  %v21_v0 = vld [vmem:[%s1630_s0 + $0x8] sm:$0xff]  ;;  %v203_v2 = vld [vmem:[%s1629_s1 + $0x18] sm:$0xff] }
  0x17   :  { %796 = vmatprep.subr.mxu1 %v77_v40  ;;  %836 = vmatprep.subr.mxu0 %v111_v41  ;;  %v90_v1 = vld [vmem:[%s1628_s2 + $0x110] sm:$0xff]  ;;  %v20_v3 = vld [vmem:[%s1630_s0] sm:$0xff]  ;;  %v105_v4 = vld [vmem:[%s1628_s2 + $0x188] sm:$0xff] }
  0x18   :  { %797 = vmatpush3.msra.mxu1 %v61_v42  ;;  %837 = vmatpush3.msra.mxu0 %v95_v43  ;;  %v151_v5 = vld [vmem:[%s1628_s2 + $0x2f8] sm:$0xff]  ;;  %v89_v6 = vld [vmem:[%s1628_s2 + $0x108] sm:$0xff]  ;;  %v104_v8 = vld [vmem:[%s1628_s2 + $0x180] sm:$0xff] }
  0x19   :  { %798 = vmatprep.subr.mxu1 %v76_v44  ;;  %838 = vmatprep.subr.mxu0 %v110_v45  ;;  %v135_v7 = vld [vmem:[%s1628_s2 + $0x278] sm:$0xff]  ;;  %v150_v9 = vld [vmem:[%s1628_s2 + $0x2f0] sm:$0xff]  ;;  %v88_v11 = vld [vmem:[%s1628_s2 + $0x100] sm:$0xff] }
  0x1a   :  { %799 = vmatpush3.msra.mxu1 %v60_v46  ;;  %839 = vmatpush3.msra.mxu0 %v94_v47  ;;  %v30_v10 = vld [vmem:[%s1630_s0 + $0x50] sm:$0xff]  ;;  %v23_v12 = vld [vmem:[%s1630_s0 + $0x18] sm:$0xff]  ;;  %v29_v14 = vld [vmem:[%s1630_s0 + $0x48] sm:$0xff] }
  0x1b   :  { %800 = vmatprep.subr.mxu1 %v75_v48  ;;  %840 = vmatprep.subr.mxu0 %v109_v49  ;;  %v134_v13 = vld [vmem:[%s1628_s2 + $0x270] sm:$0xff]  ;;  %v149_v16 = vld [vmem:[%s1628_s2 + $0x2e8] sm:$0xff]  ;;  %v183_v17 = vld [vmem:[%s1628_s2 + $0x3f8] sm:$0xff] }
  0x1c   :  { %801 = vmatpush3.msra.mxu1 %v59_v50  ;;  %841 = vmatpush3.msra.mxu0 %v93_v51  ;;  %v22_v15 = vld [vmem:[%s1630_s0 + $0x10] sm:$0xff]  ;;  %v133_v18 = vld [vmem:[%s1628_s2 + $0x268] sm:$0xff]  ;;  %v167_v19 = vld [vmem:[%s1628_s2 + $0x378] sm:$0xff] }
  0x1d   :  { %802 = vmatprep.subr.mxu1 %v74_v52  ;;  %842 = vmatprep.subr.mxu0 %v108_v53  ;;  %v148_v20 = vld [vmem:[%s1628_s2 + $0x2e0] sm:$0xff]  ;;  %v182_v21 = vld [vmem:[%s1628_s2 + $0x3f0] sm:$0xff]  ;;  %v39_v25 = vld [vmem:[%s1630_s0 + $0x98] sm:$0xff] }
  0x1e   :  { %803 = vmatpush3.msra.mxu1 %v58_v54  ;;  %843 = vmatpush3.msra.mxu0 %v92_v55  ;;  %v32_v22 = vld [vmem:[%s1630_s0 + $0x60] sm:$0xff]  ;;  %v166_v24 = vld [vmem:[%s1628_s2 + $0x370] sm:$0xff]  ;;  %v31_v26 = vld [vmem:[%s1630_s0 + $0x58] sm:$0xff] }
  0x1f   :  { %804 = vmatprep.subr.mxu1 %v73_v56  ;;  %844 = vmatprep.subr.mxu0 %v107_v57  ;;  %v132_v23 = vld [vmem:[%s1628_s2 + $0x260] sm:$0xff]  ;;  %v147_v27 = vld [vmem:[%s1628_s2 + $0x2d8] sm:$0xff]  ;;  %v181_v28 = vld [vmem:[%s1628_s2 + $0x3e8] sm:$0xff] }
  0x20   :  { %805 = vmatpush3.msra.mxu1 %v57_v58  ;;  %845 = vmatpush3.msra.mxu0 %v91_v59  ;;  %v38_v29 = vld [vmem:[%s1630_s0 + $0x90] sm:$0xff]  ;;  %v131_v30 = vld [vmem:[%s1628_s2 + $0x258] sm:$0xff]  ;;  %v165_v31 = vld [vmem:[%s1628_s2 + $0x368] sm:$0xff] }
  0x21   :  { %806 = vmatprep.subr.mxu1 %v72_v60  ;;  %846 = vmatprep.subr.mxu0 %v106_v61  ;;  %v146_v32 = vld [vmem:[%s1628_s2 + $0x2d0] sm:$0xff]  ;;  %v180_v33 = vld [vmem:[%s1628_s2 + $0x3e0] sm:$0xff]  ;;  %v41_v34 = vld [vmem:[%s1630_s0 + $0xa8] sm:$0xff] }
  0x22   :  { %979 = vmatprep.mubr.msk.f32.mxu0 %vm206_vm1, %v202_v62  ;;  %807 = vmatpush3.msra.mxu1 %v56_v63  ;;  %v130_v35 = vld [vmem:[%s1628_s2 + $0x250] sm:$0xff]  ;;  %v164_v36 = vld [vmem:[%s1628_s2 + $0x360] sm:$0xff]  ;;  %v145_v39 = vld [vmem:[%s1628_s2 + $0x2c8] sm:$0xff] }
  0x23   :  { %372 = vmatprep.mubr.f32.mxu1 %v21_v0  ;;  %847 = vmatpush3.msra.mxu0 %v90_v1  ;;  %v48_v37 = vld [vmem:[%s1630_s0 + $0xe0] sm:$0xff]  ;;  %v179_v40 = vld [vmem:[%s1628_s2 + $0x3d8] sm:$0xff]  ;;  %v129_v42 = vld [vmem:[%s1628_s2 + $0x248] sm:$0xff] }
  0x24   :  { %980 = vmatmul.mubr.msk.f32.gmra.mxu0 %vm206_vm1, %v203_v2  ;;  %373 = vmatmul.mubr.f32.vlgmr.msra.gmra.mxu1 %v20_v3  ;;  %v40_v38 = vld [vmem:[%s1630_s0 + $0xa0] sm:$0xff]  ;;  %v47_v41 = vld [vmem:[%s1630_s0 + $0xd8] sm:$0xff]  ;;  %v178_v45 = vld [vmem:[%s1628_s2 + $0x3d0] sm:$0xff] }
  0x25   :  { %848 = vmatprep.subr.mxu0 %v105_v4  ;;  %864 = vmatprep.subr.mxu1 %v151_v5  ;;  %v163_v43 = vld [vmem:[%s1628_s2 + $0x358] sm:$0xff]  ;;  %v144_v44 = vld [vmem:[%s1628_s2 + $0x2c0] sm:$0xff]  ;;  %v50_v46 = vld [vmem:[%s1630_s0 + $0xf0] sm:$0xff] }
  0x26   :  { %849 = vmatpush3.msra.mxu0 %v89_v6  ;;  %865 = vmatpush3.msra.mxu1 %v135_v7  ;;  %v128_v47 = vld [vmem:[%s1628_s2 + $0x240] sm:$0xff]  ;;  %v162_v48 = vld [vmem:[%s1628_s2 + $0x350] sm:$0xff]  ;;  %v143_v49 = vld [vmem:[%s1628_s2 + $0x2b8] sm:$0xff] }
  0x27   :  { %850 = vmatprep.subr.mxu0 %v104_v8  ;;  %866 = vmatprep.subr.mxu1 %v150_v9  ;;  %v49_v50 = vld [vmem:[%s1630_s0 + $0xe8] sm:$0xff]  ;;  %v127_v52 = vld [vmem:[%s1628_s2 + $0x238] sm:$0xff]  ;;  %v142_v54 = vld [vmem:[%s1628_s2 + $0x2b0] sm:$0xff] }
  0x28   :  { %377 = vmatprep.mubr.f32.mxu1 %v30_v10  ;;  %851 = vmatpush3.msra.mxu0 %v88_v11  ;;  %v177_v51 = vld [vmem:[%s1628_s2 + $0x3c8] sm:$0xff]  ;;  %v176_v55 = vld [vmem:[%s1628_s2 + $0x3c0] sm:$0xff]  ;;  %v126_v56 = vld [vmem:[%s1628_s2 + $0x230] sm:$0xff] }
  0x29   :  { %457 = vmatprep.mubr.f32.mxu0 %v23_v12  ;;  %867 = vmatpush3.msra.mxu1 %v134_v13  ;;  %v161_v53 = vld [vmem:[%s1628_s2 + $0x348] sm:$0xff]  ;;  %v160_v57 = vld [vmem:[%s1628_s2 + $0x340] sm:$0xff]  ;;  %v175_v59 = vld [vmem:[%s1628_s2 + $0x3b8] sm:$0xff] }
  0x2a   :  { %378 = vmatmul.mubr.f32.gmra.mxu1 %v29_v14  ;;  %458 = vmatmul.mubr.f32.vlgmr.msra.gmra.mxu0 %v22_v15  ;;  %v141_v58 = vld [vmem:[%s1628_s2 + $0x2a8] sm:$0xff]  ;;  %v159_v61 = vld [vmem:[%s1628_s2 + $0x338] sm:$0xff]  ;;  %v140_v62 = vld [vmem:[%s1628_s2 + $0x2a0] sm:$0xff] }
  0x2b   :  { %868 = vmatprep.subr.mxu1 %v149_v16  ;;  %908 = vmatprep.subr.mxu0 %v183_v17  ;;  %v125_v60 = vld [vmem:[%s1628_s2 + $0x228] sm:$0xff]  ;;  %v174_v63 = vld [vmem:[%s1628_s2 + $0x3b0] sm:$0xff]  ;;  %v124_v0 = vld [vmem:[%s1628_s2 + $0x220] sm:$0xff] }
  0x2c   :  { %869 = vmatpush3.msra.mxu1 %v133_v18  ;;  %909 = vmatpush3.msra.mxu0 %v167_v19  ;;  %v158_v1 = vld [vmem:[%s1628_s2 + $0x330] sm:$0xff]  ;;  %v139_v2 = vld [vmem:[%s1628_s2 + $0x298] sm:$0xff]  ;;  %v173_v3 = vld [vmem:[%s1628_s2 + $0x3a8] sm:$0xff] }
  0x2d   :  { %870 = vmatprep.subr.mxu1 %v148_v20  ;;  %910 = vmatprep.subr.mxu0 %v182_v21  ;;  %v123_v4 = vld [vmem:[%s1628_s2 + $0x218] sm:$0xff]  ;;  %v157_v5 = vld [vmem:[%s1628_s2 + $0x328] sm:$0xff]  ;;  %v138_v6 = vld [vmem:[%s1628_s2 + $0x290] sm:$0xff] }
  0x2e   :  { %462 = vmatprep.mubr.f32.mxu0 %v32_v22  ;;  %871 = vmatpush3.msra.mxu1 %v132_v23  ;;  %v172_v7 = vld [vmem:[%s1628_s2 + $0x3a0] sm:$0xff]  ;;  %v122_v8 = vld [vmem:[%s1628_s2 + $0x210] sm:$0xff]  ;;  %v137_v10 = vld [vmem:[%s1628_s2 + $0x288] sm:$0xff] }
  0x2f   :  { %911 = vmatpush3.msra.mxu0 %v166_v24  ;;  %382 = vmatprep.mubr.f32.mxu1 %v39_v25  ;;  %v156_v9 = vld [vmem:[%s1628_s2 + $0x320] sm:$0xff]  ;;  %v171_v11 = vld [vmem:[%s1628_s2 + $0x398] sm:$0xff]  ;;  %v121_v12 = vld [vmem:[%s1628_s2 + $0x208] sm:$0xff] }
  0x30   :  { %463 = vmatmul.mubr.f32.gmra.mxu0 %v31_v26  ;;  %872 = vmatprep.subr.mxu1 %v147_v27  ;;  %v155_v13 = vld [vmem:[%s1628_s2 + $0x318] sm:$0xff]  ;;  %v136_v14 = vld [vmem:[%s1628_s2 + $0x280] sm:$0xff]  ;;  %v170_v15 = vld [vmem:[%s1628_s2 + $0x390] sm:$0xff] }
  0x31   :  { %912 = vmatprep.subr.mxu0 %v181_v28  ;;  %383 = vmatmul.mubr.f32.gmra.mxu1 %v38_v29  ;;  %v120_v16 = vld [vmem:[%s1628_s2 + $0x200] sm:$0xff]  ;;  %v25_v17 = vld [vmem:[%s1630_s0 + $0x28] sm:$0xff]  ;;  %v154_v18 = vld [vmem:[%s1628_s2 + $0x310] sm:$0xff] }
  0x32   :  { %873 = vmatpush3.msra.mxu1 %v131_v30  ;;  %913 = vmatpush3.msra.mxu0 %v165_v31  ;;  %v24_v19 = vld [vmem:[%s1630_s0 + $0x20] sm:$0xff]  ;;  %v169_v20 = vld [vmem:[%s1628_s2 + $0x388] sm:$0xff]  ;;  %v199_v21 = vld [vmem:[%s1628_s2 + $0x478] sm:$0xff] }
  0x33   :  { %874 = vmatprep.subr.mxu1 %v146_v32  ;;  %914 = vmatprep.subr.mxu0 %v180_v33  ;;  %v153_v22 = vld [vmem:[%s1628_s2 + $0x308] sm:$0xff]  ;;  %v168_v23 = vld [vmem:[%s1628_s2 + $0x380] sm:$0xff]  ;;  %v198_v24 = vld [vmem:[%s1628_s2 + $0x470] sm:$0xff] }
  0x34   :  { %467 = vmatprep.mubr.f32.mxu0 %v41_v34  ;;  %875 = vmatpush3.msra.mxu1 %v130_v35  ;;  %v34_v25 = vld [vmem:[%s1630_s0 + $0x70] sm:$0xff]  ;;  %v152_v26 = vld [vmem:[%s1628_s2 + $0x300] sm:$0xff]  ;;  %v27_v27 = vld [vmem:[%s1630_s0 + $0x38] sm:$0xff] }
  0x35   :  { %915 = vmatpush3.msra.mxu0 %v164_v36  ;;  %387 = vmatprep.mubr.f32.mxu1 %v48_v37  ;;  %v33_v28 = vld [vmem:[%s1630_s0 + $0x68] sm:$0xff]  ;;  %v26_v29 = vld [vmem:[%s1630_s0 + $0x30] sm:$0xff]  ;;  %v43_v31 = vld [vmem:[%s1630_s0 + $0xb8] sm:$0xff] }
  0x36   :  { %468 = vmatmul.mubr.f32.gmra.mxu0 %v40_v38  ;;  %876 = vmatprep.subr.mxu1 %v145_v39  ;;  %v197_v30 = vld [vmem:[%s1628_s2 + $0x468] sm:$0xff]  ;;  %v36_v32 = vld [vmem:[%s1630_s0 + $0x80] sm:$0xff]  ;;  %v35_v34 = vld [vmem:[%s1630_s0 + $0x78] sm:$0xff] }
  0x37   :  { %916 = vmatprep.subr.mxu0 %v179_v40  ;;  %388 = vmatmul.mubr.f32.gmra.mxu1 %v47_v41  ;;  %v196_v33 = vld [vmem:[%s1628_s2 + $0x460] sm:$0xff]  ;;  %v42_v35 = vld [vmem:[%s1630_s0 + $0xb0] sm:$0xff]  ;;  %v195_v36 = vld [vmem:[%s1628_s2 + $0x458] sm:$0xff] }
  0x38   :  { %877 = vmatpush3.msra.mxu1 %v129_v42  ;;  %917 = vmatpush3.msra.mxu0 %v163_v43  ;;  %v52_v37 = vld [vmem:[%s1630_s0 + $0x100] sm:$0xff]  ;;  %v194_v38 = vld [vmem:[%s1628_s2 + $0x450] sm:$0xff]  ;;  %v45_v39 = vld [vmem:[%s1630_s0 + $0xc8] sm:$0xff] }
  0x39   :  { %878 = vmatprep.subr.mxu1 %v144_v44  ;;  %918 = vmatprep.subr.mxu0 %v178_v45  ;;  %v44_v40 = vld [vmem:[%s1630_s0 + $0xc0] sm:$0xff]  ;;  %v51_v41 = vld [vmem:[%s1630_s0 + $0xf8] sm:$0xff]  ;;  %v193_v42 = vld [vmem:[%s1628_s2 + $0x448] sm:$0xff] }
  0x3a   :  { %472 = vmatprep.mubr.f32.mxu0 %v50_v46  ;;  %879 = vmatpush3.msra.mxu1 %v128_v47  ;;  %v54_v43 = vld [vmem:[%s1630_s0 + $0x110] sm:$0xff]  ;;  %v192_v44 = vld [vmem:[%s1628_s2 + $0x440] sm:$0xff]  ;;  %v53_v46 = vld [vmem:[%s1630_s0 + $0x108] sm:$0xff] }
  0x3b   :  { %919 = vmatpush3.msra.mxu0 %v162_v48  ;;  %880 = vmatprep.subr.mxu1 %v143_v49  ;;  %v28_v45 = vld [vmem:[%s1630_s0 + $0x40] sm:$0xff]  ;;  %v191_v47 = vld [vmem:[%s1628_s2 + $0x438] sm:$0xff]  ;;  %v190_v48 = vld [vmem:[%s1628_s2 + $0x430] sm:$0xff] }
  0x3c   :  { %473 = vmatmul.mubr.f32.gmra.mxu0 %v49_v50  ;;  %920 = vmatprep.subr.mxu0 %v177_v51  ;;  %v189_v49 = vld [vmem:[%s1628_s2 + $0x428] sm:$0xff]  ;;  %v188_v50 = vld [vmem:[%s1628_s2 + $0x420] sm:$0xff]  ;;  %v187_v51 = vld [vmem:[%s1628_s2 + $0x418] sm:$0xff] }
  0x3d   :  { %881 = vmatpush3.msra.mxu1 %v127_v52  ;;  %921 = vmatpush3.msra.mxu0 %v161_v53  ;;  %v186_v52 = vld [vmem:[%s1628_s2 + $0x410] sm:$0xff]  ;;  %v185_v53 = vld [vmem:[%s1628_s2 + $0x408] sm:$0xff] }
  0x3e   :  { %882 = vmatprep.subr.mxu1 %v142_v54  ;;  %922 = vmatprep.subr.mxu0 %v176_v55  ;;  %v184_v54 = vld [vmem:[%s1628_s2 + $0x400] sm:$0xff]  ;;  %v37_v55 = vld [vmem:[%s1630_s0 + $0x88] sm:$0xff] }
  0x3f   :  { %883 = vmatpush3.msra.mxu1 %v126_v56  ;;  %923 = vmatpush3.msra.mxu0 %v160_v57  ;;  %v46_v56 = vld [vmem:[%s1630_s0 + $0xd0] sm:$0xff]  ;;  %v55_v57 = vld [vmem:[%s1630_s0 + $0x118] sm:$0xff] }
  0x40   :  { %884 = vmatprep.subr.mxu1 %v141_v58  ;;  %924 = vmatprep.subr.mxu0 %v175_v59 }
  0x41   :  { %885 = vmatpush3.msra.mxu1 %v125_v60  ;;  %925 = vmatpush3.msra.mxu0 %v159_v61 }
  0x42   :  { %886 = vmatprep.subr.mxu1 %v140_v62  ;;  %926 = vmatprep.subr.mxu0 %v174_v63 }
  0x43   :  { %887 = vmatpush3.msra.mxu1 %v124_v0  ;;  %927 = vmatpush3.msra.mxu0 %v158_v1 }
  0x44   :  { %888 = vmatprep.subr.mxu1 %v139_v2  ;;  %928 = vmatprep.subr.mxu0 %v173_v3 }
  0x45   :  { %889 = vmatpush3.msra.mxu1 %v123_v4  ;;  %929 = vmatpush3.msra.mxu0 %v157_v5 }
  0x46   :  { %890 = vmatprep.subr.mxu1 %v138_v6  ;;  %930 = vmatprep.subr.mxu0 %v172_v7 }
  0x47   :  { %891 = vmatpush3.msra.mxu1 %v122_v8  ;;  %931 = vmatpush3.msra.mxu0 %v156_v9 }
  0x48   :  { %892 = vmatprep.subr.mxu1 %v137_v10  ;;  %932 = vmatprep.subr.mxu0 %v171_v11 }
  0x49   :  { %893 = vmatpush3.msra.mxu1 %v121_v12  ;;  %933 = vmatpush3.msra.mxu0 %v155_v13 }
  0x4a   :  { %894 = vmatprep.subr.mxu1 %v136_v14  ;;  %934 = vmatprep.subr.mxu0 %v170_v15 }
  0x4b   :  { %895 = vmatpush3.msra.mxu1 %v120_v16  ;;  %542 = vmatprep.mubr.f32.mxu1 %v25_v17 }
  0x4c   :  { %935 = vmatpush3.msra.mxu0 %v154_v18  ;;  %543 = vmatmul.mubr.f32.vlgmr.msra.gmra.mxu1 %v24_v19 }
  0x4d   :  { %936 = vmatprep.subr.mxu0 %v169_v20  ;;  %982 = vmatprep.subr.mxu1 %v199_v21 }
  0x4e   :  { %937 = vmatpush3.msra.mxu0 %v153_v22  ;;  %983 = vmatpush3.msra.mxu1 %v199_v21 }
  0x4f   :  { %938 = vmatprep.subr.mxu0 %v168_v23  ;;  %984 = vmatprep.subr.mxu1 %v198_v24 }
  0x50   :  { %547 = vmatprep.mubr.f32.mxu1 %v34_v25  ;;  %939 = vmatpush3.msra.mxu0 %v152_v26 }
  0x51   :  { %627 = vmatprep.mubr.f32.mxu0 %v27_v27  ;;  %985 = vmatpush3.msra.mxu1 %v198_v24 }
  0x52   :  { %548 = vmatmul.mubr.f32.gmra.mxu1 %v33_v28  ;;  %628 = vmatmul.mubr.f32.vlgmr.msra.gmra.mxu0 %v26_v29 }
  0x53   :  { %986 = vmatprep.subr.mxu1 %v197_v30  ;;  %552 = vmatprep.mubr.f32.mxu1 %v43_v31 }
  0x54   :  { %987 = vmatpush3.msra.mxu1 %v197_v30  ;;  %632 = vmatprep.mubr.f32.mxu0 %v36_v32 }
  0x55   :  { %988 = vmatprep.subr.mxu1 %v196_v33 }
  0x56   :  { %989 = vmatpush3.msra.mxu1 %v196_v33  ;;  %633 = vmatmul.mubr.f32.gmra.mxu0 %v35_v34 }
  0x57   :  { %553 = vmatmul.mubr.f32.gmra.mxu1 %v42_v35  ;;  %990 = vmatprep.subr.mxu1 %v195_v36 }
  0x58   :  { %991 = vmatpush3.msra.mxu1 %v195_v36  ;;  %557 = vmatprep.mubr.f32.mxu1 %v52_v37 }
  0x59   :  { %992 = vmatprep.subr.mxu1 %v194_v38  ;;  %637 = vmatprep.mubr.f32.mxu0 %v45_v39 }
  0x5a   :  { %993 = vmatpush3.msra.mxu1 %v194_v38  ;;  %638 = vmatmul.mubr.f32.gmra.mxu0 %v44_v40 }
  0x5b   :  { %558 = vmatmul.mubr.f32.gmra.mxu1 %v51_v41  ;;  %994 = vmatprep.subr.mxu1 %v193_v42 }
  0x5c   :  { %995 = vmatpush3.msra.mxu1 %v193_v42  ;;  %642 = vmatprep.mubr.f32.mxu0 %v54_v43 }
  0x5d   :  { %996 = vmatprep.subr.mxu1 %v192_v44  ;;  %1014 = vmatprep.mubr.f32.mxu1 %v28_v45 }
  0x5e   :  { %997 = vmatpush3.msra.mxu1 %v192_v44  ;;  %643 = vmatmul.mubr.f32.gmra.mxu0 %v53_v46 }
  0x5f   :  { %998 = vmatprep.subr.mxu1 %v191_v47 }
  0x60   :  { %999 = vmatpush3.msra.mxu1 %v191_v47 }
  0x61   :  { %1000 = vmatprep.subr.mxu1 %v190_v48 }
  0x62   :  { %1001 = vmatpush3.msra.mxu1 %v190_v48 }
  0x63   :  { %1002 = vmatprep.subr.mxu1 %v189_v49 }
  0x64   :  { %1003 = vmatpush3.msra.mxu1 %v189_v49 }
  0x65   :  { %1004 = vmatprep.subr.mxu1 %v188_v50 }
  0x66   :  { %1005 = vmatpush3.msra.mxu1 %v188_v50 }
  0x67   :  { %1006 = vmatprep.subr.mxu1 %v187_v51 }
  0x68   :  { %1007 = vmatpush3.msra.mxu1 %v187_v51 }
  0x69   :  { %1008 = vmatprep.subr.mxu1 %v186_v52 }
  0x6a   :  { %1009 = vmatpush3.msra.mxu1 %v186_v52 }
  0x6b   :  { %1010 = vmatprep.subr.mxu1 %v185_v53 }
  0x6c   :  { %1011 = vmatpush3.msra.mxu1 %v185_v53 }
  0x6d   :  { %1012 = vmatprep.subr.mxu1 %v184_v54 }
  0x6e   :  { %1013 = vmatpush3.msra.mxu1 %v184_v54 }
  0x6f   :  { %1015 = vmatmul.mubr.f32.vlgmr.msra.gmra.mxu1 %v37_v55 }
  0x70   :  { %1017 = vmatprep.mubr.f32.mxu1 %v46_v56 }
  0x73   :  { %1018 = vmatmul.mubr.f32.gmra.mxu1 %v55_v57 }
  0xc7   :  { %v978_v58 = vpop.f32.mrf.mxu0 }
  0xc9   :  { %v289_v59 = vpop.f32.mrf.mxu0 }
  0xe4   :  { %v981_v60 = vpop.f32.mrf.mxu0  ;;  %v808_v61 = vpop.f32.mrf.mxu1 }
  0xe6   :  { %v299_v62 = vpop.f32.mrf.mxu0  ;;  %v809_v63 = vpop.f32.mrf.mxu1 }
  0xe7   :  { %v810_v27 = vadd.f32 %v809_v63, %v808_v61 }
  0xe9   :  { %v375_v36 = vadd.f32 %v810_v27, %v289_v59 }
  0xea   :  { %v852_v0 = vpop.f32.mrf.mxu0  ;;  %v811_v1 = vpop.f32.mrf.mxu1 }
  0xec   :  { %v853_v2 = vpop.f32.mrf.mxu0  ;;  %v812_v3 = vpop.f32.mrf.mxu1 }
  0xed   :  { %v813_v25 = vadd.f32 %v812_v3, %v811_v1  ;;  %v854_v34 = vadd.f32 %v853_v2, %v852_v0  ;;  %v769_v0 = vld [vmem:[%s1631_s4] ss:$0 sm:$0xff] }
  0xef   :  { %v380_v31 = vadd.f32 %v978_v58, %v813_v25  ;;  %v460_v46 = vadd.f32 %v854_v34, %v375_v36 }
  0xf0   :  { %v855_v4 = vpop.f32.mrf.mxu0 }
  0xf1   :  { %v814_v5 = vpop.f32.mrf.mxu1 }
  0xf2   :  { %v856_v6 = vpop.f32.mrf.mxu0 }
  0xf3   :  { %v815_v7 = vpop.f32.mrf.mxu1  ;;  %v857_v28 = vadd.f32 %v856_v6, %v855_v4 }
  0xf4   :  { %v816_v32 = vadd.f32 %v815_v7, %v814_v5 }
  0xf5   :  { %v465_v37 = vadd.f32 %v857_v28, %v380_v31 }
  0xf6   :  { %v858_v8 = vpop.f32.mrf.mxu0  ;;  %v385_v43 = vadd.f32 %v816_v32, %v299_v62 }
  0xf7   :  { %v817_v9 = vpop.f32.mrf.mxu1 }
  0xf8   :  { %v859_v10 = vpop.f32.mrf.mxu0 }
  0xf9   :  { %v818_v11 = vpop.f32.mrf.mxu1  ;;  %v860_v44 = vadd.f32 %v859_v10, %v858_v8 }
  0xfa   :  { %v819_v30 = vadd.f32 %v818_v11, %v817_v9 }
  0xfb   :  { %v470_v55 = vadd.f32 %v860_v44, %v385_v43 }
  0xfc   :  { %v861_v12 = vpop.f32.mrf.mxu0  ;;  %v390_v39 = vadd.f32 %v981_v60, %v819_v30 }
  0xfe   :  { %v862_v14 = vpop.f32.mrf.mxu0 }
  0xff   :  { %v863_v40 = vadd.f32 %v862_v14, %v861_v12 }
 0x101   :  { %v475_v51 = vadd.f32 %v863_v40, %v390_v39 }
 0x10c   :  { %v896_v13 = vpop.f32.mrf.mxu1 }
 0x10e   :  { %v897_v15 = vpop.f32.mrf.mxu1 }
 0x10f   :  { %v898_v41 = vadd.f32 %v897_v15, %v896_v13 }
 0x111   :  { %v545_v52 = vadd.f32 %v898_v41, %v460_v46 }
 0x112   :  { %v940_v16 = vpop.f32.mrf.mxu0  ;;  %v899_v18 = vpop.f32.mrf.mxu1 }
 0x114   :  { %v941_v17 = vpop.f32.mrf.mxu0  ;;  %v900_v20 = vpop.f32.mrf.mxu1 }
 0x115   :  { %v901_v35 = vadd.f32 %v900_v20, %v899_v18  ;;  %v942_v48 = vadd.f32 %v941_v17, %v940_v16 }
 0x116   :  { %v943_v19 = vpop.f32.mrf.mxu0 }
 0x117   :  { %v902_v22 = vpop.f32.mrf.mxu1  ;;  %v550_v47 = vadd.f32 %v901_v35, %v465_v37  ;;  %v630_v60 = vadd.f32 %v942_v48, %v545_v52 }
 0x118   :  { %v944_v21 = vpop.f32.mrf.mxu0 }
 0x119   :  { %v903_v24 = vpop.f32.mrf.mxu1  ;;  %v945_v42 = vadd.f32 %v944_v21, %v943_v19 }
 0x11a   :  { %v946_v23 = vpop.f32.mrf.mxu0  ;;  %v904_v50 = vadd.f32 %v903_v24, %v902_v22 }
 0x11b   :  { %v905_v29 = vpop.f32.mrf.mxu1  ;;  %v635_v54 = vadd.f32 %v945_v42, %v550_v47 }
 0x11c   :  { %v947_v26 = vpop.f32.mrf.mxu0  ;;  %v555_v61 = vadd.f32 %v904_v50, %v470_v55 }
 0x11d   :  { %v906_v38 = vpop.f32.mrf.mxu1  ;;  %v948_v56 = vadd.f32 %v947_v26, %v946_v23 }
 0x11e   :  { %v949_v33 = vpop.f32.mrf.mxu0  ;;  %v907_v49 = vadd.f32 %v906_v38, %v905_v29 }
 0x11f   :  { %v640_v4 = vadd.f32 %v948_v56, %v555_v61 }
 0x120   :  { %v950_v45 = vpop.f32.mrf.mxu0  ;;  %v560_v58 = vadd.f32 %v907_v49, %v475_v51 }
 0x121   :  { %v951_v53 = vadd.f32 %v950_v45, %v949_v33 }
 0x123   :  { %v645_v2 = vadd.f32 %v951_v53, %v560_v58 }
 0x12f   :  { %v1016_v57 = vpop.f32.mrf.mxu1 }
 0x130   :  { %v720_v59 = vadd.f32 %v1016_v57, %v635_v54 }
 0x131   :  { %v714_v63 = vpop.f32.mrf.mxu1 }
 0x132   :  { %vm734_vm2 = vcmp.ge.f32.partialorder %v720_v59, 0.0  ;;  %v738_v62 = vmul.f32 0.2, %v720_v59  ;;  %v715_v1 = vadd.f32 %v714_v63, %v630_v60 }
 0x133   :  { %v1019_v3 = vpop.f32.mrf.mxu1 }
 0x134   :  { %v742_v5 = vsel %vm734_vm2, %v720_v59, %v738_v62  ;;  %vm733_vm3 = vcmp.ge.f32.partialorder %v715_v1, 0.0  ;;  %v737_v6 = vmul.f32 0.2, %v715_v1  ;;  %v730_v7 = vadd.f32 %v1019_v3, %v645_v2 }
 0x135   :  { %v753_v8 = vadd.f32 %v769_v0, %v742_v5  ;;  %v724_v9 = vpop.f32.mrf.mxu1 }
 0x136   :  { %v741_v10 = vsel %vm733_vm3, %v715_v1, %v737_v6  ;;  %vm736_vm4 = vcmp.ge.f32.partialorder %v730_v7, 0.0  ;;  %v740_v11 = vmul.f32 0.2, %v730_v7  ;;  %v725_v12 = vadd.f32 %v724_v9, %v640_v4 }
 0x137   :  { %757 = vst [vmem:[%s1632_s5 + $0x8] sm:$0xff] %v753_v8  ;;  %v752_v13 = vadd.f32 %v769_v0, %v741_v10 }
 0x138   :  { %v744_v14 = vsel %vm736_vm4, %v730_v7, %v740_v11  ;;  %vm735_vm5 = vcmp.ge.f32.partialorder %v725_v12, 0.0  ;;  %v739_v15 = vmul.f32 0.2, %v725_v12 }
 0x139   :  { %756 = vst [vmem:[%s1632_s5] sm:$0xff] %v752_v13  ;;  %v755_v16 = vadd.f32 %v769_v0, %v744_v14 }
 0x13a   :  { %v743_v17 = vsel %vm735_vm5, %v725_v12, %v739_v15 }
 0x13b   :  { %759 = vst [vmem:[%s1632_s5 + $0x18] sm:$0xff] %v755_v16  ;;  %v754_v18 = vadd.f32 %v769_v0, %v743_v17 }
 0x13d   :  { %758 = vst [vmem:[%s1632_s5 + $0x10] sm:$0xff] %v754_v18 }

// kernel: forward.11
= control target key start
LH: loop header
LB: loop body
LE: loop exit
PB: predicated region body
PF: predicated region fallthrough
CT: control target
= control target key end

     0   :  { %vm92_vm0 = vcmask 1043456   ;;  %v469_v2 = vmov 0.0   ;;  %vm88_vm1 = vcmask 31744   ;;  %vm470_vm2 = vmmov 0   ;;  %s710_s0 = inlined_call_operand.vmem [shape: f32[2,512], index: 0, kind: input, shape index: {}]   ;;  %s711_s1 = inlined_call_operand.vmem [shape: f32[2,4], index: 1, kind: input, shape index: {}]   ;;  %s712_s2 = inlined_call_operand.vmem [shape: f32[512,128], index: 2, kind: input, shape index: {}]   ;;  %s713_s3 = inlined_call_operand.vmem [shape: f32[4,128], index: 3, kind: input, shape index: {}]   ;;  %s714_s4 = inlined_call_operand.vmem [shape: f32[1,128], index: 4, kind: input, shape index: {}]   ;;  %s715_s5 = inlined_call_operand.hbm [shape: f32[2,128], index: 5, kind: output, shape index: {}]  }
   0x1   :  { %v53_v0 = vld [vmem:[%s712_s2 + $0xf8] sm:$0xff]  ;;  %v87_v1 = vld [vmem:[%s713_s3] sm:$0xf]  ;;  %433 = vmatprep.subr.mxu0 %v469_v2  ;;  %v52_v5 = vld [vmem:[%s712_s2 + $0xf0] sm:$0xff]  ;;  %435 = vmatprep.mubr.msk.f32.mxu0 %vm470_vm2, %v469_v2  ;;  %v471_v31 = vmov 1983009808   ;;  %v171_v33 = vlaneseq }
   0x2   :  { %363 = vmatprep.subr.mxu1 %v53_v0  ;;  %v37_v3 = vld [vmem:[%s712_s2 + $0x78] sm:$0xff]  ;;  %v86_v4 = vld [vmem:[%s711_s1] sm:$0x3]  ;;  %434 = vmatpush3.msk.msra.mxu0 %vm92_vm0, %v87_v1  ;;  %v36_v7 = vld [vmem:[%s712_s2 + $0x70] sm:$0xff]  ;;  %v169_v32 = vunpack.c.l.s4 %v471_v31 }
   0x3   :  { %v85_v6 = vld [vmem:[%s712_s2 + $0x1f8] sm:$0xff]  ;;  %364 = vmatpush3.msra.mxu1 %v37_v3  ;;  %436 = vmatmul.mubr.msk.f32.vlgmr.msra.gmra.mxu0 %vm88_vm1, %v86_v4  ;;  %v51_v9 = vld [vmem:[%s712_s2 + $0xe8] sm:$0xff]  ;;  %v84_v10 = vld [vmem:[%s712_s2 + $0x1f0] sm:$0xff]  ;;  %v172_v43 = vshrl.u32 %v171_v33, 7 }
   0x4   :  { %v69_v8 = vld [vmem:[%s712_s2 + $0x178] sm:$0xff]  ;;  %365 = vmatprep.subr.mxu1 %v52_v5  ;;  %398 = vmatprep.subr.mxu0 %v85_v6  ;;  %v35_v11 = vld [vmem:[%s712_s2 + $0x68] sm:$0xff]  ;;  %v68_v12 = vld [vmem:[%s712_s2 + $0x170] sm:$0xff]  ;;  %v170_v42 = vunpack.c.0.s8 %v169_v32 }
   0x5   :  { %366 = vmatpush3.msra.mxu1 %v36_v7  ;;  %399 = vmatpush3.msra.mxu0 %v69_v8  ;;  %v50_v13 = vld [vmem:[%s712_s2 + $0xe0] sm:$0xff]  ;;  %v83_v14 = vld [vmem:[%s712_s2 + $0x1e8] sm:$0xff]  ;;  %v49_v17 = vld [vmem:[%s712_s2 + $0xd8] sm:$0xff] }
   0x6   :  { %367 = vmatprep.subr.mxu1 %v51_v9  ;;  %400 = vmatprep.subr.mxu0 %v84_v10  ;;  %v34_v15 = vld [vmem:[%s712_s2 + $0x60] sm:$0xff]  ;;  %v67_v16 = vld [vmem:[%s712_s2 + $0x168] sm:$0xff]  ;;  %v33_v19 = vld [vmem:[%s712_s2 + $0x58] sm:$0xff]  ;;  %v173_v53 = vsub.s32 %v170_v42, %v172_v43 }
   0x7   :  { %368 = vmatpush3.msra.mxu1 %v35_v11  ;;  %401 = vmatpush3.msra.mxu0 %v68_v12  ;;  %v82_v18 = vld [vmem:[%s712_s2 + $0x1e0] sm:$0xff]  ;;  %v48_v21 = vld [vmem:[%s712_s2 + $0xd0] sm:$0xff]  ;;  %v81_v22 = vld [vmem:[%s712_s2 + $0x1d8] sm:$0xff] }
   0x8   :  { %369 = vmatprep.subr.mxu1 %v50_v13  ;;  %402 = vmatprep.subr.mxu0 %v83_v14  ;;  %v66_v20 = vld [vmem:[%s712_s2 + $0x160] sm:$0xff]  ;;  %v32_v23 = vld [vmem:[%s712_s2 + $0x50] sm:$0xff]  ;;  %v65_v24 = vld [vmem:[%s712_s2 + $0x158] sm:$0xff] }
   0x9   :  { %370 = vmatpush3.msra.mxu1 %v34_v15  ;;  %403 = vmatpush3.msra.mxu0 %v67_v16  ;;  %v47_v25 = vld [vmem:[%s712_s2 + $0xc8] sm:$0xff]  ;;  %v80_v26 = vld [vmem:[%s712_s2 + $0x1d0] sm:$0xff]  ;;  %v46_v29 = vld [vmem:[%s712_s2 + $0xc0] sm:$0xff] }
   0xa   :  { %371 = vmatprep.subr.mxu1 %v49_v17  ;;  %404 = vmatprep.subr.mxu0 %v82_v18  ;;  %v31_v27 = vld [vmem:[%s712_s2 + $0x48] sm:$0xff]  ;;  %v64_v28 = vld [vmem:[%s712_s2 + $0x150] sm:$0xff]  ;;  %v30_v34 = vld [vmem:[%s712_s2 + $0x40] sm:$0xff] }
   0xb   :  { %372 = vmatpush3.msra.mxu1 %v33_v19  ;;  %405 = vmatpush3.msra.mxu0 %v66_v20  ;;  %v79_v30 = vld [vmem:[%s712_s2 + $0x1c8] sm:$0xff]  ;;  %v45_v36 = vld [vmem:[%s712_s2 + $0xb8] sm:$0xff]  ;;  %v78_v37 = vld [vmem:[%s712_s2 + $0x1c0] sm:$0xff] }
   0xc   :  { %373 = vmatprep.subr.mxu1 %v48_v21  ;;  %406 = vmatprep.subr.mxu0 %v81_v22  ;;  %v63_v35 = vld [vmem:[%s712_s2 + $0x148] sm:$0xff]  ;;  %v29_v38 = vld [vmem:[%s712_s2 + $0x38] sm:$0xff]  ;;  %v62_v39 = vld [vmem:[%s712_s2 + $0x140] sm:$0xff] }
   0xd   :  { %374 = vmatpush3.msra.mxu1 %v32_v23  ;;  %407 = vmatpush3.msra.mxu0 %v65_v24  ;;  %v44_v40 = vld [vmem:[%s712_s2 + $0xb0] sm:$0xff]  ;;  %v77_v41 = vld [vmem:[%s712_s2 + $0x1b8] sm:$0xff]  ;;  %v43_v46 = vld [vmem:[%s712_s2 + $0xa8] sm:$0xff] }
   0xe   :  { %375 = vmatprep.subr.mxu1 %v47_v25  ;;  %408 = vmatprep.subr.mxu0 %v80_v26  ;;  %v28_v44 = vld [vmem:[%s712_s2 + $0x30] sm:$0xff]  ;;  %v61_v45 = vld [vmem:[%s712_s2 + $0x138] sm:$0xff]  ;;  %v27_v48 = vld [vmem:[%s712_s2 + $0x28] sm:$0xff] }
   0xf   :  { %376 = vmatpush3.msra.mxu1 %v31_v27  ;;  %409 = vmatpush3.msra.mxu0 %v64_v28  ;;  %v76_v47 = vld [vmem:[%s712_s2 + $0x1b0] sm:$0xff]  ;;  %v42_v50 = vld [vmem:[%s712_s2 + $0xa0] sm:$0xff]  ;;  %v75_v51 = vld [vmem:[%s712_s2 + $0x1a8] sm:$0xff] }
  0x10   :  { %377 = vmatprep.subr.mxu1 %v46_v29  ;;  %410 = vmatprep.subr.mxu0 %v79_v30  ;;  %v60_v49 = vld [vmem:[%s712_s2 + $0x130] sm:$0xff]  ;;  %v21_v52 = vld [vmem:[%s710_s0] sm:$0xff]  ;;  %v59_v55 = vld [vmem:[%s712_s2 + $0x128] sm:$0xff] }
  0x11   :  { %378 = vmatpush3.msra.mxu1 %v30_v34  ;;  %411 = vmatpush3.msra.mxu0 %v63_v35  ;;  %v26_v54 = vld [vmem:[%s712_s2 + $0x20] sm:$0xff] }
  0x12   :  { %379 = vmatprep.subr.mxu1 %v45_v36  ;;  %412 = vmatprep.subr.mxu0 %v78_v37 }
  0x13   :  { %380 = vmatpush3.msra.mxu1 %v29_v38  ;;  %413 = vmatpush3.msra.mxu0 %v62_v39 }
  0x14   :  { %381 = vmatprep.subr.mxu1 %v44_v40  ;;  %414 = vmatprep.subr.mxu0 %v77_v41 }
  0x15   :  { %382 = vmatpush3.msra.mxu1 %v28_v44  ;;  %415 = vmatpush3.msra.mxu0 %v61_v45 }
  0x16   :  { %383 = vmatprep.subr.mxu1 %v43_v46  ;;  %416 = vmatprep.subr.mxu0 %v76_v47 }
  0x17   :  { %10 = vsyncpa [#allocation3], 0  ;;  %384 = vmatpush3.msra.mxu1 %v27_v48  ;;  %417 = vmatpush3.msra.mxu0 %v60_v49  ;;  %v41_v56 = vld [vmem:[%s712_s2 + $0x98] sm:$0xff]  ;;  %v74_v57 = vld [vmem:[%s712_s2 + $0x1a0] sm:$0xff]  ;;  %v167_v58 = vcombine.high %v21_v52, %v21_v52  ;;  %v174_v63 = vrot.slane %v21_v52, %v173_v53  ;;  %s472_s16 = smov [#allocation2]  }
  0x18   :  { %385 = vmatprep.subr.mxu1 %v42_v50  ;;  %418 = vmatprep.subr.mxu0 %v75_v51  ;;  %v25_v59 = vld [vmem:[%s712_s2 + $0x18] sm:$0xff]  ;;  %v58_v60 = vld [vmem:[%s712_s2 + $0x120] sm:$0xff]  ;;  %v40_v61 = vld [vmem:[%s712_s2 + $0x90] sm:$0xff]  ;;  %s349_s17 = sshll.u32 %s472_s16, 4  ;;  %s350_s17 = int_to_ptr.vmem [resolvable:$true] %s349_s17 }
  0x19   :  { %386 = vmatpush3.msra.mxu1 %v26_v54  ;;  %419 = vmatpush3.msra.mxu0 %v59_v55  ;;  %v73_v62 = vld [vmem:[%s712_s2 + $0x198] sm:$0xff]  ;;  %v24_v0 = vld [vmem:[%s712_s2 + $0x10] sm:$0xff]  ;;  %v39_v2 = vld [vmem:[%s712_s2 + $0x88] sm:$0xff]  ;;  %v181_v4 = vrot.slane %v167_v58, %v173_v53  ;;  %v182_v9 = vcombine.high %v174_v63, %v174_v63  ;;  %s447_s18 = scalar_lea.vmem %s350_s17, 32  ;;  %p452_p1 = scmp.lt.s32.totalorder %s350_s17, %s350_s17 }
  0x1a   :  { %387 = vmatprep.subr.mxu1 %v41_v56  ;;  %420 = vmatprep.subr.mxu0 %v74_v57  ;;  %v57_v1 = vld [vmem:[%s712_s2 + $0x118] sm:$0xff]  ;;  %v72_v3 = vld [vmem:[%s712_s2 + $0x190] sm:$0xff]  ;;  %v23_v5 = vld [vmem:[%s712_s2 + $0x8] sm:$0xff]  ;;  %p448_p0 = scmp.ne.s32.totalorder %s350_s17, %s447_s18  ;;  %p453_p2 = scmp.lt.s32.totalorder %s447_s18, %s447_s18 }
  0x1b   :  { %388 = vmatpush3.msra.mxu1 %v25_v59  ;;  %421 = vmatpush3.msra.mxu0 %v58_v60  ;;  %v56_v6 = vld [vmem:[%s712_s2 + $0x110] sm:$0xff]  ;;  %v38_v7 = vld [vmem:[%s712_s2 + $0x80] sm:$0xff]  ;;  %v71_v8 = vld [vmem:[%s712_s2 + $0x188] sm:$0xff]  ;;  %v183_v12 = vcombine.high %v181_v4, %v181_v4 }
  0x1c   :  { %389 = vmatprep.subr.mxu1 %v40_v61  ;;  %422 = vmatprep.subr.mxu0 %v73_v62  ;;  %v22_v10 = vld [vmem:[%s712_s2] sm:$0xff]  ;;  %v55_v11 = vld [vmem:[%s712_s2 + $0x108] sm:$0xff]  ;;  %p454_p3 = por %p453_p2, %p452_p1 }
  0x1d   :  { %390 = vmatpush3.msra.mxu1 %v24_v0  ;;  %423 = vmatpush3.msra.mxu0 %v57_v1  ;;  %v70_v13 = vld [vmem:[%s712_s2 + $0x180] sm:$0xff] }
  0x1e   :  { %391 = vmatprep.subr.mxu1 %v39_v2  ;;  %424 = vmatprep.subr.mxu0 %v72_v3  ;;  %v54_v14 = vld [vmem:[%s712_s2 + $0x100] sm:$0xff]  ;;  %p455_p4 = pnand %p454_p3, %p448_p0 }
  0x1f   :  { %392 = vmatpush3.msra.mxu1 %v23_v5  ;;  %425 = vmatpush3.msra.mxu0 %v56_v6  ;;  %v360_v28 = vld [vmem:[%s714_s4] ss:$0 sm:$0xff] }
  0x20   :  { %393 = vmatprep.subr.mxu1 %v38_v7  ;;  %426 = vmatprep.subr.mxu0 %v71_v8 }
  0x21   :  { %394 = vmatpush3.msra.mxu1 %v22_v10  ;;  %252 = vmatprep.mubr.f32.mxu1 %v182_v9 }
  0x22   :  { %427 = vmatpush3.msra.mxu0 %v55_v11  ;;  %253 = vmatmul.mubr.f32.vlgmr.msra.gmra.mxu1 %v174_v63 }
  0x23   :  { %428 = vmatprep.subr.mxu0 %v70_v13  ;;  %322 = vmatprep.mubr.f32.mxu0 %v183_v12 }
  0x24   :  { %429 = vmatpush3.msra.mxu0 %v54_v14 }
  0x25   :  { %323 = vmatmul.mubr.f32.vlgmr.msra.gmra.mxu0 %v181_v4 }
  0xc3   :  { %v162_v15 = vpop.f32.mrf.mxu0 }
  0xc5   :  { %v437_v16 = vpop.f32.mrf.mxu0 }
  0xe2   :  { %v395_v17 = vpop.f32.mrf.mxu1 }
  0xe4   :  { %v396_v18 = vpop.f32.mrf.mxu1 }
  0xe5   :  { %v397_v19 = vadd.f32 %v396_v18, %v395_v17  ;;  %v430_v20 = vpop.f32.mrf.mxu0 }
  0xe7   :  { %v255_v21 = vadd.f32 %v397_v19, %v162_v15  ;;  %v431_v22 = vpop.f32.mrf.mxu0 }
  0xe8   :  { %v432_v23 = vadd.f32 %v431_v22, %v430_v20 }
  0xea   :  { %v325_v24 = vadd.f32 %v432_v23, %v255_v21 }
  0xec   :  { %v359_v25 = vmul.f32 -1.442695, %v325_v24 }
  0xee   :  { %443 = vpow2.f32 %v359_v25 }
  0xfb   :  { %v444_v26 = vpop.eup %443 }
  0xfc   :  { %v331_v27 = vadd.f32 1.0, %v444_v26 }
  0xfe   :  { %445 = vrcp.f32 %v331_v27 }
 0x10b   :  { %v446_v29 = vpop.eup %445 }
 0x10c   :  { %v341_v30 = vadd.f32 %v446_v29, %v360_v28 }
 0x10e   :  { %342 = vst [vmem:[#allocation2] sm:$0x3] %v341_v30 }
 0x10f   :  { %458 = shalt.err (!%p455_p4)
}
 0x110   :  { %352 = dma.vmem_to_hbm [thread:$0]  %s350_s17, 32, %s715_s5, [#allocation3]  }
 0x111   :  { %467 = dma.done.wait [#allocation3], 32  }
 0x112   :  { %468 = vsyncadd [#allocation3], 4294967264 }
 0x113   :  { %356 = vsyncpa [#allocation3], 1 }

// kernel: forward.10
= control target key start
LH: loop header
LB: loop body
LE: loop exit
PB: predicated region body
PF: predicated region fallthrough
CT: control target
= control target key end

     0   :  { %v1239_v0 = vmov 0.0   ;;  %vm1240_vm0 = vmmov 0   ;;  %vm295_vm1 = vcmask 130048   ;;  %s2102_s3 = inlined_call_operand.vmem [shape: f32[16,128], index: 3, kind: input, shape index: {}]   ;;  %s2103_s2 = inlined_call_operand.vmem [shape: f32[2048,128], index: 2, kind: input, shape index: {}]   ;;  %s2104_s1 = inlined_call_operand.vmem [shape: f32[8,16], index: 1, kind: input, shape index: {}]   ;;  %s2105_s0 = inlined_call_operand.vmem [shape: f32[8,2048], index: 0, kind: input, shape index: {}]   ;;  %s2106_s4 = inlined_call_operand.vmem [shape: f32[1,128], index: 4, kind: input, shape index: {}]   ;;  %s2107_s5 = inlined_call_operand.vmem [shape: f32[8,128], index: 5, kind: output, shape index: {}]  }
   0x1   :  { %1230 = vmatprep.subr.mxu0 %v1239_v0  ;;  %v294_v1 = vld [vmem:[%s2102_s3 + $0x8] sm:$0xff]  ;;  %v67_v2 = vld [vmem:[%s2103_s2 + $0xf8] sm:$0xff]  ;;  %1234 = vmatprep.mubr.msk.f32.mxu0 %vm1240_vm0, %v1239_v0  ;;  %v293_v4 = vld [vmem:[%s2102_s3] sm:$0xff] }
   0x2   :  { %v51_v3 = vld [vmem:[%s2103_s2 + $0x78] sm:$0xff]  ;;  %1231 = vmatpush3.msra.mxu0 %v294_v1  ;;  %950 = vmatprep.subr.mxu1 %v67_v2  ;;  %v66_v5 = vld [vmem:[%s2103_s2 + $0xf0] sm:$0xff]  ;;  %v292_v6 = vld [vmem:[%s2104_s1] sm:$0xff] }
   0x3   :  { %1232 = vmatprep.subr.mxu0 %v1239_v0  ;;  %951 = vmatpush3.msra.mxu1 %v51_v3  ;;  %v50_v7 = vld [vmem:[%s2103_s2 + $0x70] sm:$0xff]  ;;  %v99_v8 = vld [vmem:[%s2103_s2 + $0x1f8] sm:$0xff]  ;;  %v65_v9 = vld [vmem:[%s2103_s2 + $0xe8] sm:$0xff] }
   0x4   :  { %1233 = vmatpush3.msra.mxu0 %v293_v4  ;;  %952 = vmatprep.subr.mxu1 %v66_v5  ;;  %v83_v10 = vld [vmem:[%s2103_s2 + $0x178] sm:$0xff]  ;;  %v49_v11 = vld [vmem:[%s2103_s2 + $0x68] sm:$0xff]  ;;  %v98_v12 = vld [vmem:[%s2103_s2 + $0x1f0] sm:$0xff] }
   0x5   :  { %1235 = vmatmul.mubr.msk.f32.vlgmr.msra.gmra.mxu0 %vm295_vm1, %v292_v6  ;;  %953 = vmatpush3.msra.mxu1 %v50_v7  ;;  %v64_v13 = vld [vmem:[%s2103_s2 + $0xe0] sm:$0xff]  ;;  %v82_v14 = vld [vmem:[%s2103_s2 + $0x170] sm:$0xff]  ;;  %v97_v16 = vld [vmem:[%s2103_s2 + $0x1e8] sm:$0xff] }
   0x6   :  { %985 = vmatprep.subr.mxu0 %v99_v8  ;;  %954 = vmatprep.subr.mxu1 %v65_v9  ;;  %v48_v15 = vld [vmem:[%s2103_s2 + $0x60] sm:$0xff]  ;;  %v63_v17 = vld [vmem:[%s2103_s2 + $0xd8] sm:$0xff]  ;;  %v81_v18 = vld [vmem:[%s2103_s2 + $0x168] sm:$0xff] }
   0x7   :  { %986 = vmatpush3.msra.mxu0 %v83_v10  ;;  %955 = vmatpush3.msra.mxu1 %v49_v11  ;;  %v47_v19 = vld [vmem:[%s2103_s2 + $0x58] sm:$0xff]  ;;  %v96_v20 = vld [vmem:[%s2103_s2 + $0x1e0] sm:$0xff]  ;;  %v62_v21 = vld [vmem:[%s2103_s2 + $0xd0] sm:$0xff] }
   0x8   :  { %987 = vmatprep.subr.mxu0 %v98_v12  ;;  %956 = vmatprep.subr.mxu1 %v64_v13  ;;  %v80_v22 = vld [vmem:[%s2103_s2 + $0x160] sm:$0xff]  ;;  %v46_v23 = vld [vmem:[%s2103_s2 + $0x50] sm:$0xff]  ;;  %v95_v24 = vld [vmem:[%s2103_s2 + $0x1d8] sm:$0xff] }
   0x9   :  { %988 = vmatpush3.msra.mxu0 %v82_v14  ;;  %957 = vmatpush3.msra.mxu1 %v48_v15  ;;  %v61_v25 = vld [vmem:[%s2103_s2 + $0xc8] sm:$0xff]  ;;  %v79_v26 = vld [vmem:[%s2103_s2 + $0x158] sm:$0xff]  ;;  %v94_v28 = vld [vmem:[%s2103_s2 + $0x1d0] sm:$0xff] }
   0xa   :  { %989 = vmatprep.subr.mxu0 %v97_v16  ;;  %958 = vmatprep.subr.mxu1 %v63_v17  ;;  %v45_v27 = vld [vmem:[%s2103_s2 + $0x48] sm:$0xff]  ;;  %v60_v29 = vld [vmem:[%s2103_s2 + $0xc0] sm:$0xff]  ;;  %v78_v30 = vld [vmem:[%s2103_s2 + $0x150] sm:$0xff] }
   0xb   :  { %990 = vmatpush3.msra.mxu0 %v81_v18  ;;  %959 = vmatpush3.msra.mxu1 %v47_v19  ;;  %v44_v31 = vld [vmem:[%s2103_s2 + $0x40] sm:$0xff]  ;;  %v93_v32 = vld [vmem:[%s2103_s2 + $0x1c8] sm:$0xff]  ;;  %v59_v33 = vld [vmem:[%s2103_s2 + $0xb8] sm:$0xff] }
   0xc   :  { %991 = vmatprep.subr.mxu0 %v96_v20  ;;  %960 = vmatprep.subr.mxu1 %v62_v21  ;;  %v77_v34 = vld [vmem:[%s2103_s2 + $0x148] sm:$0xff]  ;;  %v43_v35 = vld [vmem:[%s2103_s2 + $0x38] sm:$0xff]  ;;  %v92_v36 = vld [vmem:[%s2103_s2 + $0x1c0] sm:$0xff] }
   0xd   :  { %992 = vmatpush3.msra.mxu0 %v80_v22  ;;  %961 = vmatpush3.msra.mxu1 %v46_v23  ;;  %v58_v37 = vld [vmem:[%s2103_s2 + $0xb0] sm:$0xff]  ;;  %v76_v38 = vld [vmem:[%s2103_s2 + $0x140] sm:$0xff]  ;;  %v91_v40 = vld [vmem:[%s2103_s2 + $0x1b8] sm:$0xff] }
   0xe   :  { %993 = vmatprep.subr.mxu0 %v95_v24  ;;  %962 = vmatprep.subr.mxu1 %v61_v25  ;;  %v42_v39 = vld [vmem:[%s2103_s2 + $0x30] sm:$0xff]  ;;  %v57_v41 = vld [vmem:[%s2103_s2 + $0xa8] sm:$0xff]  ;;  %v75_v42 = vld [vmem:[%s2103_s2 + $0x138] sm:$0xff] }
   0xf   :  { %994 = vmatpush3.msra.mxu0 %v79_v26  ;;  %963 = vmatpush3.msra.mxu1 %v45_v27  ;;  %v41_v43 = vld [vmem:[%s2103_s2 + $0x28] sm:$0xff]  ;;  %v90_v44 = vld [vmem:[%s2103_s2 + $0x1b0] sm:$0xff]  ;;  %v56_v45 = vld [vmem:[%s2103_s2 + $0xa0] sm:$0xff] }
  0x10   :  { %995 = vmatprep.subr.mxu0 %v94_v28  ;;  %964 = vmatprep.subr.mxu1 %v60_v29  ;;  %v74_v46 = vld [vmem:[%s2103_s2 + $0x130] sm:$0xff]  ;;  %v40_v47 = vld [vmem:[%s2103_s2 + $0x20] sm:$0xff]  ;;  %v89_v48 = vld [vmem:[%s2103_s2 + $0x1a8] sm:$0xff] }
  0x11   :  { %996 = vmatpush3.msra.mxu0 %v78_v30  ;;  %965 = vmatpush3.msra.mxu1 %v44_v31  ;;  %v55_v49 = vld [vmem:[%s2103_s2 + $0x98] sm:$0xff]  ;;  %v73_v50 = vld [vmem:[%s2103_s2 + $0x128] sm:$0xff]  ;;  %v88_v52 = vld [vmem:[%s2103_s2 + $0x1a0] sm:$0xff] }
  0x12   :  { %997 = vmatprep.subr.mxu0 %v93_v32  ;;  %966 = vmatprep.subr.mxu1 %v59_v33  ;;  %v39_v51 = vld [vmem:[%s2103_s2 + $0x18] sm:$0xff]  ;;  %v54_v53 = vld [vmem:[%s2103_s2 + $0x90] sm:$0xff]  ;;  %v72_v54 = vld [vmem:[%s2103_s2 + $0x120] sm:$0xff] }
  0x13   :  { %998 = vmatpush3.msra.mxu0 %v77_v34  ;;  %967 = vmatpush3.msra.mxu1 %v43_v35  ;;  %v38_v55 = vld [vmem:[%s2103_s2 + $0x10] sm:$0xff]  ;;  %v87_v56 = vld [vmem:[%s2103_s2 + $0x198] sm:$0xff]  ;;  %v53_v57 = vld [vmem:[%s2103_s2 + $0x88] sm:$0xff] }
  0x14   :  { %999 = vmatprep.subr.mxu0 %v92_v36  ;;  %968 = vmatprep.subr.mxu1 %v58_v37  ;;  %v71_v58 = vld [vmem:[%s2103_s2 + $0x118] sm:$0xff]  ;;  %v37_v59 = vld [vmem:[%s2103_s2 + $0x8] sm:$0xff]  ;;  %v86_v60 = vld [vmem:[%s2103_s2 + $0x190] sm:$0xff] }
  0x15   :  { %1000 = vmatpush3.msra.mxu0 %v76_v38  ;;  %969 = vmatpush3.msra.mxu1 %v42_v39  ;;  %v52_v61 = vld [vmem:[%s2103_s2 + $0x80] sm:$0xff]  ;;  %v70_v62 = vld [vmem:[%s2103_s2 + $0x110] sm:$0xff]  ;;  %v21_v0 = vld [vmem:[%s2105_s0 + $0x8] sm:$0xff] }
  0x16   :  { %1001 = vmatprep.subr.mxu0 %v91_v40  ;;  %970 = vmatprep.subr.mxu1 %v57_v41  ;;  %v36_v63 = vld [vmem:[%s2103_s2] sm:$0xff]  ;;  %v85_v1 = vld [vmem:[%s2103_s2 + $0x188] sm:$0xff]  ;;  %v131_v4 = vld [vmem:[%s2103_s2 + $0x2f8] sm:$0xff] }
  0x17   :  { %1002 = vmatpush3.msra.mxu0 %v75_v42  ;;  %971 = vmatpush3.msra.mxu1 %v41_v43  ;;  %v20_v2 = vld [vmem:[%s2105_s0] sm:$0xff]  ;;  %v69_v3 = vld [vmem:[%s2103_s2 + $0x108] sm:$0xff]  ;;  %v115_v6 = vld [vmem:[%s2103_s2 + $0x278] sm:$0xff] }
  0x18   :  { %1003 = vmatprep.subr.mxu0 %v90_v44  ;;  %972 = vmatprep.subr.mxu1 %v56_v45  ;;  %v84_v5 = vld [vmem:[%s2103_s2 + $0x180] sm:$0xff]  ;;  %v23_v8 = vld [vmem:[%s2105_s0 + $0x18] sm:$0xff]  ;;  %v130_v9 = vld [vmem:[%s2103_s2 + $0x2f0] sm:$0xff] }
  0x19   :  { %1004 = vmatpush3.msra.mxu0 %v74_v46  ;;  %973 = vmatpush3.msra.mxu1 %v40_v47  ;;  %v68_v7 = vld [vmem:[%s2103_s2 + $0x100] sm:$0xff]  ;;  %v22_v10 = vld [vmem:[%s2105_s0 + $0x10] sm:$0xff]  ;;  %v163_v12 = vld [vmem:[%s2103_s2 + $0x3f8] sm:$0xff] }
  0x1a   :  { %1005 = vmatprep.subr.mxu0 %v89_v48  ;;  %974 = vmatprep.subr.mxu1 %v55_v49  ;;  %v114_v11 = vld [vmem:[%s2103_s2 + $0x270] sm:$0xff]  ;;  %v129_v13 = vld [vmem:[%s2103_s2 + $0x2e8] sm:$0xff]  ;;  %v147_v14 = vld [vmem:[%s2103_s2 + $0x378] sm:$0xff] }
  0x1b   :  { %1006 = vmatpush3.msra.mxu0 %v73_v50  ;;  %975 = vmatpush3.msra.mxu1 %v39_v51  ;;  %v113_v15 = vld [vmem:[%s2103_s2 + $0x268] sm:$0xff]  ;;  %v162_v16 = vld [vmem:[%s2103_s2 + $0x3f0] sm:$0xff]  ;;  %v128_v17 = vld [vmem:[%s2103_s2 + $0x2e0] sm:$0xff] }
  0x1c   :  { %1007 = vmatprep.subr.mxu0 %v88_v52  ;;  %976 = vmatprep.subr.mxu1 %v54_v53  ;;  %v146_v18 = vld [vmem:[%s2103_s2 + $0x370] sm:$0xff]  ;;  %v112_v19 = vld [vmem:[%s2103_s2 + $0x260] sm:$0xff]  ;;  %v161_v20 = vld [vmem:[%s2103_s2 + $0x3e8] sm:$0xff] }
  0x1d   :  { %1008 = vmatpush3.msra.mxu0 %v72_v54  ;;  %977 = vmatpush3.msra.mxu1 %v38_v55  ;;  %v127_v21 = vld [vmem:[%s2103_s2 + $0x2d8] sm:$0xff]  ;;  %v145_v22 = vld [vmem:[%s2103_s2 + $0x368] sm:$0xff]  ;;  %v160_v24 = vld [vmem:[%s2103_s2 + $0x3e0] sm:$0xff] }
  0x1e   :  { %1009 = vmatprep.subr.mxu0 %v87_v56  ;;  %978 = vmatprep.subr.mxu1 %v53_v57  ;;  %v111_v23 = vld [vmem:[%s2103_s2 + $0x258] sm:$0xff]  ;;  %v126_v25 = vld [vmem:[%s2103_s2 + $0x2d0] sm:$0xff]  ;;  %v144_v26 = vld [vmem:[%s2103_s2 + $0x360] sm:$0xff] }
  0x1f   :  { %1010 = vmatpush3.msra.mxu0 %v71_v58  ;;  %979 = vmatpush3.msra.mxu1 %v37_v59  ;;  %v110_v27 = vld [vmem:[%s2103_s2 + $0x250] sm:$0xff]  ;;  %v159_v28 = vld [vmem:[%s2103_s2 + $0x3d8] sm:$0xff]  ;;  %v125_v29 = vld [vmem:[%s2103_s2 + $0x2c8] sm:$0xff] }
  0x20   :  { %1011 = vmatprep.subr.mxu0 %v86_v60  ;;  %980 = vmatprep.subr.mxu1 %v52_v61  ;;  %v143_v30 = vld [vmem:[%s2103_s2 + $0x358] sm:$0xff]  ;;  %v109_v31 = vld [vmem:[%s2103_s2 + $0x248] sm:$0xff]  ;;  %v158_v32 = vld [vmem:[%s2103_s2 + $0x3d0] sm:$0xff] }
  0x21   :  { %1012 = vmatpush3.msra.mxu0 %v70_v62  ;;  %981 = vmatpush3.msra.mxu1 %v36_v63  ;;  %v124_v33 = vld [vmem:[%s2103_s2 + $0x2c0] sm:$0xff]  ;;  %v142_v34 = vld [vmem:[%s2103_s2 + $0x350] sm:$0xff]  ;;  %v157_v36 = vld [vmem:[%s2103_s2 + $0x3c8] sm:$0xff] }
  0x22   :  { %433 = vmatprep.mubr.f32.mxu1 %v21_v0  ;;  %1013 = vmatprep.subr.mxu0 %v85_v1  ;;  %v108_v35 = vld [vmem:[%s2103_s2 + $0x240] sm:$0xff]  ;;  %v123_v37 = vld [vmem:[%s2103_s2 + $0x2b8] sm:$0xff]  ;;  %v141_v38 = vld [vmem:[%s2103_s2 + $0x348] sm:$0xff] }
  0x23   :  { %434 = vmatmul.mubr.f32.vlgmr.msra.gmra.mxu1 %v20_v2  ;;  %1014 = vmatpush3.msra.mxu0 %v69_v3  ;;  %v107_v39 = vld [vmem:[%s2103_s2 + $0x238] sm:$0xff]  ;;  %v156_v40 = vld [vmem:[%s2103_s2 + $0x3c0] sm:$0xff]  ;;  %v122_v41 = vld [vmem:[%s2103_s2 + $0x2b0] sm:$0xff] }
  0x24   :  { %1020 = vmatprep.subr.mxu1 %v131_v4  ;;  %1015 = vmatprep.subr.mxu0 %v84_v5  ;;  %v140_v42 = vld [vmem:[%s2103_s2 + $0x340] sm:$0xff]  ;;  %v106_v43 = vld [vmem:[%s2103_s2 + $0x230] sm:$0xff]  ;;  %v155_v44 = vld [vmem:[%s2103_s2 + $0x3b8] sm:$0xff] }
  0x25   :  { %1021 = vmatpush3.msra.mxu1 %v115_v6  ;;  %1016 = vmatpush3.msra.mxu0 %v68_v7  ;;  %v121_v45 = vld [vmem:[%s2103_s2 + $0x2a8] sm:$0xff]  ;;  %v139_v46 = vld [vmem:[%s2103_s2 + $0x338] sm:$0xff]  ;;  %v154_v48 = vld [vmem:[%s2103_s2 + $0x3b0] sm:$0xff] }
  0x26   :  { %503 = vmatprep.mubr.f32.mxu0 %v23_v8  ;;  %1022 = vmatprep.subr.mxu1 %v130_v9  ;;  %v105_v47 = vld [vmem:[%s2103_s2 + $0x228] sm:$0xff]  ;;  %v120_v49 = vld [vmem:[%s2103_s2 + $0x2a0] sm:$0xff]  ;;  %v138_v50 = vld [vmem:[%s2103_s2 + $0x330] sm:$0xff] }
  0x27   :  { %504 = vmatmul.mubr.f32.vlgmr.msra.gmra.mxu0 %v22_v10  ;;  %1023 = vmatpush3.msra.mxu1 %v114_v11  ;;  %v104_v51 = vld [vmem:[%s2103_s2 + $0x220] sm:$0xff]  ;;  %v153_v52 = vld [vmem:[%s2103_s2 + $0x3a8] sm:$0xff]  ;;  %v119_v53 = vld [vmem:[%s2103_s2 + $0x298] sm:$0xff] }
  0x28   :  { %1055 = vmatprep.subr.mxu0 %v163_v12  ;;  %1024 = vmatprep.subr.mxu1 %v129_v13  ;;  %v137_v54 = vld [vmem:[%s2103_s2 + $0x328] sm:$0xff]  ;;  %v103_v55 = vld [vmem:[%s2103_s2 + $0x218] sm:$0xff]  ;;  %v152_v56 = vld [vmem:[%s2103_s2 + $0x3a0] sm:$0xff] }
  0x29   :  { %1056 = vmatpush3.msra.mxu0 %v147_v14  ;;  %1025 = vmatpush3.msra.mxu1 %v113_v15  ;;  %v118_v57 = vld [vmem:[%s2103_s2 + $0x290] sm:$0xff]  ;;  %v136_v58 = vld [vmem:[%s2103_s2 + $0x320] sm:$0xff]  ;;  %v151_v60 = vld [vmem:[%s2103_s2 + $0x398] sm:$0xff] }
  0x2a   :  { %1057 = vmatprep.subr.mxu0 %v162_v16  ;;  %1026 = vmatprep.subr.mxu1 %v128_v17  ;;  %v102_v59 = vld [vmem:[%s2103_s2 + $0x210] sm:$0xff]  ;;  %v117_v61 = vld [vmem:[%s2103_s2 + $0x288] sm:$0xff]  ;;  %v135_v62 = vld [vmem:[%s2103_s2 + $0x318] sm:$0xff] }
  0x2b   :  { %1058 = vmatpush3.msra.mxu0 %v146_v18  ;;  %1027 = vmatpush3.msra.mxu1 %v112_v19  ;;  %v101_v63 = vld [vmem:[%s2103_s2 + $0x208] sm:$0xff]  ;;  %v150_v0 = vld [vmem:[%s2103_s2 + $0x390] sm:$0xff]  ;;  %v116_v1 = vld [vmem:[%s2103_s2 + $0x280] sm:$0xff] }
  0x2c   :  { %1059 = vmatprep.subr.mxu0 %v161_v20  ;;  %1028 = vmatprep.subr.mxu1 %v127_v21  ;;  %v134_v2 = vld [vmem:[%s2103_s2 + $0x310] sm:$0xff]  ;;  %v100_v3 = vld [vmem:[%s2103_s2 + $0x200] sm:$0xff]  ;;  %v25_v4 = vld [vmem:[%s2105_s0 + $0x28] sm:$0xff] }
  0x2d   :  { %1060 = vmatpush3.msra.mxu0 %v145_v22  ;;  %1029 = vmatpush3.msra.mxu1 %v111_v23  ;;  %v149_v5 = vld [vmem:[%s2103_s2 + $0x388] sm:$0xff]  ;;  %v24_v6 = vld [vmem:[%s2105_s0 + $0x20] sm:$0xff]  ;;  %v195_v8 = vld [vmem:[%s2103_s2 + $0x4f8] sm:$0xff] }
  0x2e   :  { %1061 = vmatprep.subr.mxu0 %v160_v24  ;;  %1030 = vmatprep.subr.mxu1 %v126_v25  ;;  %v133_v7 = vld [vmem:[%s2103_s2 + $0x308] sm:$0xff]  ;;  %v148_v9 = vld [vmem:[%s2103_s2 + $0x380] sm:$0xff]  ;;  %v179_v10 = vld [vmem:[%s2103_s2 + $0x478] sm:$0xff] }
  0x2f   :  { %1062 = vmatpush3.msra.mxu0 %v144_v26  ;;  %1031 = vmatpush3.msra.mxu1 %v110_v27  ;;  %v132_v11 = vld [vmem:[%s2103_s2 + $0x300] sm:$0xff]  ;;  %v27_v12 = vld [vmem:[%s2105_s0 + $0x38] sm:$0xff]  ;;  %v194_v13 = vld [vmem:[%s2103_s2 + $0x4f0] sm:$0xff] }
  0x30   :  { %1063 = vmatprep.subr.mxu0 %v159_v28  ;;  %1032 = vmatprep.subr.mxu1 %v125_v29  ;;  %v26_v14 = vld [vmem:[%s2105_s0 + $0x30] sm:$0xff]  ;;  %v227_v16 = vld [vmem:[%s2103_s2 + $0x5f8] sm:$0xff]  ;;  %v193_v17 = vld [vmem:[%s2103_s2 + $0x4e8] sm:$0xff] }
  0x31   :  { %1064 = vmatpush3.msra.mxu0 %v143_v30  ;;  %1033 = vmatpush3.msra.mxu1 %v109_v31  ;;  %v178_v15 = vld [vmem:[%s2103_s2 + $0x470] sm:$0xff]  ;;  %v211_v18 = vld [vmem:[%s2103_s2 + $0x578] sm:$0xff]  ;;  %v177_v19 = vld [vmem:[%s2103_s2 + $0x468] sm:$0xff] }
  0x32   :  { %1065 = vmatprep.subr.mxu0 %v158_v32  ;;  %1034 = vmatprep.subr.mxu1 %v124_v33  ;;  %v226_v20 = vld [vmem:[%s2103_s2 + $0x5f0] sm:$0xff]  ;;  %v192_v21 = vld [vmem:[%s2103_s2 + $0x4e0] sm:$0xff]  ;;  %v225_v24 = vld [vmem:[%s2103_s2 + $0x5e8] sm:$0xff] }
  0x33   :  { %1066 = vmatpush3.msra.mxu0 %v142_v34  ;;  %1035 = vmatpush3.msra.mxu1 %v108_v35  ;;  %v210_v22 = vld [vmem:[%s2103_s2 + $0x570] sm:$0xff]  ;;  %v176_v23 = vld [vmem:[%s2103_s2 + $0x460] sm:$0xff]  ;;  %v191_v25 = vld [vmem:[%s2103_s2 + $0x4d8] sm:$0xff] }
  0x34   :  { %1067 = vmatprep.subr.mxu0 %v157_v36  ;;  %1036 = vmatprep.subr.mxu1 %v123_v37  ;;  %v209_v26 = vld [vmem:[%s2103_s2 + $0x568] sm:$0xff]  ;;  %v175_v27 = vld [vmem:[%s2103_s2 + $0x458] sm:$0xff]  ;;  %v224_v28 = vld [vmem:[%s2103_s2 + $0x5e0] sm:$0xff] }
  0x35   :  { %1068 = vmatpush3.msra.mxu0 %v141_v38  ;;  %1037 = vmatpush3.msra.mxu1 %v107_v39  ;;  %v190_v29 = vld [vmem:[%s2103_s2 + $0x4d0] sm:$0xff]  ;;  %v208_v30 = vld [vmem:[%s2103_s2 + $0x560] sm:$0xff]  ;;  %v223_v32 = vld [vmem:[%s2103_s2 + $0x5d8] sm:$0xff] }
  0x36   :  { %1069 = vmatprep.subr.mxu0 %v156_v40  ;;  %1038 = vmatprep.subr.mxu1 %v122_v41  ;;  %v174_v31 = vld [vmem:[%s2103_s2 + $0x450] sm:$0xff]  ;;  %v189_v33 = vld [vmem:[%s2103_s2 + $0x4c8] sm:$0xff]  ;;  %v207_v34 = vld [vmem:[%s2103_s2 + $0x558] sm:$0xff] }
  0x37   :  { %1070 = vmatpush3.msra.mxu0 %v140_v42  ;;  %1039 = vmatpush3.msra.mxu1 %v106_v43  ;;  %v173_v35 = vld [vmem:[%s2103_s2 + $0x448] sm:$0xff]  ;;  %v222_v36 = vld [vmem:[%s2103_s2 + $0x5d0] sm:$0xff]  ;;  %v188_v37 = vld [vmem:[%s2103_s2 + $0x4c0] sm:$0xff] }
  0x38   :  { %1071 = vmatprep.subr.mxu0 %v155_v44  ;;  %1040 = vmatprep.subr.mxu1 %v121_v45  ;;  %v206_v38 = vld [vmem:[%s2103_s2 + $0x550] sm:$0xff]  ;;  %v172_v39 = vld [vmem:[%s2103_s2 + $0x440] sm:$0xff]  ;;  %v221_v40 = vld [vmem:[%s2103_s2 + $0x5c8] sm:$0xff] }
  0x39   :  { %1072 = vmatpush3.msra.mxu0 %v139_v46  ;;  %1041 = vmatpush3.msra.mxu1 %v105_v47  ;;  %v187_v41 = vld [vmem:[%s2103_s2 + $0x4b8] sm:$0xff]  ;;  %v205_v42 = vld [vmem:[%s2103_s2 + $0x548] sm:$0xff]  ;;  %v220_v44 = vld [vmem:[%s2103_s2 + $0x5c0] sm:$0xff] }
  0x3a   :  { %1073 = vmatprep.subr.mxu0 %v154_v48  ;;  %1042 = vmatprep.subr.mxu1 %v120_v49  ;;  %v171_v43 = vld [vmem:[%s2103_s2 + $0x438] sm:$0xff]  ;;  %v186_v45 = vld [vmem:[%s2103_s2 + $0x4b0] sm:$0xff]  ;;  %v204_v46 = vld [vmem:[%s2103_s2 + $0x540] sm:$0xff] }
  0x3b   :  { %1074 = vmatpush3.msra.mxu0 %v138_v50  ;;  %1043 = vmatpush3.msra.mxu1 %v104_v51  ;;  %v170_v47 = vld [vmem:[%s2103_s2 + $0x430] sm:$0xff]  ;;  %v219_v48 = vld [vmem:[%s2103_s2 + $0x5b8] sm:$0xff]  ;;  %v185_v49 = vld [vmem:[%s2103_s2 + $0x4a8] sm:$0xff] }
  0x3c   :  { %1075 = vmatprep.subr.mxu0 %v153_v52  ;;  %1044 = vmatprep.subr.mxu1 %v119_v53  ;;  %v203_v50 = vld [vmem:[%s2103_s2 + $0x538] sm:$0xff]  ;;  %v169_v51 = vld [vmem:[%s2103_s2 + $0x428] sm:$0xff]  ;;  %v218_v52 = vld [vmem:[%s2103_s2 + $0x5b0] sm:$0xff] }
  0x3d   :  { %1076 = vmatpush3.msra.mxu0 %v137_v54  ;;  %1045 = vmatpush3.msra.mxu1 %v103_v55  ;;  %v184_v53 = vld [vmem:[%s2103_s2 + $0x4a0] sm:$0xff]  ;;  %v202_v54 = vld [vmem:[%s2103_s2 + $0x530] sm:$0xff] }
  0x3e   :  { %1077 = vmatprep.subr.mxu0 %v152_v56  ;;  %1046 = vmatprep.subr.mxu1 %v118_v57  ;;  %v168_v55 = vld [vmem:[%s2103_s2 + $0x420] sm:$0xff]  ;;  %v217_v56 = vld [vmem:[%s2103_s2 + $0x5a8] sm:$0xff]  ;;  %v183_v57 = vld [vmem:[%s2103_s2 + $0x498] sm:$0xff] }
  0x3f   :  { %1078 = vmatpush3.msra.mxu0 %v136_v58  ;;  %1047 = vmatpush3.msra.mxu1 %v102_v59  ;;  %v201_v58 = vld [vmem:[%s2103_s2 + $0x528] sm:$0xff]  ;;  %v167_v59 = vld [vmem:[%s2103_s2 + $0x418] sm:$0xff] }
  0x40   :  { %1079 = vmatprep.subr.mxu0 %v151_v60  ;;  %1048 = vmatprep.subr.mxu1 %v117_v61  ;;  %v216_v60 = vld [vmem:[%s2103_s2 + $0x5a0] sm:$0xff]  ;;  %v182_v61 = vld [vmem:[%s2103_s2 + $0x490] sm:$0xff] }
  0x41   :  { %1080 = vmatpush3.msra.mxu0 %v135_v62  ;;  %1049 = vmatpush3.msra.mxu1 %v101_v63  ;;  %v200_v62 = vld [vmem:[%s2103_s2 + $0x520] sm:$0xff]  ;;  %v166_v63 = vld [vmem:[%s2103_s2 + $0x410] sm:$0xff] }
  0x42   :  { %1081 = vmatprep.subr.mxu0 %v150_v0  ;;  %1050 = vmatprep.subr.mxu1 %v116_v1  ;;  %v215_v0 = vld [vmem:[%s2103_s2 + $0x598] sm:$0xff]  ;;  %v181_v1 = vld [vmem:[%s2103_s2 + $0x488] sm:$0xff] }
  0x43   :  { %1082 = vmatpush3.msra.mxu0 %v134_v2  ;;  %1051 = vmatpush3.msra.mxu1 %v100_v3  ;;  %v199_v2 = vld [vmem:[%s2103_s2 + $0x518] sm:$0xff]  ;;  %v165_v3 = vld [vmem:[%s2103_s2 + $0x408] sm:$0xff] }
  0x44   :  { %573 = vmatprep.mubr.f32.mxu1 %v25_v4  ;;  %1083 = vmatprep.subr.mxu0 %v149_v5  ;;  %v214_v4 = vld [vmem:[%s2103_s2 + $0x590] sm:$0xff]  ;;  %v180_v5 = vld [vmem:[%s2103_s2 + $0x480] sm:$0xff] }
  0x45   :  { %574 = vmatmul.mubr.f32.vlgmr.msra.gmra.mxu1 %v24_v6  ;;  %1084 = vmatpush3.msra.mxu0 %v133_v7  ;;  %v198_v6 = vld [vmem:[%s2103_s2 + $0x510] sm:$0xff]  ;;  %v164_v7 = vld [vmem:[%s2103_s2 + $0x400] sm:$0xff] }
  0x46   :  { %1090 = vmatprep.subr.mxu1 %v195_v8  ;;  %1085 = vmatprep.subr.mxu0 %v148_v9  ;;  %v29_v8 = vld [vmem:[%s2105_s0 + $0x48] sm:$0xff] }
  0x47   :  { %1091 = vmatpush3.msra.mxu1 %v179_v10  ;;  %1086 = vmatpush3.msra.mxu0 %v132_v11  ;;  %v213_v9 = vld [vmem:[%s2103_s2 + $0x588] sm:$0xff]  ;;  %v28_v10 = vld [vmem:[%s2105_s0 + $0x40] sm:$0xff] }
  0x48   :  { %643 = vmatprep.mubr.f32.mxu0 %v27_v12  ;;  %1092 = vmatprep.subr.mxu1 %v194_v13  ;;  %v197_v11 = vld [vmem:[%s2103_s2 + $0x508] sm:$0xff]  ;;  %v259_v12 = vld [vmem:[%s2103_s2 + $0x6f8] sm:$0xff]  ;;  %v212_v13 = vld [vmem:[%s2103_s2 + $0x580] sm:$0xff] }
  0x49   :  { %644 = vmatmul.mubr.f32.vlgmr.msra.gmra.mxu0 %v26_v14  ;;  %1093 = vmatpush3.msra.mxu1 %v178_v15  ;;  %v243_v14 = vld [vmem:[%s2103_s2 + $0x678] sm:$0xff]  ;;  %v196_v15 = vld [vmem:[%s2103_s2 + $0x500] sm:$0xff] }
  0x4a   :  { %1125 = vmatprep.subr.mxu0 %v227_v16  ;;  %1094 = vmatprep.subr.mxu1 %v193_v17  ;;  %v31_v16 = vld [vmem:[%s2105_s0 + $0x58] sm:$0xff]  ;;  %v258_v17 = vld [vmem:[%s2103_s2 + $0x6f0] sm:$0xff] }
  0x4b   :  { %1126 = vmatpush3.msra.mxu0 %v211_v18  ;;  %1095 = vmatpush3.msra.mxu1 %v177_v19  ;;  %v30_v18 = vld [vmem:[%s2105_s0 + $0x50] sm:$0xff] }
  0x4c   :  { %1127 = vmatprep.subr.mxu0 %v226_v20  ;;  %1096 = vmatprep.subr.mxu1 %v192_v21  ;;  %v242_v19 = vld [vmem:[%s2103_s2 + $0x670] sm:$0xff]  ;;  %v291_v20 = vld [vmem:[%s2103_s2 + $0x7f8] sm:$0xff]  ;;  %v257_v21 = vld [vmem:[%s2103_s2 + $0x6e8] sm:$0xff] }
  0x4d   :  { %1128 = vmatpush3.msra.mxu0 %v210_v22  ;;  %1097 = vmatpush3.msra.mxu1 %v176_v23  ;;  %v275_v22 = vld [vmem:[%s2103_s2 + $0x778] sm:$0xff]  ;;  %v241_v23 = vld [vmem:[%s2103_s2 + $0x668] sm:$0xff] }
  0x4e   :  { %1129 = vmatprep.subr.mxu0 %v225_v24  ;;  %1098 = vmatprep.subr.mxu1 %v191_v25  ;;  %v290_v24 = vld [vmem:[%s2103_s2 + $0x7f0] sm:$0xff]  ;;  %v256_v25 = vld [vmem:[%s2103_s2 + $0x6e0] sm:$0xff] }
  0x4f   :  { %1130 = vmatpush3.msra.mxu0 %v209_v26  ;;  %1099 = vmatpush3.msra.mxu1 %v175_v27  ;;  %v274_v26 = vld [vmem:[%s2103_s2 + $0x770] sm:$0xff]  ;;  %v240_v27 = vld [vmem:[%s2103_s2 + $0x660] sm:$0xff] }
  0x50   :  { %1131 = vmatprep.subr.mxu0 %v224_v28  ;;  %1100 = vmatprep.subr.mxu1 %v190_v29  ;;  %v289_v28 = vld [vmem:[%s2103_s2 + $0x7e8] sm:$0xff]  ;;  %v255_v29 = vld [vmem:[%s2103_s2 + $0x6d8] sm:$0xff] }
  0x51   :  { %1132 = vmatpush3.msra.mxu0 %v208_v30  ;;  %1101 = vmatpush3.msra.mxu1 %v174_v31  ;;  %v273_v30 = vld [vmem:[%s2103_s2 + $0x768] sm:$0xff]  ;;  %v239_v31 = vld [vmem:[%s2103_s2 + $0x658] sm:$0xff] }
  0x52   :  { %1133 = vmatprep.subr.mxu0 %v223_v32  ;;  %1102 = vmatprep.subr.mxu1 %v189_v33  ;;  %v288_v32 = vld [vmem:[%s2103_s2 + $0x7e0] sm:$0xff]  ;;  %v254_v33 = vld [vmem:[%s2103_s2 + $0x6d0] sm:$0xff] }
  0x53   :  { %1134 = vmatpush3.msra.mxu0 %v207_v34  ;;  %1103 = vmatpush3.msra.mxu1 %v173_v35  ;;  %v272_v34 = vld [vmem:[%s2103_s2 + $0x760] sm:$0xff]  ;;  %v238_v35 = vld [vmem:[%s2103_s2 + $0x650] sm:$0xff] }
  0x54   :  { %1135 = vmatprep.subr.mxu0 %v222_v36  ;;  %1104 = vmatprep.subr.mxu1 %v188_v37  ;;  %v287_v36 = vld [vmem:[%s2103_s2 + $0x7d8] sm:$0xff]  ;;  %v253_v37 = vld [vmem:[%s2103_s2 + $0x6c8] sm:$0xff] }
  0x55   :  { %1136 = vmatpush3.msra.mxu0 %v206_v38  ;;  %1105 = vmatpush3.msra.mxu1 %v172_v39  ;;  %v271_v38 = vld [vmem:[%s2103_s2 + $0x758] sm:$0xff]  ;;  %v237_v39 = vld [vmem:[%s2103_s2 + $0x648] sm:$0xff] }
  0x56   :  { %1137 = vmatprep.subr.mxu0 %v221_v40  ;;  %1106 = vmatprep.subr.mxu1 %v187_v41  ;;  %v286_v40 = vld [vmem:[%s2103_s2 + $0x7d0] sm:$0xff]  ;;  %v252_v41 = vld [vmem:[%s2103_s2 + $0x6c0] sm:$0xff] }
  0x57   :  { %1138 = vmatpush3.msra.mxu0 %v205_v42  ;;  %1107 = vmatpush3.msra.mxu1 %v171_v43  ;;  %v270_v42 = vld [vmem:[%s2103_s2 + $0x750] sm:$0xff]  ;;  %v236_v43 = vld [vmem:[%s2103_s2 + $0x640] sm:$0xff] }
  0x58   :  { %1139 = vmatprep.subr.mxu0 %v220_v44  ;;  %1108 = vmatprep.subr.mxu1 %v186_v45  ;;  %v285_v44 = vld [vmem:[%s2103_s2 + $0x7c8] sm:$0xff]  ;;  %v251_v45 = vld [vmem:[%s2103_s2 + $0x6b8] sm:$0xff] }
  0x59   :  { %1140 = vmatpush3.msra.mxu0 %v204_v46  ;;  %1109 = vmatpush3.msra.mxu1 %v170_v47  ;;  %v269_v46 = vld [vmem:[%s2103_s2 + $0x748] sm:$0xff]  ;;  %v235_v47 = vld [vmem:[%s2103_s2 + $0x638] sm:$0xff] }
  0x5a   :  { %1141 = vmatprep.subr.mxu0 %v219_v48  ;;  %1110 = vmatprep.subr.mxu1 %v185_v49  ;;  %v284_v48 = vld [vmem:[%s2103_s2 + $0x7c0] sm:$0xff]  ;;  %v250_v49 = vld [vmem:[%s2103_s2 + $0x6b0] sm:$0xff] }
  0x5b   :  { %1142 = vmatpush3.msra.mxu0 %v203_v50  ;;  %1111 = vmatpush3.msra.mxu1 %v169_v51  ;;  %v268_v50 = vld [vmem:[%s2103_s2 + $0x740] sm:$0xff]  ;;  %v234_v51 = vld [vmem:[%s2103_s2 + $0x630] sm:$0xff] }
  0x5c   :  { %1143 = vmatprep.subr.mxu0 %v218_v52  ;;  %1112 = vmatprep.subr.mxu1 %v184_v53  ;;  %v283_v52 = vld [vmem:[%s2103_s2 + $0x7b8] sm:$0xff]  ;;  %v249_v53 = vld [vmem:[%s2103_s2 + $0x6a8] sm:$0xff] }
  0x5d   :  { %1144 = vmatpush3.msra.mxu0 %v202_v54  ;;  %1113 = vmatpush3.msra.mxu1 %v168_v55  ;;  %v267_v54 = vld [vmem:[%s2103_s2 + $0x738] sm:$0xff]  ;;  %v233_v55 = vld [vmem:[%s2103_s2 + $0x628] sm:$0xff] }
  0x5e   :  { %1145 = vmatprep.subr.mxu0 %v217_v56  ;;  %1114 = vmatprep.subr.mxu1 %v183_v57  ;;  %v282_v56 = vld [vmem:[%s2103_s2 + $0x7b0] sm:$0xff]  ;;  %v248_v57 = vld [vmem:[%s2103_s2 + $0x6a0] sm:$0xff] }
  0x5f   :  { %1146 = vmatpush3.msra.mxu0 %v201_v58  ;;  %1115 = vmatpush3.msra.mxu1 %v167_v59  ;;  %v266_v58 = vld [vmem:[%s2103_s2 + $0x730] sm:$0xff]  ;;  %v232_v59 = vld [vmem:[%s2103_s2 + $0x620] sm:$0xff] }
  0x60   :  { %1147 = vmatprep.subr.mxu0 %v216_v60  ;;  %1116 = vmatprep.subr.mxu1 %v182_v61  ;;  %v281_v60 = vld [vmem:[%s2103_s2 + $0x7a8] sm:$0xff]  ;;  %v247_v61 = vld [vmem:[%s2103_s2 + $0x698] sm:$0xff] }
  0x61   :  { %1148 = vmatpush3.msra.mxu0 %v200_v62  ;;  %1117 = vmatpush3.msra.mxu1 %v166_v63  ;;  %v265_v62 = vld [vmem:[%s2103_s2 + $0x728] sm:$0xff]  ;;  %v231_v63 = vld [vmem:[%s2103_s2 + $0x618] sm:$0xff] }
  0x62   :  { %1149 = vmatprep.subr.mxu0 %v215_v0  ;;  %1118 = vmatprep.subr.mxu1 %v181_v1  ;;  %v280_v0 = vld [vmem:[%s2103_s2 + $0x7a0] sm:$0xff]  ;;  %v246_v1 = vld [vmem:[%s2103_s2 + $0x690] sm:$0xff] }
  0x63   :  { %1150 = vmatpush3.msra.mxu0 %v199_v2  ;;  %1119 = vmatpush3.msra.mxu1 %v165_v3  ;;  %v264_v2 = vld [vmem:[%s2103_s2 + $0x720] sm:$0xff]  ;;  %v230_v3 = vld [vmem:[%s2103_s2 + $0x610] sm:$0xff] }
  0x64   :  { %1151 = vmatprep.subr.mxu0 %v214_v4  ;;  %1120 = vmatprep.subr.mxu1 %v180_v5  ;;  %v279_v4 = vld [vmem:[%s2103_s2 + $0x798] sm:$0xff]  ;;  %v245_v5 = vld [vmem:[%s2103_s2 + $0x688] sm:$0xff] }
  0x65   :  { %1152 = vmatpush3.msra.mxu0 %v198_v6  ;;  %1121 = vmatpush3.msra.mxu1 %v164_v7  ;;  %v263_v6 = vld [vmem:[%s2103_s2 + $0x718] sm:$0xff]  ;;  %v229_v7 = vld [vmem:[%s2103_s2 + $0x608] sm:$0xff] }
  0x66   :  { %713 = vmatprep.mubr.f32.mxu1 %v29_v8  ;;  %1153 = vmatprep.subr.mxu0 %v213_v9  ;;  %v278_v8 = vld [vmem:[%s2103_s2 + $0x790] sm:$0xff]  ;;  %v244_v9 = vld [vmem:[%s2103_s2 + $0x680] sm:$0xff] }
  0x67   :  { %714 = vmatmul.mubr.f32.vlgmr.msra.gmra.mxu1 %v28_v10  ;;  %1154 = vmatpush3.msra.mxu0 %v197_v11  ;;  %v262_v10 = vld [vmem:[%s2103_s2 + $0x710] sm:$0xff]  ;;  %v228_v11 = vld [vmem:[%s2103_s2 + $0x600] sm:$0xff] }
  0x68   :  { %1160 = vmatprep.subr.mxu1 %v259_v12  ;;  %1155 = vmatprep.subr.mxu0 %v212_v13  ;;  %v33_v12 = vld [vmem:[%s2105_s0 + $0x68] sm:$0xff] }
  0x69   :  { %1161 = vmatpush3.msra.mxu1 %v243_v14  ;;  %1156 = vmatpush3.msra.mxu0 %v196_v15  ;;  %v277_v13 = vld [vmem:[%s2103_s2 + $0x788] sm:$0xff]  ;;  %v32_v14 = vld [vmem:[%s2105_s0 + $0x60] sm:$0xff] }
  0x6a   :  { %783 = vmatprep.mubr.f32.mxu0 %v31_v16  ;;  %1162 = vmatprep.subr.mxu1 %v258_v17  ;;  %v261_v15 = vld [vmem:[%s2103_s2 + $0x708] sm:$0xff]  ;;  %v276_v16 = vld [vmem:[%s2103_s2 + $0x780] sm:$0xff]  ;;  %v35_v17 = vld [vmem:[%s2105_s0 + $0x78] sm:$0xff] }
  0x6b   :  { %784 = vmatmul.mubr.f32.vlgmr.msra.gmra.mxu0 %v30_v18  ;;  %1163 = vmatpush3.msra.mxu1 %v242_v19  ;;  %v260_v18 = vld [vmem:[%s2103_s2 + $0x700] sm:$0xff]  ;;  %v34_v19 = vld [vmem:[%s2105_s0 + $0x70] sm:$0xff] }
  0x6c   :  { %1195 = vmatprep.subr.mxu0 %v291_v20  ;;  %1164 = vmatprep.subr.mxu1 %v257_v21 }
  0x6d   :  { %1196 = vmatpush3.msra.mxu0 %v275_v22  ;;  %1165 = vmatpush3.msra.mxu1 %v241_v23 }
  0x6e   :  { %1197 = vmatprep.subr.mxu0 %v290_v24  ;;  %1166 = vmatprep.subr.mxu1 %v256_v25 }
  0x6f   :  { %1198 = vmatpush3.msra.mxu0 %v274_v26  ;;  %1167 = vmatpush3.msra.mxu1 %v240_v27 }
  0x70   :  { %1199 = vmatprep.subr.mxu0 %v289_v28  ;;  %1168 = vmatprep.subr.mxu1 %v255_v29 }
  0x71   :  { %1200 = vmatpush3.msra.mxu0 %v273_v30  ;;  %1169 = vmatpush3.msra.mxu1 %v239_v31 }
  0x72   :  { %1201 = vmatprep.subr.mxu0 %v288_v32  ;;  %1170 = vmatprep.subr.mxu1 %v254_v33 }
  0x73   :  { %1202 = vmatpush3.msra.mxu0 %v272_v34  ;;  %1171 = vmatpush3.msra.mxu1 %v238_v35 }
  0x74   :  { %1203 = vmatprep.subr.mxu0 %v287_v36  ;;  %1172 = vmatprep.subr.mxu1 %v253_v37 }
  0x75   :  { %1204 = vmatpush3.msra.mxu0 %v271_v38  ;;  %1173 = vmatpush3.msra.mxu1 %v237_v39 }
  0x76   :  { %1205 = vmatprep.subr.mxu0 %v286_v40  ;;  %1174 = vmatprep.subr.mxu1 %v252_v41 }
  0x77   :  { %1206 = vmatpush3.msra.mxu0 %v270_v42  ;;  %1175 = vmatpush3.msra.mxu1 %v236_v43 }
  0x78   :  { %1207 = vmatprep.subr.mxu0 %v285_v44  ;;  %1176 = vmatprep.subr.mxu1 %v251_v45 }
  0x79   :  { %1208 = vmatpush3.msra.mxu0 %v269_v46  ;;  %1177 = vmatpush3.msra.mxu1 %v235_v47 }
  0x7a   :  { %1209 = vmatprep.subr.mxu0 %v284_v48  ;;  %1178 = vmatprep.subr.mxu1 %v250_v49 }
  0x7b   :  { %1210 = vmatpush3.msra.mxu0 %v268_v50  ;;  %1179 = vmatpush3.msra.mxu1 %v234_v51 }
  0x7c   :  { %1211 = vmatprep.subr.mxu0 %v283_v52  ;;  %1180 = vmatprep.subr.mxu1 %v249_v53 }
  0x7d   :  { %1212 = vmatpush3.msra.mxu0 %v267_v54  ;;  %1181 = vmatpush3.msra.mxu1 %v233_v55  ;;  %v946_v55 = vld [vmem:[%s2106_s4] ss:$0 sm:$0xff] }
  0x7e   :  { %1213 = vmatprep.subr.mxu0 %v282_v56  ;;  %1182 = vmatprep.subr.mxu1 %v248_v57 }
  0x7f   :  { %1214 = vmatpush3.msra.mxu0 %v266_v58  ;;  %1183 = vmatpush3.msra.mxu1 %v232_v59 }
  0x80   :  { %1215 = vmatprep.subr.mxu0 %v281_v60  ;;  %1184 = vmatprep.subr.mxu1 %v247_v61 }
  0x81   :  { %1216 = vmatpush3.msra.mxu0 %v265_v62  ;;  %1185 = vmatpush3.msra.mxu1 %v231_v63 }
  0x82   :  { %1217 = vmatprep.subr.mxu0 %v280_v0  ;;  %1186 = vmatprep.subr.mxu1 %v246_v1 }
  0x83   :  { %1218 = vmatpush3.msra.mxu0 %v264_v2  ;;  %1187 = vmatpush3.msra.mxu1 %v230_v3 }
  0x84   :  { %1219 = vmatprep.subr.mxu0 %v279_v4  ;;  %1188 = vmatprep.subr.mxu1 %v245_v5 }
  0x85   :  { %1220 = vmatpush3.msra.mxu0 %v263_v6  ;;  %1189 = vmatpush3.msra.mxu1 %v229_v7 }
  0x86   :  { %1221 = vmatprep.subr.mxu0 %v278_v8  ;;  %1190 = vmatprep.subr.mxu1 %v244_v9 }
  0x87   :  { %1222 = vmatpush3.msra.mxu0 %v262_v10  ;;  %1191 = vmatpush3.msra.mxu1 %v228_v11 }
  0x88   :  { %853 = vmatprep.mubr.f32.mxu1 %v33_v12  ;;  %1223 = vmatprep.subr.mxu0 %v277_v13 }
  0x89   :  { %854 = vmatmul.mubr.f32.vlgmr.msra.gmra.mxu1 %v32_v14  ;;  %1224 = vmatpush3.msra.mxu0 %v261_v15 }
  0x8a   :  { %1225 = vmatprep.subr.mxu0 %v276_v16  ;;  %923 = vmatprep.mubr.f32.mxu0 %v35_v17 }
  0x8b   :  { %1226 = vmatpush3.msra.mxu0 %v260_v18 }
  0x8c   :  { %924 = vmatmul.mubr.f32.vlgmr.msra.gmra.mxu0 %v34_v19 }
  0xc5   :  { %v365_v20 = vpop.f32.mrf.mxu0 }
  0xc7   :  { %v1236_v21 = vpop.f32.mrf.mxu0 }
  0xe3   :  { %v982_v22 = vpop.f32.mrf.mxu1 }
  0xe5   :  { %v983_v23 = vpop.f32.mrf.mxu1 }
  0xe6   :  { %v984_v26 = vadd.f32 %v983_v23, %v982_v22 }
  0xe7   :  { %v1017_v24 = vpop.f32.mrf.mxu0 }
  0xe8   :  { %v436_v30 = vadd.f32 %v984_v26, %v365_v20 }
  0xe9   :  { %v1018_v27 = vpop.f32.mrf.mxu0 }
  0xea   :  { %v1019_v31 = vadd.f32 %v1018_v27, %v1017_v24 }
  0xec   :  { %v506_v35 = vadd.f32 %v1019_v31, %v436_v30 }
 0x105   :  { %v1052_v25 = vpop.f32.mrf.mxu1 }
 0x107   :  { %v1053_v28 = vpop.f32.mrf.mxu1 }
 0x108   :  { %v1054_v33 = vadd.f32 %v1053_v28, %v1052_v25 }
 0x109   :  { %v1087_v29 = vpop.f32.mrf.mxu0 }
 0x10a   :  { %v576_v38 = vadd.f32 %v1054_v33, %v506_v35 }
 0x10b   :  { %v1088_v34 = vpop.f32.mrf.mxu0 }
 0x10c   :  { %v1089_v39 = vadd.f32 %v1088_v34, %v1087_v29 }
 0x10e   :  { %v646_v42 = vadd.f32 %v1089_v39, %v576_v38 }
 0x127   :  { %v1122_v32 = vpop.f32.mrf.mxu1 }
 0x129   :  { %v1123_v36 = vpop.f32.mrf.mxu1 }
 0x12a   :  { %v1124_v40 = vadd.f32 %v1123_v36, %v1122_v32 }
 0x12b   :  { %v1157_v37 = vpop.f32.mrf.mxu0 }
 0x12c   :  { %v716_v43 = vadd.f32 %v1124_v40, %v646_v42 }
 0x12d   :  { %v1158_v41 = vpop.f32.mrf.mxu0 }
 0x12e   :  { %v1159_v44 = vadd.f32 %v1158_v41, %v1157_v37 }
 0x130   :  { %v786_v47 = vadd.f32 %v1159_v44, %v716_v43 }
 0x149   :  { %v1192_v45 = vpop.f32.mrf.mxu1 }
 0x14b   :  { %v1193_v46 = vpop.f32.mrf.mxu1 }
 0x14c   :  { %v1194_v48 = vadd.f32 %v1193_v46, %v1192_v45  ;;  %v1227_v49 = vpop.f32.mrf.mxu0 }
 0x14e   :  { %v856_v50 = vadd.f32 %v1194_v48, %v786_v47  ;;  %v1228_v51 = vpop.f32.mrf.mxu0 }
 0x14f   :  { %v1229_v52 = vadd.f32 %v1228_v51, %v1227_v49 }
 0x151   :  { %v926_v53 = vadd.f32 %v1229_v52, %v856_v50 }
 0x153   :  { %vm929_vm2 = vcmp.ge.f32.partialorder %v926_v53, 0.0  ;;  %v930_v54 = vmul.f32 0.2, %v926_v53 }
 0x155   :  { %v931_v56 = vsel %vm929_vm2, %v926_v53, %v930_v54 }
 0x156   :  { %v939_v57 = vadd.f32 %v946_v55, %v931_v56 }
 0x158   :  { %940 = vst [vmem:[%s2107_s5] sm:$0xff] %v939_v57 }

</bundles_post_ra>
